<compile_context>
chip_gen: v5e
topology: v5e:2x2
jax: 0.10.0
libtpu: 0.0.40
codegen_flags: <defaults>
</compile_context>

<pallas_src>
import functools

import jax
import jax.numpy as jnp
from jax.experimental import pallas as pl
from jax.experimental.pallas import tpu as pltpu


def _embedding_net_kernel(x_ref, table_ref, out_ref, *, feature_meta, num_cols, v_pad):
    """Fused forward for one packed batch tile (2 original rows per kernel row).

    x_ref     : (bm2, 2*num_cols) f32   ids of original rows 2r | 2r+1 side by side
    table_ref : (2*v_pad, 2*out_dim) f32  block-diagonal table, 1/L_f folded in
    out_ref   : (bm2, 2*out_dim) f32    rows 2r | 2r+1 side by side, features concatenated
    """
    ids = x_ref[...].astype(jnp.int32)                       # (bm2, 2*num_cols)
    bm2 = ids.shape[0]
    k_total = 2 * v_pad

    lane = jax.lax.broadcasted_iota(jnp.int32, (bm2, k_total), 1)   # hoisted, built once
    counts = jnp.zeros((bm2, k_total), dtype=jnp.float32)

    # Static unroll: 2 packed slots x n_feat features x L_f slots (16 one-hot adds here).
    for s in range(2):                                        # even / odd original row
        for cols, vocab, row_off in feature_meta:
            base = s * v_pad + row_off
            for c in cols:                                    # static column slices
                raw = ids[:, s * num_cols + c: s * num_cols + c + 1]     # (bm2, 1)
                valid = jnp.logical_and(raw >= 0, raw < vocab)
                slot = jnp.where(valid, raw + base, -1)       # invalid ids -> never match
                counts = counts + (lane == slot).astype(jnp.float32)

    # Single MXU matmul: K = 2*v_pad (256), N = 2*out_dim (128).  Result lanes are already
    # in [row 2r: feat0|feat1 , row 2r+1: feat0|feat1] order -> one full-width unmasked store.
    out_ref[...] = jnp.dot(counts, table_ref[...], preferred_element_type=jnp.float32)


def embedding_net_forward(x, big_table, feature_meta, num_cols, out_dim, *, block_batch=2048):
    """x: (B, num_cols) f32 ids -> (B, out_dim) f32."""
    B, nc = x.shape
    assert nc == num_cols
    assert B % 2 == 0, "packed (2 rows per kernel row) layout needs an even batch"
    B2 = B // 2
    bm2 = min(block_batch // 2, B2)
    assert bm2 % 8 == 0 and B2 % bm2 == 0, "demo wrapper assumes aligned batch tiles"

    x_packed = x.reshape(B2, 2 * num_cols)                    # free contiguous reshape
    kernel = functools.partial(_embedding_net_kernel, feature_meta=feature_meta,
                               num_cols=num_cols, v_pad=big_table.shape[0] // 2)

    out_packed = pl.pallas_call(
        kernel,
        out_shape=jax.ShapeDtypeStruct((B2, 2 * out_dim), jnp.float32),
        grid_spec=pltpu.PrefetchScalarGridSpec(
            num_scalar_prefetch=0,
            grid=(B2 // bm2,),
            in_specs=[
                pl.BlockSpec((bm2, 2 * num_cols), lambda b: (b, 0)),   # ids tile, pipelined
                pl.BlockSpec(big_table.shape, lambda b: (0, 0)),       # grid-invariant -> VMEM resident
            ],
            out_specs=pl.BlockSpec((bm2, 2 * out_dim), lambda b: (b, 0)),
        ),
        compiler_params=pltpu.CompilerParams(
            # Batch tiles are independent -> shard across the 2 TCs on v7x (no-op on v5e/v6e).
            dimension_semantics=("parallel",),
        ),
    )(x_packed, big_table)
    return out_packed.reshape(B, out_dim)                     # free contiguous reshape


class EmbeddingNetPallas:
    """JAX/Pallas re-implementation of EmbeddingNet (single fused kernel).

    sparse_features: dict name -> {'num_emb': int, 'index': list[int]}
    """

    def __init__(self, sparse_features, cat_dim, key):
        self.sparse_features = sparse_features
        self.cat_dim = cat_dim

        self.tables = []
        meta = []
        row_off = 0
        for name, feat in sparse_features.items():
            key, sub = jax.random.split(key)
            vocab = feat['num_emb'] + 1
            tbl = jax.random.normal(sub, (vocab, cat_dim), dtype=jnp.float32)
            tbl = tbl.at[0].set(0.0)                 # padding_idx=0 -> row 0 is zeros
            self.tables.append(tbl)
            meta.append((tuple(feat['index']), vocab, row_off))
            row_off += vocab
        self.feature_meta = tuple(meta)
        self.n_feat = len(self.tables)
        self.out_dim = self.n_feat * cat_dim

        v_total = row_off
        self.v_pad = ((v_total + 127) // 128) * 128  # lane-align the counts buffer

        # Block-diagonal table with the 1/L_f mean scale folded into the rows, replicated
        # once per packed output slot (2 original rows per kernel row).
        big = jnp.zeros((2 * self.v_pad, 2 * self.out_dim), dtype=jnp.float32)
        for f, ((cols, vocab, off), tbl) in enumerate(zip(self.feature_meta, self.tables)):
            scaled = tbl * (1.0 / float(len(cols)))
            for s in range(2):
                r0 = s * self.v_pad + off
                c0 = s * self.out_dim + f * cat_dim
                big = big.at[r0:r0 + vocab, c0:c0 + cat_dim].set(scaled)
        self.big_table = big

    def __call__(self, x, *, block_batch=2048):
        return embedding_net_forward(x, self.big_table, self.feature_meta,
                                     x.shape[1], self.out_dim, block_batch=block_batch)

    def reference(self, x):
        """Plain-JAX reference mirroring the PyTorch forward."""
        outs = []
        for (cols, _vocab, _off), tbl in zip(self.feature_meta, self.tables):
            idx = jnp.asarray(cols, dtype=jnp.int32)
            ids = jnp.take(x, idx, axis=1).astype(jnp.int32)
            emb = jnp.take(tbl, ids, axis=0)                  # (B, L, D)
            outs.append(jnp.mean(emb, axis=1))
        return jnp.concatenate(outs, axis=1)


if __name__ == "__main__":
    key = jax.random.PRNGKey(0)

    # Synthetic feature mapping (the module's __init__ defines the shapes).
    sparse_features = {
        "feat_a": {"num_emb": 40, "index": [0, 1, 2]},        # L=3 slots, V=41
        "feat_b": {"num_emb": 60, "index": [3, 4, 5, 6, 7]},  # L=5 slots, V=61
    }
    cat_dim = 32
    batch = 1024          # -> 4 batch tiles at block_batch=256 (even grid for v7x megacore)

    key, k_param, k_a, k_b = jax.random.split(key, 4)
    net = EmbeddingNetPallas(sparse_features, cat_dim, k_param)

    # Input ids per feature (0 acts as padding id), stored as float32 like the module.
    ids_a = jax.random.randint(k_a, (batch, 3), 0, 41)
    ids_b = jax.random.randint(k_b, (batch, 5), 0, 61)
    x = jnp.concatenate([ids_a, ids_b], axis=1).astype(jnp.float32)  # (batch, 8)

    out = jax.block_until_ready(net(x, block_batch=256))
    ref = net.reference(x)

    assert out.shape == (batch, net.out_dim)
    assert jnp.allclose(out, ref, atol=1e-5, rtol=1e-5)

    print("KERNEL_OK")
</pallas_src>

<mosaic_0001>
module attributes {stable_mosaic.version = 11 : i64} {
  func.func @_embedding_net_kernel(%arg0: i32, %arg1: memref<128x16xf32, #tpu.memory_space<vmem>>, %arg2: memref<256x128xf32, #tpu.memory_space<vmem>>, %arg3: memref<128x128xf32, #tpu.memory_space<vmem>>) attributes {dimension_semantics = [#tpu.dimension_semantics<parallel>], iteration_bounds = array<i64: 4>, scalar_prefetch = 0 : i64, scratch_operands = 0 : i64, tpu.core_type = #tpu.core_type<tc>, window_params = [{transform_indices = @transform_0, window_bounds = array<i64: 128, 16>}, {pipeline_mode = #tpu.pipeline_mode<synchronous>, transform_indices = @transform_1, window_bounds = array<i64: 256, 128>}, {transform_indices = @transform_2, window_bounds = array<i64: 128, 128>}]} {
    %c0 = arith.constant 0 : index
    %c0_0 = arith.constant 0 : index
    %0 = vector.load %arg1[%c0, %c0_0] : memref<128x16xf32, #tpu.memory_space<vmem>>, vector<128x16xf32>
    %1 = arith.fptosi %0 : vector<128x16xf32> to vector<128x16xi32>
    %2 = tpu.iota {dimensions = array<i32: 1>} : vector<128x256xi32>
    %cst = arith.constant 0.000000e+00 : f32
    %3 = vector.broadcast %cst : f32 to vector<128x256xf32>
    %4 = vector.extract_strided_slice %1 {offsets = [0, 0], sizes = [128, 1], strides = [1, 1]} : vector<128x16xi32> to vector<128x1xi32>
    %c0_i32 = arith.constant 0 : i32
    %5 = vector.broadcast %c0_i32 : i32 to vector<128x1xi32>
    %6 = arith.cmpi sge, %4, %5 : vector<128x1xi32>
    %c41_i32 = arith.constant 41 : i32
    %7 = vector.broadcast %c41_i32 : i32 to vector<128x1xi32>
    %8 = arith.cmpi slt, %4, %7 : vector<128x1xi32>
    %9 = arith.andi %6, %8 : vector<128x1xi1>
    %c0_i32_1 = arith.constant 0 : i32
    %10 = vector.broadcast %c0_i32_1 : i32 to vector<128x1xi32>
    %11 = arith.addi %4, %10 : vector<128x1xi32>
    %c-1_i32 = arith.constant -1 : i32
    %12 = vector.broadcast %c-1_i32 : i32 to vector<128x1xi32>
    %13 = arith.select %9, %11, %12 : vector<128x1xi1>, vector<128x1xi32>
    %14 = vector.broadcast %13 : vector<128x1xi32> to vector<128x256xi32>
    %15 = arith.cmpi eq, %2, %14 : vector<128x256xi32>
    %16 = arith.extui %15 : vector<128x256xi1> to vector<128x256xi32>
    %17 = arith.sitofp %16 : vector<128x256xi32> to vector<128x256xf32>
    %18 = arith.addf %3, %17 : vector<128x256xf32>
    %19 = vector.extract_strided_slice %1 {offsets = [0, 1], sizes = [128, 1], strides = [1, 1]} : vector<128x16xi32> to vector<128x1xi32>
    %c0_i32_2 = arith.constant 0 : i32
    %20 = vector.broadcast %c0_i32_2 : i32 to vector<128x1xi32>
    %21 = arith.cmpi sge, %19, %20 : vector<128x1xi32>
    %c41_i32_3 = arith.constant 41 : i32
    %22 = vector.broadcast %c41_i32_3 : i32 to vector<128x1xi32>
    %23 = arith.cmpi slt, %19, %22 : vector<128x1xi32>
    %24 = arith.andi %21, %23 : vector<128x1xi1>
    %c0_i32_4 = arith.constant 0 : i32
    %25 = vector.broadcast %c0_i32_4 : i32 to vector<128x1xi32>
    %26 = arith.addi %19, %25 : vector<128x1xi32>
    %c-1_i32_5 = arith.constant -1 : i32
    %27 = vector.broadcast %c-1_i32_5 : i32 to vector<128x1xi32>
    %28 = arith.select %24, %26, %27 : vector<128x1xi1>, vector<128x1xi32>
    %29 = vector.broadcast %28 : vector<128x1xi32> to vector<128x256xi32>
    %30 = arith.cmpi eq, %2, %29 : vector<128x256xi32>
    %31 = arith.extui %30 : vector<128x256xi1> to vector<128x256xi32>
    %32 = arith.sitofp %31 : vector<128x256xi32> to vector<128x256xf32>
    %33 = arith.addf %18, %32 : vector<128x256xf32>
    %34 = vector.extract_strided_slice %1 {offsets = [0, 2], sizes = [128, 1], strides = [1, 1]} : vector<128x16xi32> to vector<128x1xi32>
    %c0_i32_6 = arith.constant 0 : i32
    %35 = vector.broadcast %c0_i32_6 : i32 to vector<128x1xi32>
    %36 = arith.cmpi sge, %34, %35 : vector<128x1xi32>
    %c41_i32_7 = arith.constant 41 : i32
    %37 = vector.broadcast %c41_i32_7 : i32 to vector<128x1xi32>
    %38 = arith.cmpi slt, %34, %37 : vector<128x1xi32>
    %39 = arith.andi %36, %38 : vector<128x1xi1>
    %c0_i32_8 = arith.constant 0 : i32
    %40 = vector.broadcast %c0_i32_8 : i32 to vector<128x1xi32>
    %41 = arith.addi %34, %40 : vector<128x1xi32>
    %c-1_i32_9 = arith.constant -1 : i32
    %42 = vector.broadcast %c-1_i32_9 : i32 to vector<128x1xi32>
    %43 = arith.select %39, %41, %42 : vector<128x1xi1>, vector<128x1xi32>
    %44 = vector.broadcast %43 : vector<128x1xi32> to vector<128x256xi32>
    %45 = arith.cmpi eq, %2, %44 : vector<128x256xi32>
    %46 = arith.extui %45 : vector<128x256xi1> to vector<128x256xi32>
    %47 = arith.sitofp %46 : vector<128x256xi32> to vector<128x256xf32>
    %48 = arith.addf %33, %47 : vector<128x256xf32>
    %49 = vector.extract_strided_slice %1 {offsets = [0, 3], sizes = [128, 1], strides = [1, 1]} : vector<128x16xi32> to vector<128x1xi32>
    %c0_i32_10 = arith.constant 0 : i32
    %50 = vector.broadcast %c0_i32_10 : i32 to vector<128x1xi32>
    %51 = arith.cmpi sge, %49, %50 : vector<128x1xi32>
    %c61_i32 = arith.constant 61 : i32
    %52 = vector.broadcast %c61_i32 : i32 to vector<128x1xi32>
    %53 = arith.cmpi slt, %49, %52 : vector<128x1xi32>
    %54 = arith.andi %51, %53 : vector<128x1xi1>
    %c41_i32_11 = arith.constant 41 : i32
    %55 = vector.broadcast %c41_i32_11 : i32 to vector<128x1xi32>
    %56 = arith.addi %49, %55 : vector<128x1xi32>
    %c-1_i32_12 = arith.constant -1 : i32
    %57 = vector.broadcast %c-1_i32_12 : i32 to vector<128x1xi32>
    %58 = arith.select %54, %56, %57 : vector<128x1xi1>, vector<128x1xi32>
    %59 = vector.broadcast %58 : vector<128x1xi32> to vector<128x256xi32>
    %60 = arith.cmpi eq, %2, %59 : vector<128x256xi32>
    %61 = arith.extui %60 : vector<128x256xi1> to vector<128x256xi32>
    %62 = arith.sitofp %61 : vector<128x256xi32> to vector<128x256xf32>
    %63 = arith.addf %48, %62 : vector<128x256xf32>
    %64 = vector.extract_strided_slice %1 {offsets = [0, 4], sizes = [128, 1], strides = [1, 1]} : vector<128x16xi32> to vector<128x1xi32>
    %c0_i32_13 = arith.constant 0 : i32
    %65 = vector.broadcast %c0_i32_13 : i32 to vector<128x1xi32>
    %66 = arith.cmpi sge, %64, %65 : vector<128x1xi32>
    %c61_i32_14 = arith.constant 61 : i32
    %67 = vector.broadcast %c61_i32_14 : i32 to vector<128x1xi32>
    %68 = arith.cmpi slt, %64, %67 : vector<128x1xi32>
    %69 = arith.andi %66, %68 : vector<128x1xi1>
    %c41_i32_15 = arith.constant 41 : i32
    %70 = vector.broadcast %c41_i32_15 : i32 to vector<128x1xi32>
    %71 = arith.addi %64, %70 : vector<128x1xi32>
    %c-1_i32_16 = arith.constant -1 : i32
    %72 = vector.broadcast %c-1_i32_16 : i32 to vector<128x1xi32>
    %73 = arith.select %69, %71, %72 : vector<128x1xi1>, vector<128x1xi32>
    %74 = vector.broadcast %73 : vector<128x1xi32> to vector<128x256xi32>
    %75 = arith.cmpi eq, %2, %74 : vector<128x256xi32>
    %76 = arith.extui %75 : vector<128x256xi1> to vector<128x256xi32>
    %77 = arith.sitofp %76 : vector<128x256xi32> to vector<128x256xf32>
    %78 = arith.addf %63, %77 : vector<128x256xf32>
    %79 = vector.extract_strided_slice %1 {offsets = [0, 5], sizes = [128, 1], strides = [1, 1]} : vector<128x16xi32> to vector<128x1xi32>
    %c0_i32_17 = arith.constant 0 : i32
    %80 = vector.broadcast %c0_i32_17 : i32 to vector<128x1xi32>
    %81 = arith.cmpi sge, %79, %80 : vector<128x1xi32>
    %c61_i32_18 = arith.constant 61 : i32
    %82 = vector.broadcast %c61_i32_18 : i32 to vector<128x1xi32>
    %83 = arith.cmpi slt, %79, %82 : vector<128x1xi32>
    %84 = arith.andi %81, %83 : vector<128x1xi1>
    %c41_i32_19 = arith.constant 41 : i32
    %85 = vector.broadcast %c41_i32_19 : i32 to vector<128x1xi32>
    %86 = arith.addi %79, %85 : vector<128x1xi32>
    %c-1_i32_20 = arith.constant -1 : i32
    %87 = vector.broadcast %c-1_i32_20 : i32 to vector<128x1xi32>
    %88 = arith.select %84, %86, %87 : vector<128x1xi1>, vector<128x1xi32>
    %89 = vector.broadcast %88 : vector<128x1xi32> to vector<128x256xi32>
    %90 = arith.cmpi eq, %2, %89 : vector<128x256xi32>
    %91 = arith.extui %90 : vector<128x256xi1> to vector<128x256xi32>
    %92 = arith.sitofp %91 : vector<128x256xi32> to vector<128x256xf32>
    %93 = arith.addf %78, %92 : vector<128x256xf32>
    %94 = vector.extract_strided_slice %1 {offsets = [0, 6], sizes = [128, 1], strides = [1, 1]} : vector<128x16xi32> to vector<128x1xi32>
    %c0_i32_21 = arith.constant 0 : i32
    %95 = vector.broadcast %c0_i32_21 : i32 to vector<128x1xi32>
    %96 = arith.cmpi sge, %94, %95 : vector<128x1xi32>
    %c61_i32_22 = arith.constant 61 : i32
    %97 = vector.broadcast %c61_i32_22 : i32 to vector<128x1xi32>
    %98 = arith.cmpi slt, %94, %97 : vector<128x1xi32>
    %99 = arith.andi %96, %98 : vector<128x1xi1>
    %c41_i32_23 = arith.constant 41 : i32
    %100 = vector.broadcast %c41_i32_23 : i32 to vector<128x1xi32>
    %101 = arith.addi %94, %100 : vector<128x1xi32>
    %c-1_i32_24 = arith.constant -1 : i32
    %102 = vector.broadcast %c-1_i32_24 : i32 to vector<128x1xi32>
    %103 = arith.select %99, %101, %102 : vector<128x1xi1>, vector<128x1xi32>
    %104 = vector.broadcast %103 : vector<128x1xi32> to vector<128x256xi32>
    %105 = arith.cmpi eq, %2, %104 : vector<128x256xi32>
    %106 = arith.extui %105 : vector<128x256xi1> to vector<128x256xi32>
    %107 = arith.sitofp %106 : vector<128x256xi32> to vector<128x256xf32>
    %108 = arith.addf %93, %107 : vector<128x256xf32>
    %109 = vector.extract_strided_slice %1 {offsets = [0, 7], sizes = [128, 1], strides = [1, 1]} : vector<128x16xi32> to vector<128x1xi32>
    %c0_i32_25 = arith.constant 0 : i32
    %110 = vector.broadcast %c0_i32_25 : i32 to vector<128x1xi32>
    %111 = arith.cmpi sge, %109, %110 : vector<128x1xi32>
    %c61_i32_26 = arith.constant 61 : i32
    %112 = vector.broadcast %c61_i32_26 : i32 to vector<128x1xi32>
    %113 = arith.cmpi slt, %109, %112 : vector<128x1xi32>
    %114 = arith.andi %111, %113 : vector<128x1xi1>
    %c41_i32_27 = arith.constant 41 : i32
    %115 = vector.broadcast %c41_i32_27 : i32 to vector<128x1xi32>
    %116 = arith.addi %109, %115 : vector<128x1xi32>
    %c-1_i32_28 = arith.constant -1 : i32
    %117 = vector.broadcast %c-1_i32_28 : i32 to vector<128x1xi32>
    %118 = arith.select %114, %116, %117 : vector<128x1xi1>, vector<128x1xi32>
    %119 = vector.broadcast %118 : vector<128x1xi32> to vector<128x256xi32>
    %120 = arith.cmpi eq, %2, %119 : vector<128x256xi32>
    %121 = arith.extui %120 : vector<128x256xi1> to vector<128x256xi32>
    %122 = arith.sitofp %121 : vector<128x256xi32> to vector<128x256xf32>
    %123 = arith.addf %108, %122 : vector<128x256xf32>
    %124 = vector.extract_strided_slice %1 {offsets = [0, 8], sizes = [128, 1], strides = [1, 1]} : vector<128x16xi32> to vector<128x1xi32>
    %c0_i32_29 = arith.constant 0 : i32
    %125 = vector.broadcast %c0_i32_29 : i32 to vector<128x1xi32>
    %126 = arith.cmpi sge, %124, %125 : vector<128x1xi32>
    %c41_i32_30 = arith.constant 41 : i32
    %127 = vector.broadcast %c41_i32_30 : i32 to vector<128x1xi32>
    %128 = arith.cmpi slt, %124, %127 : vector<128x1xi32>
    %129 = arith.andi %126, %128 : vector<128x1xi1>
    %c128_i32 = arith.constant 128 : i32
    %130 = vector.broadcast %c128_i32 : i32 to vector<128x1xi32>
    %131 = arith.addi %124, %130 : vector<128x1xi32>
    %c-1_i32_31 = arith.constant -1 : i32
    %132 = vector.broadcast %c-1_i32_31 : i32 to vector<128x1xi32>
    %133 = arith.select %129, %131, %132 : vector<128x1xi1>, vector<128x1xi32>
    %134 = vector.broadcast %133 : vector<128x1xi32> to vector<128x256xi32>
    %135 = arith.cmpi eq, %2, %134 : vector<128x256xi32>
    %136 = arith.extui %135 : vector<128x256xi1> to vector<128x256xi32>
    %137 = arith.sitofp %136 : vector<128x256xi32> to vector<128x256xf32>
    %138 = arith.addf %123, %137 : vector<128x256xf32>
    %139 = vector.extract_strided_slice %1 {offsets = [0, 9], sizes = [128, 1], strides = [1, 1]} : vector<128x16xi32> to vector<128x1xi32>
    %c0_i32_32 = arith.constant 0 : i32
    %140 = vector.broadcast %c0_i32_32 : i32 to vector<128x1xi32>
    %141 = arith.cmpi sge, %139, %140 : vector<128x1xi32>
    %c41_i32_33 = arith.constant 41 : i32
    %142 = vector.broadcast %c41_i32_33 : i32 to vector<128x1xi32>
    %143 = arith.cmpi slt, %139, %142 : vector<128x1xi32>
    %144 = arith.andi %141, %143 : vector<128x1xi1>
    %c128_i32_34 = arith.constant 128 : i32
    %145 = vector.broadcast %c128_i32_34 : i32 to vector<128x1xi32>
    %146 = arith.addi %139, %145 : vector<128x1xi32>
    %c-1_i32_35 = arith.constant -1 : i32
    %147 = vector.broadcast %c-1_i32_35 : i32 to vector<128x1xi32>
    %148 = arith.select %144, %146, %147 : vector<128x1xi1>, vector<128x1xi32>
    %149 = vector.broadcast %148 : vector<128x1xi32> to vector<128x256xi32>
    %150 = arith.cmpi eq, %2, %149 : vector<128x256xi32>
    %151 = arith.extui %150 : vector<128x256xi1> to vector<128x256xi32>
    %152 = arith.sitofp %151 : vector<128x256xi32> to vector<128x256xf32>
    %153 = arith.addf %138, %152 : vector<128x256xf32>
    %154 = vector.extract_strided_slice %1 {offsets = [0, 10], sizes = [128, 1], strides = [1, 1]} : vector<128x16xi32> to vector<128x1xi32>
    %c0_i32_36 = arith.constant 0 : i32
    %155 = vector.broadcast %c0_i32_36 : i32 to vector<128x1xi32>
    %156 = arith.cmpi sge, %154, %155 : vector<128x1xi32>
    %c41_i32_37 = arith.constant 41 : i32
    %157 = vector.broadcast %c41_i32_37 : i32 to vector<128x1xi32>
    %158 = arith.cmpi slt, %154, %157 : vector<128x1xi32>
    %159 = arith.andi %156, %158 : vector<128x1xi1>
    %c128_i32_38 = arith.constant 128 : i32
    %160 = vector.broadcast %c128_i32_38 : i32 to vector<128x1xi32>
    %161 = arith.addi %154, %160 : vector<128x1xi32>
    %c-1_i32_39 = arith.constant -1 : i32
    %162 = vector.broadcast %c-1_i32_39 : i32 to vector<128x1xi32>
    %163 = arith.select %159, %161, %162 : vector<128x1xi1>, vector<128x1xi32>
    %164 = vector.broadcast %163 : vector<128x1xi32> to vector<128x256xi32>
    %165 = arith.cmpi eq, %2, %164 : vector<128x256xi32>
    %166 = arith.extui %165 : vector<128x256xi1> to vector<128x256xi32>
    %167 = arith.sitofp %166 : vector<128x256xi32> to vector<128x256xf32>
    %168 = arith.addf %153, %167 : vector<128x256xf32>
    %169 = vector.extract_strided_slice %1 {offsets = [0, 11], sizes = [128, 1], strides = [1, 1]} : vector<128x16xi32> to vector<128x1xi32>
    %c0_i32_40 = arith.constant 0 : i32
    %170 = vector.broadcast %c0_i32_40 : i32 to vector<128x1xi32>
    %171 = arith.cmpi sge, %169, %170 : vector<128x1xi32>
    %c61_i32_41 = arith.constant 61 : i32
    %172 = vector.broadcast %c61_i32_41 : i32 to vector<128x1xi32>
    %173 = arith.cmpi slt, %169, %172 : vector<128x1xi32>
    %174 = arith.andi %171, %173 : vector<128x1xi1>
    %c169_i32 = arith.constant 169 : i32
    %175 = vector.broadcast %c169_i32 : i32 to vector<128x1xi32>
    %176 = arith.addi %169, %175 : vector<128x1xi32>
    %c-1_i32_42 = arith.constant -1 : i32
    %177 = vector.broadcast %c-1_i32_42 : i32 to vector<128x1xi32>
    %178 = arith.select %174, %176, %177 : vector<128x1xi1>, vector<128x1xi32>
    %179 = vector.broadcast %178 : vector<128x1xi32> to vector<128x256xi32>
    %180 = arith.cmpi eq, %2, %179 : vector<128x256xi32>
    %181 = arith.extui %180 : vector<128x256xi1> to vector<128x256xi32>
    %182 = arith.sitofp %181 : vector<128x256xi32> to vector<128x256xf32>
    %183 = arith.addf %168, %182 : vector<128x256xf32>
    %184 = vector.extract_strided_slice %1 {offsets = [0, 12], sizes = [128, 1], strides = [1, 1]} : vector<128x16xi32> to vector<128x1xi32>
    %c0_i32_43 = arith.constant 0 : i32
    %185 = vector.broadcast %c0_i32_43 : i32 to vector<128x1xi32>
    %186 = arith.cmpi sge, %184, %185 : vector<128x1xi32>
    %c61_i32_44 = arith.constant 61 : i32
    %187 = vector.broadcast %c61_i32_44 : i32 to vector<128x1xi32>
    %188 = arith.cmpi slt, %184, %187 : vector<128x1xi32>
    %189 = arith.andi %186, %188 : vector<128x1xi1>
    %c169_i32_45 = arith.constant 169 : i32
    %190 = vector.broadcast %c169_i32_45 : i32 to vector<128x1xi32>
    %191 = arith.addi %184, %190 : vector<128x1xi32>
    %c-1_i32_46 = arith.constant -1 : i32
    %192 = vector.broadcast %c-1_i32_46 : i32 to vector<128x1xi32>
    %193 = arith.select %189, %191, %192 : vector<128x1xi1>, vector<128x1xi32>
    %194 = vector.broadcast %193 : vector<128x1xi32> to vector<128x256xi32>
    %195 = arith.cmpi eq, %2, %194 : vector<128x256xi32>
    %196 = arith.extui %195 : vector<128x256xi1> to vector<128x256xi32>
    %197 = arith.sitofp %196 : vector<128x256xi32> to vector<128x256xf32>
    %198 = arith.addf %183, %197 : vector<128x256xf32>
    %199 = vector.extract_strided_slice %1 {offsets = [0, 13], sizes = [128, 1], strides = [1, 1]} : vector<128x16xi32> to vector<128x1xi32>
    %c0_i32_47 = arith.constant 0 : i32
    %200 = vector.broadcast %c0_i32_47 : i32 to vector<128x1xi32>
    %201 = arith.cmpi sge, %199, %200 : vector<128x1xi32>
    %c61_i32_48 = arith.constant 61 : i32
    %202 = vector.broadcast %c61_i32_48 : i32 to vector<128x1xi32>
    %203 = arith.cmpi slt, %199, %202 : vector<128x1xi32>
    %204 = arith.andi %201, %203 : vector<128x1xi1>
    %c169_i32_49 = arith.constant 169 : i32
    %205 = vector.broadcast %c169_i32_49 : i32 to vector<128x1xi32>
    %206 = arith.addi %199, %205 : vector<128x1xi32>
    %c-1_i32_50 = arith.constant -1 : i32
    %207 = vector.broadcast %c-1_i32_50 : i32 to vector<128x1xi32>
    %208 = arith.select %204, %206, %207 : vector<128x1xi1>, vector<128x1xi32>
    %209 = vector.broadcast %208 : vector<128x1xi32> to vector<128x256xi32>
    %210 = arith.cmpi eq, %2, %209 : vector<128x256xi32>
    %211 = arith.extui %210 : vector<128x256xi1> to vector<128x256xi32>
    %212 = arith.sitofp %211 : vector<128x256xi32> to vector<128x256xf32>
    %213 = arith.addf %198, %212 : vector<128x256xf32>
    %214 = vector.extract_strided_slice %1 {offsets = [0, 14], sizes = [128, 1], strides = [1, 1]} : vector<128x16xi32> to vector<128x1xi32>
    %c0_i32_51 = arith.constant 0 : i32
    %215 = vector.broadcast %c0_i32_51 : i32 to vector<128x1xi32>
    %216 = arith.cmpi sge, %214, %215 : vector<128x1xi32>
    %c61_i32_52 = arith.constant 61 : i32
    %217 = vector.broadcast %c61_i32_52 : i32 to vector<128x1xi32>
    %218 = arith.cmpi slt, %214, %217 : vector<128x1xi32>
    %219 = arith.andi %216, %218 : vector<128x1xi1>
    %c169_i32_53 = arith.constant 169 : i32
    %220 = vector.broadcast %c169_i32_53 : i32 to vector<128x1xi32>
    %221 = arith.addi %214, %220 : vector<128x1xi32>
    %c-1_i32_54 = arith.constant -1 : i32
    %222 = vector.broadcast %c-1_i32_54 : i32 to vector<128x1xi32>
    %223 = arith.select %219, %221, %222 : vector<128x1xi1>, vector<128x1xi32>
    %224 = vector.broadcast %223 : vector<128x1xi32> to vector<128x256xi32>
    %225 = arith.cmpi eq, %2, %224 : vector<128x256xi32>
    %226 = arith.extui %225 : vector<128x256xi1> to vector<128x256xi32>
    %227 = arith.sitofp %226 : vector<128x256xi32> to vector<128x256xf32>
    %228 = arith.addf %213, %227 : vector<128x256xf32>
    %229 = vector.extract_strided_slice %1 {offsets = [0, 15], sizes = [128, 1], strides = [1, 1]} : vector<128x16xi32> to vector<128x1xi32>
    %c0_i32_55 = arith.constant 0 : i32
    %230 = vector.broadcast %c0_i32_55 : i32 to vector<128x1xi32>
    %231 = arith.cmpi sge, %229, %230 : vector<128x1xi32>
    %c61_i32_56 = arith.constant 61 : i32
    %232 = vector.broadcast %c61_i32_56 : i32 to vector<128x1xi32>
    %233 = arith.cmpi slt, %229, %232 : vector<128x1xi32>
    %234 = arith.andi %231, %233 : vector<128x1xi1>
    %c169_i32_57 = arith.constant 169 : i32
    %235 = vector.broadcast %c169_i32_57 : i32 to vector<128x1xi32>
    %236 = arith.addi %229, %235 : vector<128x1xi32>
    %c-1_i32_58 = arith.constant -1 : i32
    %237 = vector.broadcast %c-1_i32_58 : i32 to vector<128x1xi32>
    %238 = arith.select %234, %236, %237 : vector<128x1xi1>, vector<128x1xi32>
    %239 = vector.broadcast %238 : vector<128x1xi32> to vector<128x256xi32>
    %240 = arith.cmpi eq, %2, %239 : vector<128x256xi32>
    %241 = arith.extui %240 : vector<128x256xi1> to vector<128x256xi32>
    %242 = arith.sitofp %241 : vector<128x256xi32> to vector<128x256xf32>
    %243 = arith.addf %228, %242 : vector<128x256xf32>
    %c0_59 = arith.constant 0 : index
    %c0_60 = arith.constant 0 : index
    %244 = vector.load %arg2[%c0_59, %c0_60] : memref<256x128xf32, #tpu.memory_space<vmem>>, vector<256x128xf32>
    %cst_61 = arith.constant dense<0.000000e+00> : vector<128x128xf32>
    %245 = tpu.matmul %243, %244, %cst_61 {dimension_numbers = #tpu.dot_dimension_numbers<[1], [0], [0], [1], [0, 0, 1, 1], [], []>} : vector<128x256xf32>, vector<256x128xf32>, vector<128x128xf32> -> vector<128x128xf32>
    %c0_62 = arith.constant 0 : index
    %c0_63 = arith.constant 0 : index
    %246 = vector.load %arg3[%c0_62, %c0_63] : memref<128x128xf32, #tpu.memory_space<vmem>>, vector<128x128xf32>
    tpu.vector_store %arg3[%c0_62, %c0_63], %245 {strides = array<i32>} : memref<128x128xf32, #tpu.memory_space<vmem>>, vector<128x128xf32>,
    return
  }
  func.func @transform_0(%arg0: i32) -> (i32, i32) {
    %c0_i32 = arith.constant 0 : i32
    %c0_i32_0 = arith.constant 0 : i32
    return %arg0, %c0_i32 : i32, i32
  }
  func.func @transform_1(%arg0: i32) -> (i32, i32) {
    %c0_i32 = arith.constant 0 : i32
    %c0_i32_0 = arith.constant 0 : i32
    %c0_i32_1 = arith.constant 0 : i32
    return %c0_i32, %c0_i32_0 : i32, i32
  }
  func.func @transform_2(%arg0: i32) -> (i32, i32) {
    %c0_i32 = arith.constant 0 : i32
    %c0_i32_0 = arith.constant 0 : i32
    return %arg0, %c0_i32 : i32, i32
  }
}

</mosaic_0001>

<bundles_post_ra>
// kernel: tpu_custom_call.1
= control target key start
LH: loop header
LB: loop body
LE: loop exit
PB: predicated region body
PF: predicated region fallthrough
CT: control target
= control target key end

     0   :  { %7 = vsyncpa [#allocation3], 0  ;;  %s8119_s0 = inlined_call_operand.vmem [shape: f32[512,16], index: 0, kind: input, shape index: {}]   ;;  %s8120_s1 = inlined_call_operand.vmem [shape: f32[256,128], index: 1, kind: input, shape index: {}]   ;;  %s8121_s2 = inlined_call_operand.hbm [shape: f32[512,128], index: 2, kind: output, shape index: {}]  }
   0x1   :  { %9 = vsyncpa [#allocation3 + $0x1], 0  ;;  %s4311_s9 = smov 0   ;;  %s4313_s10 = smov 0  }
   0x2   :  { %s4315_s11 = smov 0   ;;  %s4317_s12 = smov 0  }
   0x3 LB: > { %s4332_s13 = sadd.s32 4294967295, %s4275_s12   ;;  %s3444_s14 = sadd.s32 4294967294, %s4275_s12   ;;  %s4275_s12 = sphi %s4317_s12, %s8815_s12   ;;  %s4271_s11 = sphi %s4315_s11, %s8814_s11   ;;  %s4267_s10 = sphi %s4313_s10, %s8813_s10   ;;  %s4263_s9 = sphi %s4311_s9, %s8812_s9  }
   0x4   : > { %s4336_s15 = sadd.s32 1, %s4275_s12   ;;  %s69_s16 = sadd.s32 1, %s4271_s11 }
   0x5   : > { %s66_s17 = ssub.s32 %s4275_s12, %s4336_s15  ;;  %p79_p0 = scmp.ne.s32.totalorder %s4271_s11, %s4267_s10 }
   0x6   : > { %p67_p1 = scmp.eq.s32.totalorder %s66_s17, 0  ;;  %p80_p2 = scmp.eq.s32.totalorder %s4332_s13, 3 }
   0x7   : > { %p85_p3 = scmp.ne.s32.totalorder %s4267_s10, %s4263_s9  ;;  %p86_p4 = scmp.eq.s32.totalorder %s3444_s14, 3 }
   0x8   : > { %s4347_s18 = scalar_select %p67_p1, %s4271_s11, %s69_s16  }
   0x9   : > { %p4349_p5 = por %p80_p2, %p79_p0  ;;  %p4353_p6 = por %p86_p4, %p85_p3 }
   0xa   : > { %p3447_p7 = scmp.ge.s32.totalorder %s4275_s12, 1  ;;  %p116_p8 = scmp.lt.s32.totalorder %s4275_s12, 5 }
   0xc   : > { %p117_p9 = pnand %p3447_p7, %p116_p8 }
   0xe   : > { %120 = sbr.rel (%p117_p9) target bundleno = 1041 (0x411), region = 28 }
  0x13   : > { %s3449_s21 = sshll.u32 %s4332_s13, 4  ;;  %v4277_v0 = vmov 0   ;;  %v8358_v23 = vmov 0  ;;  %v8361_v27 = vmov 0  ;;  %v8371_v47 = vmov 0  ;;  %s135_s5 = sand.u32 1, %s4267_s10  }
  0x14   : > { %4141 = vset.pattern.permute.xlu2 %v4277_v0  ;;  %4140 = vset.pattern.permute.xlu1 %v4277_v0  ;;  %p139_p10 = scmp.lt.s32.totalorder %s3449_s21, 63  ;;  %v8374_v52 = vmov 0  ;;  %s3448_s6 = sshll.u32 %s135_s5, 7 }
  0x15   : > { %4139 = vset.pattern.permute.xlu0 %v4277_v0  ;;  %s8063_s7 = scalar_lea.vmem [#allocation2], %s3448_s6  ;;  %s3968_s8 = sshll.u32 %s4332_s13, 7 }
  0x16   : > { %s8817_s21 = smov (!%p139_p10, %s3449_s21), 63  ;;  %s3378_s17 = scalar_lea.hbm %s8121_s2, %s3968_s8 }
  0x17   : > { %s3450_s22 = sshll.u32 %s8817_s21, 3  ;;  %s3379_s21 = sshll.u32 %s8063_s7, 4  ;;  %s3380_s21 = int_to_ptr.vmem [resolvable:$true] %s3379_s21 }
  0x18   : > { %s4363_s25 = scalar_lea.vmem %s8119_s0, %s3450_s22  ;;  %s3381_s22 = sshll.u32 %s3378_s17, 4  ;;  %s3382_s22 = int_to_ptr.hbm [resolvable:$true] %s3381_s22 }
  0x19   : > { %v149_v1 = vld [vmem:[%s4363_s25 + $0x20] sm:$0xff]  ;;  %v147_v2 = vld [vmem:[%s4363_s25 + $0x10] sm:$0xff]  ;;  %v150_v6 = vld [vmem:[%s4363_s25 + $0x28] sm:$0xff]  ;;  %s3367_s23 = scalar_lea.sflag [#allocation3], %s135_s5  ;;  %s4227_s24 = sshra.s32 %s3382_s22, 4  ;;  %s4228_s24 = int_to_ptr.hbm [resolvable:$true] %s4227_s24 }
  0x1a   : > { %v145_v3 = vld [vmem:[%s4363_s25] sm:$0xff]  ;;  %vm4021_vm0 = vcmp.lt.s32.totalorder %v149_v1, 0  ;;  %v4022_v4 = vceil.f32 %v149_v1  ;;  %v4023_v5 = vfloor.f32 %v149_v1  ;;  %vm4011_vm1 = vcmp.lt.s32.totalorder %v147_v2, 0  ;;  %v148_v10 = vld [vmem:[%s4363_s25 + $0x18] sm:$0xff]  ;;  %v146_v22 = vld [vmem:[%s4363_s25 + $0x8] sm:$0xff]  ;;  %s4233_s27 = scalar_lea.hbm %s8121_s2, 512  ;;  %p4234_p0 = scmp.lt.s32.totalorder %s4228_s24, %s8121_s2 }
  0x1b   : > { %v4012_v7 = vceil.f32 %v147_v2  ;;  %v4013_v8 = vfloor.f32 %v147_v2  ;;  %vm4001_vm2 = vcmp.lt.s32.totalorder %v145_v3, 0  ;;  %v4002_v9 = vceil.f32 %v145_v3  ;;  %v153_v26 = vld [vmem:[%s4363_s25 + $0x40] sm:$0xff]  ;;  %v152_v34 = vld [vmem:[%s4363_s25 + $0x38] sm:$0xff]  ;;  %v151_v37 = vld [vmem:[%s4363_s25 + $0x30] sm:$0xff] }
  0x1c   : > { %v4024_v11 = vsel %vm4021_vm0, %v4022_v4, %v4023_v5  ;;  %v4003_v12 = vfloor.f32 %v145_v3  ;;  %v4027_v13 = vceil.f32 %v150_v6  ;;  %vm4026_vm3 = vcmp.lt.s32.totalorder %v150_v6, 0  ;;  %v156_v43 = vld [vmem:[%s4363_s25 + $0x58] sm:$0xff]  ;;  %v155_v57 = vld [vmem:[%s4363_s25 + $0x50] sm:$0xff]  ;;  %v154_v62 = vld [vmem:[%s4363_s25 + $0x48] sm:$0xff] }
  0x1d   : > { %v4370_v14 = vcvt.f32.s32 %v4024_v11  ;;  %v4014_v15 = vsel %vm4011_vm1, %v4012_v7, %v4013_v8  ;;  %v4028_v16 = vfloor.f32 %v150_v6  ;;  %v4017_v19 = vceil.f32 %v148_v10  ;;  %v159_v6 = vld [vmem:[%s4363_s25 + $0x70] sm:$0xff] }
  0x1e   : > { %v4372_v17 = vcvt.f32.s32 %v4014_v15  ;;  %v4004_v18 = vsel %vm4001_vm2, %v4002_v9, %v4003_v12  ;;  %v4018_v20 = vfloor.f32 %v148_v10  ;;  %vm4016_vm6 = vcmp.lt.s32.totalorder %v148_v10, 0 }
  0x1f   : > { %8355 = vst [vmem:[#allocation5_spill] sm:$0xff] %v4370_v14  ;;  %vm8122_vm4 = vcmp.ge.s32.totalorder %v4370_v14, 0  ;;  %vm200_vm5 = vcmp.lt.s32.totalorder %v4370_v14, 41  ;;  %v4376_v21 = vcvt.f32.s32 %v4004_v18  ;;  %v4029_v24 = vsel %vm4026_vm3, %v4027_v13, %v4028_v16  ;;  %v158_v16 = vld [vmem:[%s4363_s25 + $0x68] sm:$0xff] }
  0x20   : > { %8356 = vst [vmem:[#allocation6_spill] sm:$0xff] %v4372_v17  ;;  %vm4381_vm7 = vmand %vm8122_vm4, %vm200_vm5  ;;  %vm8124_vm8 = vcmp.ge.s32.totalorder %v4372_v17, 0  ;;  %vm198_vm9 = vcmp.lt.s32.totalorder %v4372_v17, 41  ;;  %v4402_v28 = vcvt.f32.s32 %v4029_v24  ;;  %v4019_v29 = vsel %vm4016_vm6, %v4017_v19, %v4018_v20 }
  0x21   : > { %8357 = vst [vmem:[#allocation7_spill] sm:$0xff] %v4376_v21  ;;  %v8359_v23 = vsel %vm4381_vm7, 4294967295, %v8358_v23  ;;  %v4390_v25 = vsel %vm4381_vm7, %v4370_v14, 4294967295  ;;  %vm8126_vm10 = vcmp.ge.s32.totalorder %v4376_v21, 0  ;;  %vm196_vm11 = vcmp.lt.s32.totalorder %v4376_v21, 41  ;;  %vm4398_vm12 = vmand %vm8124_vm8, %vm198_vm9 }
  0x22   : > { %8360 = vst [vmem:[#allocation8_spill] sm:$0xff] %v8359_v23  ;;  %257 = vperm.xlu2 %4141, %v4390_v25   ;;  %v8362_v27 = vsel %vm4398_vm12, 4294967295, %v8361_v27  ;;  %v4007_v30 = vceil.f32 %v146_v22  ;;  %v4407_v31 = vsel %vm4398_vm12, %v4372_v17, 4294967295  ;;  %v4409_v32 = vcvt.f32.s32 %v4019_v29  ;;  %vm4415_vm14 = vmand %vm8126_vm10, %vm196_vm11 }
  0x23   : > { %8363 = vst [vmem:[#allocation9_spill] sm:$0xff] %v8362_v27  ;;  %vm4006_vm13 = vcmp.lt.s32.totalorder %v146_v22, 0  ;;  %v4008_v33 = vfloor.f32 %v146_v22  ;;  %251 = vperm.xlu1 %4140, %v4407_v31   ;;  %vm8123_vm15 = vcmp.ge.s32.totalorder %v4402_v28, 0  ;;  %vm201_vm0 = vcmp.lt.s32.totalorder %v4402_v28, 41  ;;  %v157_v22 = vld [vmem:[%s4363_s25 + $0x60] sm:$0xff] }
  0x24   : > { %8364 = vst [vmem:[#allocation10_spill] sm:$0xff] %v4402_v28  ;;  %v4042_v36 = vceil.f32 %v153_v26  ;;  %v4425_v38 = vsel %vm4415_vm14, %v4376_v21, 4294967295  ;;  %vm8125_vm1 = vcmp.ge.s32.totalorder %v4409_v32, 0  ;;  %vm199_vm2 = vcmp.lt.s32.totalorder %v4409_v32, 41  ;;  %vm4432_vm5 = vmand %vm8123_vm15, %vm201_vm0 }
  0x25   : > { %8365 = vst [vmem:[#allocation11_spill] sm:$0xff] %v4409_v32  ;;  %vm4041_vm3 = vcmp.lt.s32.totalorder %v153_v26, 0  ;;  %245 = vperm.xlu0 %4139, %v4425_v38   ;;  %v4009_v40 = vsel %vm4006_vm13, %v4007_v30, %v4008_v33  ;;  %v4043_v41 = vfloor.f32 %v153_v26  ;;  %vm4036_vm6 = vcmp.lt.s32.totalorder %v152_v34, 0  ;;  %vm4447_vm11 = vmand %vm8125_vm1, %vm199_vm2 }
  0x26   : > { %v4037_v42 = vceil.f32 %v152_v34  ;;  %v4441_v44 = vsel %vm4432_vm5, %v4402_v28, 4294967295  ;;  %v4443_v45 = vcvt.f32.s32 %v4009_v40  ;;  %v4038_v46 = vfloor.f32 %v152_v34 }
  0x27   : > { %vm4031_vm9 = vcmp.lt.s32.totalorder %v151_v37, 0  ;;  %v8372_v47 = vsel %vm4447_vm11, 4294967295, %v8371_v47  ;;  %v4044_v48 = vsel %vm4041_vm3, %v4042_v36, %v4043_v41  ;;  %v4032_v49 = vceil.f32 %v151_v37  ;;  %v160_v41 = vld [vmem:[%s4363_s25 + $0x78] sm:$0xff]  ;;  %s4229_s25 = scalar_lea.hbm %s4228_s24, 128 }
  0x28   : > { %8370 = vst [vmem:[#allocation12_spill] sm:$0xff] %v4443_v45  ;;  %v4033_v50 = vfloor.f32 %v151_v37  ;;  %v4454_v51 = vsel %vm4447_vm11, %v4409_v32, 4294967295  ;;  %vm8129_vm13 = vcmp.ge.s32.totalorder %v4443_v45, 0  ;;  %vm197_vm0 = vcmp.lt.s32.totalorder %v4443_v45, 41  ;;  %p4230_p11 = scmp.ne.s32.totalorder %s4228_s24, %s4229_s25  ;;  %p4235_p1 = scmp.lt.s32.totalorder %s4233_s27, %s4229_s25 }
  0x29   : > { %8373 = vst [vmem:[#allocation13_spill] sm:$0xff] %v8372_v47  ;;  %vm4056_vm4 = vcmp.lt.s32.totalorder %v156_v43, 0  ;;  %vm4461_vm2 = vmand %vm8129_vm13, %vm197_vm0  ;;  %v4465_v53 = vcvt.f32.s32 %v4044_v48  ;;  %v4039_v54 = vsel %vm4036_vm6, %v4037_v42, %v4038_v46  ;;  %v4057_v56 = vceil.f32 %v156_v43 }
  0x2a   : > { %260 = vperm.xlu2 %4141, %v4441_v44   ;;  %v8375_v52 = vsel %vm4461_vm2, 4294967295, %v8374_v52  ;;  %v4034_v55 = vsel %vm4031_vm9, %v4032_v49, %v4033_v50  ;;  %v4472_v58 = vsel %vm4461_vm2, %v4443_v45, 4294967295  ;;  %v4474_v59 = vcvt.f32.s32 %v4039_v54  ;;  %p4231_p12 = pnand %p4230_p11, %p4349_p5  ;;  %p4236_p2 = por %p4235_p1, %p4234_p0 }
  0x2b   : > { %8376 = vst [vmem:[#allocation14_spill] sm:$0xff] %v8375_v52  ;;  %v4476_v60 = vcvt.f32.s32 %v4034_v55  ;;  %v4058_v61 = vfloor.f32 %v156_v43  ;;  %254 = vperm.xlu1 %4140, %v4454_v51   ;;  %vm8127_vm3 = vcmp.ge.s32.totalorder %v4465_v53, 0  ;;  %vm204_vm0 = vcmp.lt.s32.totalorder %v4465_v53, 41 }
  0x2c   : > { %8377 = vst [vmem:[#allocation15_spill] sm:$0xff] %v4465_v53  ;;  %vm4484_vm6 = vmand %vm8127_vm3, %vm204_vm0  ;;  %vm8128_vm9 = vcmp.ge.s32.totalorder %v4474_v59, 0  ;;  %vm203_vm15 = vcmp.lt.s32.totalorder %v4474_v59, 41  ;;  %vm4051_vm8 = vcmp.lt.s32.totalorder %v155_v57, 0  ;;  %v8382_v2 = vmov 0  ;;  %p4232_p13 = pneg %p4231_p12 }
  0x2d   : > { %8378 = vst [vmem:[#allocation16_spill] sm:$0xff] %v4474_v59  ;;  %248 = vperm.xlu0 %4139, %v4472_v58   ;;  %v4494_v0 = vsel %vm4484_vm6, %v4465_v53, 4294967295  ;;  %vm8130_vm1 = vcmp.ge.s32.totalorder %v4476_v60, 0  ;;  %vm202_vm10 = vcmp.lt.s32.totalorder %v4476_v60, 41  ;;  %v4059_v1 = vsel %vm4056_vm4, %v4057_v56, %v4058_v61  ;;  %vm4501_vm0 = vmand %vm8128_vm9, %vm203_vm15 }
  0x2e   : > { %8379 = vst [vmem:[#allocation17_spill] sm:$0xff] %v4476_v60  ;;  %v8383_v2 = vsel %vm4501_vm0, 4294967295, %v8382_v2  ;;  %v4505_v3 = vcvt.f32.s32 %v4059_v1  ;;  %v4052_v4 = vceil.f32 %v155_v57  ;;  %v4053_v5 = vfloor.f32 %v155_v57  ;;  %vm4515_vm4 = vmand %vm8130_vm1, %vm202_vm10  ;;  %p4237_p3 = pnand %p4236_p2, %p4232_p13 }
  0x2f   : > { %8384 = vst [vmem:[#allocation18_spill] sm:$0xff] %v8383_v2  ;;  %vm4046_vm3 = vcmp.lt.s32.totalorder %v154_v62, 0  ;;  %v4047_v7 = vceil.f32 %v154_v62  ;;  %v4048_v8 = vfloor.f32 %v154_v62  ;;  %v4511_v9 = vsel %vm4501_vm0, %v4474_v59, 4294967295 }
  0x30   : > { %8385 = vst [vmem:[#allocation19_spill] sm:$0xff] %v4505_v3  ;;  %v8386_v10 = vmov 0  ;;  %vm8133_vm15 = vcmp.ge.s32.totalorder %v4505_v3, 0  ;;  %vm207_vm9 = vcmp.lt.s32.totalorder %v4505_v3, 41  ;;  %v4054_v11 = vsel %vm4051_vm8, %v4052_v4, %v4053_v5 }
  0x31   : > { %v8387_v10 = vsel %vm4515_vm4, 4294967295, %v8386_v10  ;;  %v4523_v12 = vcvt.f32.s32 %v4054_v11  ;;  %v4049_v13 = vsel %vm4046_vm3, %v4047_v7, %v4048_v8  ;;  %vm4071_vm13 = vcmp.lt.s32.totalorder %v159_v6, 0  ;;  %vm4537_vm8 = vmand %vm8133_vm15, %vm207_vm9 }
  0x32   : > { %8388 = vst [vmem:[#allocation20_spill] sm:$0xff] %v8387_v10  ;;  %269 = vperm.xlu2 %4141, %v4494_v0   ;;  %v4072_v15 = vceil.f32 %v159_v6  ;;  %v4529_v18 = vsel %vm4515_vm4, %v4476_v60, 4294967295  ;;  %v4531_v19 = vcvt.f32.s32 %v4049_v13  ;;  %v4073_v20 = vfloor.f32 %v159_v6 }
  0x33   : > { %8389 = vst [vmem:[#allocation21_spill] sm:$0xff] %v4523_v12  ;;  %266 = vperm.xlu1 %4140, %v4511_v9   ;;  %v8391_v24 = vmov 0  ;;  %vm8134_vm10 = vcmp.ge.s32.totalorder %v4523_v12, 0  ;;  %vm206_vm3 = vcmp.lt.s32.totalorder %v4523_v12, 41  ;;  %v8394_v26 = vmov 0 }
  0x34   : > { %8390 = vst [vmem:[#allocation22_spill] sm:$0xff] %v4531_v19  ;;  %v8392_v24 = vsel %vm4537_vm8, 4294967295, %v8391_v24  ;;  %vm4545_vm1 = vmand %vm8134_vm10, %vm206_vm3  ;;  %vm8135_vm0 = vcmp.ge.s32.totalorder %v4531_v19, 0  ;;  %vm205_vm11 = vcmp.lt.s32.totalorder %v4531_v19, 41  ;;  %v4074_v29 = vsel %vm4071_vm13, %v4072_v15, %v4073_v20 }
  0x35   : > { %8393 = vst [vmem:[#allocation23_spill] sm:$0xff] %v8392_v24  ;;  %v8395_v26 = vsel %vm4545_vm1, 4294967295, %v8394_v26  ;;  %v4067_v30 = vceil.f32 %v158_v16  ;;  %263 = vperm.xlu0 %4139, %v4529_v18   ;;  %v4552_v33 = vcvt.f32.s32 %v4074_v29  ;;  %vm4066_vm9 = vcmp.lt.s32.totalorder %v158_v16, 0  ;;  %vm4567_vm13 = vmand %vm8135_vm0, %vm205_vm11 }
  0x36   : > { %8396 = vst [vmem:[#allocation24_spill] sm:$0xff] %v8395_v26  ;;  %v4068_v34 = vfloor.f32 %v158_v16  ;;  %vm4061_vm15 = vcmp.lt.s32.totalorder %v157_v22, 0  ;;  %v4557_v36 = vsel %vm4537_vm8, %v4505_v3, 4294967295  ;;  %v4062_v37 = vceil.f32 %v157_v22 }
  0x37   : > { %8397 = vst [vmem:[#allocation25_spill] sm:$0xff] %v4552_v33  ;;  %v4063_v40 = vfloor.f32 %v157_v22  ;;  %v4563_v42 = vsel %vm4545_vm1, %v4523_v12, 4294967295  ;;  %v8398_v43 = vmov 0  ;;  %vm8140_vm3 = vcmp.ge.s32.totalorder %v4552_v33, 0 }
  0x38   : > { %v8399_v43 = vsel %vm4567_vm13, 4294967295, %v8398_v43  ;;  %vm210_vm10 = vcmp.lt.s32.totalorder %v4552_v33, 41  ;;  %v4069_v46 = vsel %vm4066_vm9, %v4067_v30, %v4068_v34  ;;  %v4077_v54 = vceil.f32 %v160_v41 }
  0x39   : > { %8400 = vst [vmem:[#allocation26_spill] sm:$0xff] %v8399_v43  ;;  %v4064_v48 = vsel %vm4061_vm15, %v4062_v37, %v4063_v40  ;;  %v4574_v49 = vcvt.f32.s32 %v4069_v46  ;;  %v4078_v55 = vfloor.f32 %v160_v41  ;;  %v4581_v56 = vsel %vm4567_vm13, %v4531_v19, 4294967295  ;;  %vm4586_vm9 = vmand %vm8140_vm3, %vm210_vm10 }
  0x3a   : > { %278 = vperm.xlu2 %4141, %v4557_v36   ;;  %v4576_v50 = vcvt.f32.s32 %v4064_v48  ;;  %vm4076_vm11 = vcmp.lt.s32.totalorder %v160_v41, 0  ;;  %v8403_v57 = vmov 0  ;;  %v8406_v61 = vmov 0 }
  0x3b   : > { %8401 = vst [vmem:[#allocation27_spill] sm:$0xff] %v4574_v49  ;;  %275 = vperm.xlu1 %4140, %v4563_v42   ;;  %v8404_v57 = vsel %vm4586_vm9, 4294967295, %v8403_v57  ;;  %vm8139_vm15 = vcmp.ge.s32.totalorder %v4574_v49, 0  ;;  %vm209_vm0 = vcmp.lt.s32.totalorder %v4574_v49, 41  ;;  %v4079_v62 = vsel %vm4076_vm11, %v4077_v54, %v4078_v55 }
  0x3c   : > { %8402 = vst [vmem:[#allocation28_spill] sm:$0xff] %v4576_v50  ;;  %vm8142_vm1 = vcmp.ge.s32.totalorder %v4576_v50, 0  ;;  %vm208_vm7 = vcmp.lt.s32.totalorder %v4576_v50, 41  ;;  %vm4597_vm13 = vmand %vm8139_vm15, %vm209_vm0  ;;  %v242_v1 = vsel %vm4586_vm9, %v4552_v33, 4294967295  ;;  %v8409_v4 = vmov 0 }
  0x3d   : > { %8405 = vst [vmem:[#allocation29_spill] sm:$0xff] %v8404_v57  ;;  %272 = vperm.xlu0 %4139, %v4581_v56   ;;  %v8407_v61 = vsel %vm4597_vm13, 4294967295, %v8406_v61  ;;  %vm4606_vm10 = vmand %vm8142_vm1, %vm208_vm7  ;;  %v241_v5 = vsel %vm4597_vm13, %v4574_v49, 4294967295  ;;  %v4613_v6 = vcvt.f32.s32 %v4079_v62  ;;  %v8413_v8 = vmov 0 }
  0x3e   : > { %8408 = vst [vmem:[#allocation30_spill] sm:$0xff] %v8407_v61  ;;  %v8410_v4 = vsel %vm4606_vm10, 4294967295, %v8409_v4  ;;  %v240_v7 = vsel %vm4606_vm10, %v4576_v50, 4294967295  ;;  %v4278_v11 = vmov 1   ;;  %v4279_v15 = vmov 2  }
  0x3f   : > { %8411 = vst [vmem:[#allocation31_spill] sm:$0xff] %v8410_v4  ;;  %vm8141_vm0 = vcmp.ge.s32.totalorder %v4613_v6, 0  ;;  %vm211_vm11 = vcmp.lt.s32.totalorder %v4613_v6, 41  ;;  %vm8416_vm15 = vcmp.ge.s32.totalorder %v4443_v45, 0  ;;  %vm8420_vm1 = vcmp.ge.s32.totalorder %v4376_v21, 0 }
  0x40   : > { %8412 = vst [vmem:[#allocation32_spill] sm:$0xff] %v4613_v6  ;;  %vm4622_vm7 = vmand %vm8141_vm0, %vm211_vm11  ;;  %vm773_vm11 = vcmp.lt.s32.totalorder %v4443_v45, 61  ;;  %vm772_vm0 = vcmp.lt.s32.totalorder %v4376_v21, 61  ;;  %v8421_v29 = vmov 0  ;;  %v4280_v30 = vmov 3  }
  0x41   : > { %v8414_v8 = vsel %vm4622_vm7, 4294967295, %v8413_v8  ;;  %v4629_v13 = vsel %vm4622_vm7, %v4613_v6, 4294967295  ;;  %vm4673_vm3 = vmand %vm8416_vm15, %vm773_vm11  ;;  %vm778_vm11 = vcmp.lt.s32.totalorder %v4476_v60, 61  ;;  %v810_v37 = vadd.s32 41, %v4476_v60 }
  0x42   : > { %287 = vperm.xlu2 %4141, %v242_v1   ;;  %8415 = vst [vmem:[#allocation33_spill] sm:$0xff] %v8414_v8  ;;  %vm4689_vm15 = vmand %vm8420_vm1, %vm772_vm0  ;;  %v8425_v40 = vmov 0  ;;  %vm775_vm0 = vcmp.lt.s32.totalorder %v4409_v32, 61  ;;  %vm774_vm13 = vcmp.lt.s32.totalorder %v4372_v17, 61  ;;  %v807_v48 = vadd.s32 41, %v4409_v32 }
  0x43   : > { %284 = vperm.xlu1 %4140, %v241_v5   ;;  %v8422_v29 = vsel %vm4689_vm15, 4294967295, %v8421_v29  ;;  %v8429_v54 = vmov 0  ;;  %vm8432_vm7 = vcmp.ge.s32.totalorder %v4372_v17, 0  ;;  %v8433_v62 = vmov 0 }
  0x44   : > { %8423 = vst [vmem:[#allocation35_spill] sm:$0xff] %v8422_v29  ;;  %vm4733_vm10 = vmand %vm8432_vm7, %vm774_vm13  ;;  %vm776_vm13 = vcmp.lt.s32.totalorder %v4370_v14, 61  ;;  %vm8442_vm7 = vcmp.ge.s32.totalorder %v4402_v28, 0  ;;  %v811_v29 = vadd.s32 41, %v4474_v59  ;;  %v819_v61 = vadd.s32 41, %v4613_v6 }
  0x45   : > { %281 = vperm.xlu0 %4139, %v240_v7   ;;  %v8434_v62 = vsel %vm4733_vm10, 4294967295, %v8433_v62  ;;  %v8465_v26 = vmov 0  ;;  %v814_v4 = vadd.s32 41, %v4523_v12 }
  0x46   : > { %8435 = vst [vmem:[#allocation38_spill] sm:$0xff] %v8434_v62  ;;  %v8451_v62 = vmov 0 }
  0x4a   : > { %4143 = vset.pattern.permute.xlu2 %v4278_v11 }
  0x4b   : > { %424 = vperm.xlu2 %4143, %v4472_v58   ;;  %4142 = vset.pattern.permute.xlu1 %v4278_v11 }
  0x4c   : > { %421 = vperm.xlu1 %4142, %v4425_v38  }
  0x4d   : > { %290 = vperm.xlu0 %4139, %v4629_v13  }
  0x53   : > { %433 = vperm.xlu2 %4143, %v4390_v25  }
  0x54   : > { %430 = vperm.xlu1 %4142, %v4454_v51  }
  0x55   : > { %4144 = vset.pattern.permute.xlu0 %v4278_v11 }
  0x56   : > { %427 = vperm.xlu0 %4144, %v4407_v31  }
  0x5b   : > { %439 = vperm.xlu2 %4143, %v4529_v18  }
  0x5c   : > { %436 = vperm.xlu1 %4142, %v4441_v44  }
  0x5e   : > { %442 = vperm.xlu0 %4144, %v4511_v9  }
  0x63   : > { %448 = vperm.xlu2 %4143, %v4581_v56  }
  0x64   : > { %445 = vperm.xlu1 %4142, %v4494_v0  }
  0x66   : > { %451 = vperm.xlu0 %4144, %v4563_v42  }
  0x6b   : > { %457 = vperm.xlu2 %4143, %v240_v7  }
  0x6c   : > { %454 = vperm.xlu1 %4142, %v4557_v36  }
  0x6e   : > { %460 = vperm.xlu0 %4144, %v241_v5  }
  0x73   : > { %466 = vperm.xlu2 %4143, %v4629_v13  }
  0x74   : > { %463 = vperm.xlu1 %4142, %v242_v1  }
  0x76   : > { %4145 = vset.pattern.permute.xlu0 %v4279_v15 }
  0x77   : > { %597 = vperm.xlu0 %4145, %v4425_v38  }
  0x7b   : > { %4147 = vset.pattern.permute.xlu2 %v4279_v15 }
  0x7c   : > { %v4646_v16 = vpop.permute.xlu2 %257  ;;  %603 = vperm.xlu2 %4147, %v4407_v31   ;;  %4146 = vset.pattern.permute.xlu1 %v4279_v15 }
  0x7d   : > { %600 = vperm.xlu1 %4146, %v4472_v58  }
  0x7f   : > { %612 = vperm.xlu0 %4145, %v4441_v44   ;;  %v805_v44 = vadd.s32 41, %v4443_v45 }
  0x84   : > { %v4651_v20 = vpop.permute.xlu2 %260  ;;  %609 = vperm.xlu2 %4147, %v4390_v25  }
  0x85   : > { %606 = vperm.xlu1 %4146, %v4454_v51   ;;  %v8417_v51 = vmov 0 }
  0x86   : > { %v8418_v51 = vsel %vm4673_vm3, 4294967295, %v8417_v51 }
  0x87   : > { %621 = vperm.xlu0 %4145, %v4494_v0   ;;  %8419 = vst [vmem:[#allocation34_spill] sm:$0xff] %v8418_v51 }
  0x8c   : > { %v4656_v22 = vpop.permute.xlu2 %269  ;;  %618 = vperm.xlu2 %4147, %v4511_v9   ;;  %v4684_v9 = vsel %vm4673_vm3, %v805_v44, 4294967295  ;;  %vm8424_vm3 = vcmp.ge.s32.totalorder %v4476_v60, 0  ;;  %v4282_v60 = vmov 5  }
  0x8d   : > { %615 = vperm.xlu1 %4146, %v4529_v18   ;;  %v804_v18 = vadd.s32 41, %v4376_v21  ;;  %vm4704_vm1 = vmand %vm8424_vm3, %vm778_vm11  ;;  %vm8428_vm3 = vcmp.ge.s32.totalorder %v4409_v32, 0 }
  0x8e   : > { %v8426_v40 = vsel %vm4704_vm1, 4294967295, %v8425_v40  ;;  %v4718_v46 = vsel %vm4704_vm1, %v810_v37, 4294967295  ;;  %vm4723_vm11 = vmand %vm8428_vm3, %vm775_vm0  ;;  %vm8436_vm0 = vcmp.ge.s32.totalorder %v4531_v19, 0  ;;  %vm777_vm1 = vcmp.lt.s32.totalorder %v4402_v28, 61 }
  0x8f   : > { %630 = vperm.xlu0 %4145, %v4557_v36   ;;  %v4699_v36 = vsel %vm4689_vm15, %v804_v18, 4294967295  ;;  %8427 = vst [vmem:[#allocation36_spill] sm:$0xff] %v8426_v40  ;;  %v8430_v54 = vsel %vm4723_vm11, 4294967295, %v8429_v54  ;;  %vm781_vm15 = vcmp.lt.s32.totalorder %v4531_v19, 61  ;;  %v809_v18 = vadd.s32 41, %v4402_v28 }
  0x90   : > { %8431 = vst [vmem:[#allocation37_spill] sm:$0xff] %v8430_v54  ;;  %vm4745_vm3 = vmand %vm8436_vm0, %vm781_vm15  ;;  %v8443_v37 = vmov 0  ;;  %vm784_vm0 = vcmp.lt.s32.totalorder %v4576_v50, 61  ;;  %v816_v54 = vadd.s32 41, %v4576_v50 }
  0x91   : > { %vm4767_vm15 = vmand %vm8442_vm7, %vm777_vm1  ;;  %vm8450_vm1 = vcmp.ge.s32.totalorder %v4576_v50, 0  ;;  %v4281_v50 = vmov 4  }
  0x92   : > { %v8444_v37 = vsel %vm4767_vm15, 4294967295, %v8443_v37  ;;  %vm4790_vm7 = vmand %vm8450_vm1, %vm784_vm0  ;;  %vm787_vm1 = vcmp.lt.s32.totalorder %v4613_v6, 61 }
  0x93   : > { %8445 = vst [vmem:[#allocation42_spill] sm:$0xff] %v8444_v37  ;;  %v8452_v62 = vsel %vm4790_vm7, 4294967295, %v8451_v62  ;;  %v4807_v51 = vsel %vm4790_vm7, %v816_v54, 4294967295  ;;  %v812_v37 = vadd.s32 41, %v4465_v53  ;;  %v8460_v54 = vmov 0 }
  0x94   : > { %v4661_v31 = vpop.permute.xlu2 %278  ;;  %627 = vperm.xlu2 %4147, %v4563_v42   ;;  %8453 = vst [vmem:[#allocation44_spill] sm:$0xff] %v8452_v62 }
  0x95   : > { %v4664_v38 = vpop.permute.xlu1 %251  ;;  %624 = vperm.xlu1 %4146, %v4581_v56   ;;  %v806_v56 = vadd.s32 41, %v4372_v17  ;;  %8454 = vst [vmem:[#allocation45_spill] sm:$0xff] %v4807_v51 }
  0x97   : > { %639 = vperm.xlu0 %4145, %v242_v1   ;;  %v4668_v25 = vpop.permute.xlu0 %245  ;;  %v4740_v1 = vsel %vm4723_vm11, %v807_v48, 4294967295  ;;  %v4752_v11 = vsel %vm4733_vm10, %v806_v56, 4294967295  ;;  %vm8446_vm11 = vcmp.ge.s32.totalorder %v4370_v14, 0  ;;  %v8447_v56 = vmov 0 }
  0x98   : > { %vm4778_vm10 = vmand %vm8446_vm11, %vm776_vm13  ;;  %vm779_vm11 = vcmp.lt.s32.totalorder %v4474_v59, 61  ;;  %vm8455_vm13 = vcmp.ge.s32.totalorder %v4465_v53, 0 }
  0x99   : > { %v8448_v56 = vsel %vm4778_vm10, 4294967295, %v8447_v56 }
  0x9a   : > { %8449 = vst [vmem:[#allocation43_spill] sm:$0xff] %v8448_v56  ;;  %v8456_v56 = vmov 0 }
  0x9c   : > { %v4678_v58 = vpop.permute.xlu2 %287  ;;  %636 = vperm.xlu2 %4147, %v241_v5   ;;  %v813_v5 = vadd.s32 41, %v4531_v19 }
  0x9d   : > { %v4680_v0 = vpop.permute.xlu1 %254  ;;  %633 = vperm.xlu1 %4146, %v240_v7   ;;  %v8437_v7 = vmov 0 }
  0x9e   : > { %v8438_v7 = vsel %vm4745_vm3, 4294967295, %v8437_v7  ;;  %v4762_v44 = vsel %vm4745_vm3, %v813_v5, 4294967295  ;;  %v4785_v5 = vsel %vm4767_vm15, %v809_v18, 4294967295  ;;  %vm780_vm3 = vcmp.lt.s32.totalorder %v4465_v53, 61 }
  0x9f   : > { %4149 = vset.pattern.permute.xlu0 %v4280_v30  ;;  %v4694_v34 = vpop.permute.xlu0 %248  ;;  %8439 = vst [vmem:[#allocation39_spill] sm:$0xff] %v8438_v7  ;;  %vm4812_vm0 = vmand %vm8455_vm13, %vm780_vm3  ;;  %vm8464_vm3 = vcmp.ge.s32.totalorder %v4613_v6, 0  ;;  %vm783_vm15 = vcmp.lt.s32.totalorder %v4505_v3, 61  ;;  %v8470_v6 = vmov 0 }
  0xa0   : > { %840 = vperm.xlu0 %4149, %v4684_v9   ;;  %8441 = vst [vmem:[#allocation41_spill] sm:$0xff] %v4762_v44  ;;  %v8457_v56 = vsel %vm4812_vm0, 4294967295, %v8456_v56  ;;  %v4830_v62 = vsel %vm4812_vm0, %v812_v37, 4294967295  ;;  %vm4835_vm13 = vmand %vm8464_vm3, %vm787_vm1  ;;  %vm8473_vm3 = vcmp.ge.s32.totalorder %v4523_v12, 0 }
  0xa1   : > { %8458 = vst [vmem:[#allocation46_spill] sm:$0xff] %v8457_v56  ;;  %v8466_v26 = vsel %vm4835_vm13, 4294967295, %v8465_v26  ;;  %v4850_v37 = vsel %vm4835_vm13, %v819_v61, 4294967295  ;;  %v815_v56 = vadd.s32 41, %v4505_v3  ;;  %v8474_v61 = vmov 0 }
  0xa2   : > { %8463 = vst [vmem:[#allocation48_spill] sm:$0xff] %v4830_v62 }
  0xa3   : > { %8467 = vst [vmem:[#allocation49_spill] sm:$0xff] %v8466_v26 }
  0xa4   : > { %4148 = vset.pattern.permute.xlu2 %v4280_v30  ;;  %8468 = vst [vmem:[#allocation50_spill] sm:$0xff] %v4850_v37 }
  0xa5   : > { %v4709_v41 = vpop.permute.xlu2 %424  ;;  %837 = vperm.xlu2 %4148, %v4699_v36   ;;  %v4713_v42 = vpop.permute.xlu1 %266  ;;  %642 = vperm.xlu1 %4146, %v4629_v13  }
  0xa7   : > { %v4728_v55 = vpop.permute.xlu0 %263 }
  0xa8   : > { %855 = vperm.xlu0 %4149, %v4718_v46  }
  0xad   : > { %v4754_v13 = vpop.permute.xlu2 %433  ;;  %846 = vperm.xlu2 %4148, %v4740_v1   ;;  %v4758_v15 = vpop.permute.xlu1 %275  ;;  %4150 = vset.pattern.permute.xlu1 %v4280_v30  ;;  %v808_v30 = vadd.s32 41, %v4370_v14 }
  0xae   : > { %8440 = vst [vmem:[#allocation40_spill] sm:$0xff] %v4754_v13  ;;  %843 = vperm.xlu1 %4150, %v4752_v11  }
  0xaf   : > { %v4773_v48 = vpop.permute.xlu0 %272  ;;  %v4797_v7 = vsel %vm4778_vm10, %v808_v30, 4294967295  ;;  %vm8459_vm10 = vcmp.ge.s32.totalorder %v4474_v59, 0 }
  0xb0   : > { %864 = vperm.xlu0 %4149, %v4762_v44   ;;  %vm4823_vm7 = vmand %vm8459_vm10, %vm779_vm11  ;;  %vm782_vm10 = vcmp.lt.s32.totalorder %v4523_v12, 61  ;;  %vm8469_vm11 = vcmp.ge.s32.totalorder %v4505_v3, 0  ;;  %v818_v12 = vadd.s32 41, %v4552_v33 }
  0xb1   : > { %v8461_v54 = vsel %vm4823_vm7, 4294967295, %v8460_v54  ;;  %v4842_v8 = vsel %vm4823_vm7, %v811_v29, 4294967295  ;;  %vm4855_vm1 = vmand %vm8469_vm11, %vm783_vm15  ;;  %vm786_vm15 = vcmp.lt.s32.totalorder %v4552_v33, 61  ;;  %vm8478_vm11 = vcmp.ge.s32.totalorder %v4552_v33, 0 }
  0xb2   : > { %8462 = vst [vmem:[#allocation47_spill] sm:$0xff] %v8461_v54  ;;  %v8471_v6 = vsel %vm4855_vm1, 4294967295, %v8470_v6  ;;  %vm4867_vm7 = vmand %vm8473_vm3, %vm782_vm10  ;;  %v4874_v26 = vsel %vm4855_vm1, %v815_v56, 4294967295  ;;  %vm785_vm10 = vcmp.lt.s32.totalorder %v4574_v49, 61 }
  0xb3   : > { %8472 = vst [vmem:[#allocation51_spill] sm:$0xff] %v8471_v6  ;;  %v8475_v61 = vsel %vm4867_vm7, 4294967295, %v8474_v61  ;;  %v4879_v59 = vsel %vm4867_vm7, %v814_v4, 4294967295  ;;  %vm4888_vm3 = vmand %vm8478_vm11, %vm786_vm15  ;;  %v8479_v6 = vmov 0  ;;  %v817_v4 = vadd.s32 41, %v4574_v49 }
  0xb4   : > { %8476 = vst [vmem:[#allocation52_spill] sm:$0xff] %v8475_v61  ;;  %v8480_v6 = vsel %vm4888_vm3, 4294967295, %v8479_v6  ;;  %vm8482_vm7 = vcmp.ge.s32.totalorder %v4574_v49, 0  ;;  %v8483_v61 = vmov 0  ;;  %v4907_v32 = vsel %vm4888_vm3, %v818_v12, 4294967295 }
  0xb5   : > { %v4799_v40 = vpop.permute.xlu2 %439  ;;  %852 = vperm.xlu2 %4148, %v4785_v5   ;;  %v4803_v18 = vpop.permute.xlu1 %284  ;;  %8477 = vst [vmem:[#allocation53_spill] sm:$0xff] %v4874_v26  ;;  %vm4898_vm13 = vmand %vm8482_vm7, %vm785_vm10 }
  0xb6   : > { %849 = vperm.xlu1 %4150, %v4797_v7   ;;  %8481 = vst [vmem:[#allocation54_spill] sm:$0xff] %v8480_v6  ;;  %v8484_v61 = vsel %vm4898_vm13, 4294967295, %v8483_v61  ;;  %v4911_v43 = vsel %vm4898_vm13, %v817_v4, 4294967295 }
  0xb7   : > { %v4818_v30 = vpop.permute.xlu0 %281  ;;  %8485 = vst [vmem:[#allocation55_spill] sm:$0xff] %v8484_v61 }
  0xb8   : > { %873 = vperm.xlu0 %4149, %v4807_v51   ;;  %8486 = vst [vmem:[#allocation56_spill] sm:$0xff] %v4907_v32 }
  0xbd   : > { %v4844_v2 = vpop.permute.xlu2 %448  ;;  %861 = vperm.xlu2 %4148, %v4830_v62  }
  0xbe   : > { %858 = vperm.xlu1 %4150, %v4842_v8   ;;  %v4860_v29 = vpop.permute.xlu1 %421 }
  0xbf   : > { %v4862_v54 = vpop.permute.xlu0 %290 }
  0xc0   : > { %882 = vperm.xlu0 %4149, %v4850_v37  }
  0xc5   : > { %v4881_v47 = vpop.permute.xlu2 %457  ;;  %870 = vperm.xlu2 %4148, %v4874_v26  }
  0xc6   : > { %867 = vperm.xlu1 %4150, %v4879_v59   ;;  %v4893_v56 = vpop.permute.xlu1 %430 }
  0xc8   : > { %4153 = vset.pattern.permute.xlu0 %v4281_v50  ;;  %v4902_v23 = vpop.permute.xlu0 %427 }
  0xc9   : > { %1019 = vperm.xlu0 %4153, %v4752_v11  }
  0xcd   : > { %v4913_v14 = vpop.permute.xlu2 %466  ;;  %879 = vperm.xlu2 %4148, %v4907_v32  }
  0xce   : > { %876 = vperm.xlu1 %4150, %v4911_v43   ;;  %v4917_v49 = vpop.permute.xlu1 %436 }
  0xd0   : > { %v4919_v19 = vpop.permute.xlu0 %442 }
  0xd1   : > { %1034 = vperm.xlu0 %4153, %v4842_v8  }
  0xd5   : > { %4152 = vset.pattern.permute.xlu2 %v4281_v50 }
  0xd6   : > { %v4922_v6 = vpop.permute.xlu2 %603  ;;  %1016 = vperm.xlu2 %4152, %v4684_v9   ;;  %4151 = vset.pattern.permute.xlu1 %v4281_v50  ;;  %v4925_v12 = vpop.permute.xlu1 %445 }
  0xd7   : > { %1013 = vperm.xlu1 %4151, %v4699_v36  }
  0xd8   : > { %v4928_v4 = vpop.permute.xlu0 %451 }
  0xd9   : > { %1043 = vperm.xlu0 %4153, %v4879_v59  }
  0xde   : > { %v4931_v61 = vpop.permute.xlu2 %609  ;;  %1025 = vperm.xlu2 %4152, %v4797_v7   ;;  %v4934_v27 = vpop.permute.xlu1 %454 }
  0xdf   : > { %8487 = vst [vmem:[#allocation57_spill] sm:$0xff] %v4931_v61  ;;  %1022 = vperm.xlu1 %4151, %v4740_v1  }
  0xe0   : > { %v4937_v10 = vpop.permute.xlu0 %460 }
  0xe1   : > { %1052 = vperm.xlu0 %4153, %v4911_v43  }
  0xe6   : > { %v4940_v50 = vpop.permute.xlu2 %618  ;;  %1031 = vperm.xlu2 %4152, %v4718_v46   ;;  %v4943_v17 = vpop.permute.xlu1 %463 }
  0xe7   : > { %1028 = vperm.xlu1 %4151, %v4785_v5  }
  0xe9   : > { %4154 = vset.pattern.permute.xlu0 %v4282_v60  ;;  %v4946_v61 = vpop.permute.xlu0 %597 }
  0xea   : > { %8488 = vst [vmem:[#allocation58_spill] sm:$0xff] %v4946_v61  ;;  %1189 = vperm.xlu0 %4154, %v4699_v36  }
  0xee   : > { %v4949_v52 = vpop.permute.xlu2 %627  ;;  %1040 = vperm.xlu2 %4152, %v4762_v44  }
  0xef   : > { %8489 = vst [vmem:[#allocation59_spill] sm:$0xff] %v4949_v52  ;;  %1037 = vperm.xlu1 %4151, %v4830_v62   ;;  %v4953_v45 = vpop.permute.xlu1 %600 }
  0xf0   : > { %8490 = vst [vmem:[#allocation60_spill] sm:$0xff] %v4953_v45 }
  0xf1   : > { %v4955_v57 = vpop.permute.xlu0 %612 }
  0xf2   : > { %8491 = vst [vmem:[#allocation61_spill] sm:$0xff] %v4955_v57  ;;  %1204 = vperm.xlu0 %4154, %v4785_v5  }
  0xf6   : > { %v4958_v33 = vpop.permute.xlu2 %636  ;;  %1049 = vperm.xlu2 %4152, %v4807_v51  }
  0xf7   : > { %8492 = vst [vmem:[#allocation62_spill] sm:$0xff] %v4958_v33  ;;  %1046 = vperm.xlu1 %4151, %v4874_v26   ;;  %v4962_v24 = vpop.permute.xlu1 %606 }
  0xf8   : > { %8493 = vst [vmem:[#allocation63_spill] sm:$0xff] %v4962_v24 }
  0xf9   : > { %v4964_v61 = vpop.permute.xlu0 %621 }
  0xfa   : > { %8494 = vst [vmem:[#allocation64_spill] sm:$0xff] %v4964_v61  ;;  %1213 = vperm.xlu0 %4154, %v4830_v62  }
  0xfe   : > { %1058 = vperm.xlu2 %4152, %v4850_v37  }
  0xff   : > { %v4968_v52 = vpop.permute.xlu2 %837  ;;  %1055 = vperm.xlu1 %4151, %v4907_v32   ;;  %v4971_v57 = vpop.permute.xlu1 %615 }
 0x100   : > { %8495 = vst [vmem:[#allocation65_spill] sm:$0xff] %v4968_v52  ;;  %v4283_v52 = vmov 6  }
 0x101   : > { %8496 = vst [vmem:[#allocation66_spill] sm:$0xff] %v4971_v57  ;;  %v4973_v45 = vpop.permute.xlu0 %630 }
 0x102   : > { %8497 = vst [vmem:[#allocation67_spill] sm:$0xff] %v4973_v45  ;;  %1222 = vperm.xlu0 %4154, %v4874_v26  }
 0x106   : > { %4156 = vset.pattern.permute.xlu2 %v4282_v60 }
 0x107   : > { %1195 = vperm.xlu2 %4156, %v4752_v11   ;;  %v4977_v24 = vpop.permute.xlu2 %846  ;;  %4155 = vset.pattern.permute.xlu1 %v4282_v60  ;;  %v4979_v61 = vpop.permute.xlu1 %624 }
 0x108   : > { %8498 = vst [vmem:[#allocation68_spill] sm:$0xff] %v4977_v24  ;;  %1192 = vperm.xlu1 %4155, %v4684_v9  }
 0x109   : > { %8499 = vst [vmem:[#allocation69_spill] sm:$0xff] %v4979_v61  ;;  %v4982_v33 = vpop.permute.xlu0 %639 }
 0x10a   : > { %8500 = vst [vmem:[#allocation70_spill] sm:$0xff] %v4982_v33  ;;  %1231 = vperm.xlu0 %4154, %v4907_v32  }
 0x10f   : > { %1201 = vperm.xlu2 %4156, %v4797_v7   ;;  %v4986_v57 = vpop.permute.xlu2 %852  ;;  %v4988_v45 = vpop.permute.xlu1 %633 }
 0x110   : > { %8501 = vst [vmem:[#allocation71_spill] sm:$0xff] %v4986_v57  ;;  %1198 = vperm.xlu1 %4155, %v4740_v1  }
 0x111   : > { %8502 = vst [vmem:[#allocation72_spill] sm:$0xff] %v4988_v45 }
 0x112   : > { %4158 = vset.pattern.permute.xlu0 %v4283_v52  ;;  %v4991_v24 = vpop.permute.xlu0 %840 }
 0x113   : > { %8503 = vst [vmem:[#allocation73_spill] sm:$0xff] %v4991_v24  ;;  %1368 = vperm.xlu0 %4158, %v4684_v9  }
 0x117   : > { %1210 = vperm.xlu2 %4156, %v4842_v8   ;;  %v4995_v60 = vpop.permute.xlu2 %861  ;;  %v4997_v33 = vpop.permute.xlu1 %642 }
 0x118   : > { %8504 = vst [vmem:[#allocation74_spill] sm:$0xff] %v4995_v60  ;;  %1207 = vperm.xlu1 %4155, %v4718_v46  }
 0x119   : > { %8505 = vst [vmem:[#allocation75_spill] sm:$0xff] %v4997_v33 }
 0x11a   : > { %v5000_v61 = vpop.permute.xlu0 %855 }
 0x11b   : > { %8506 = vst [vmem:[#allocation76_spill] sm:$0xff] %v5000_v61  ;;  %1383 = vperm.xlu0 %4158, %v4718_v46  }
 0x11f   : > { %1219 = vperm.xlu2 %4156, %v4879_v59   ;;  %v5004_v45 = vpop.permute.xlu2 %870 }
 0x120   : > { %8507 = vst [vmem:[#allocation77_spill] sm:$0xff] %v5004_v45  ;;  %1216 = vperm.xlu1 %4155, %v4762_v44   ;;  %v5007_v24 = vpop.permute.xlu1 %843 }
 0x121   : > { %8508 = vst [vmem:[#allocation78_spill] sm:$0xff] %v5007_v24 }
 0x122   : > { %v5009_v57 = vpop.permute.xlu0 %864 }
 0x123   : > { %8509 = vst [vmem:[#allocation79_spill] sm:$0xff] %v5009_v57  ;;  %1392 = vperm.xlu0 %4158, %v4762_v44  }
 0x127   : > { %1228 = vperm.xlu2 %4156, %v4911_v43   ;;  %v5013_v33 = vpop.permute.xlu2 %879 }
 0x128   : > { %8510 = vst [vmem:[#allocation80_spill] sm:$0xff] %v5013_v33  ;;  %1225 = vperm.xlu1 %4155, %v4807_v51   ;;  %v5016_v61 = vpop.permute.xlu1 %849  ;;  %v8242_v33 = vmov 7  }
 0x129   : > { %8511 = vst [vmem:[#allocation81_spill] sm:$0xff] %v5016_v61 }
 0x12a   : > { %v5018_v60 = vpop.permute.xlu0 %873 }
 0x12b   : > { %8512 = vst [vmem:[#allocation82_spill] sm:$0xff] %v5018_v60  ;;  %1401 = vperm.xlu0 %4158, %v4807_v51  }
 0x12f   : > { %4157 = vset.pattern.permute.xlu2 %v4283_v52 }
 0x130   : > { %1365 = vperm.xlu2 %4157, %v4699_v36   ;;  %v5022_v24 = vpop.permute.xlu2 %1016  ;;  %1234 = vperm.xlu1 %4155, %v4850_v37   ;;  %v5025_v57 = vpop.permute.xlu1 %858 }
 0x131   : > { %8513 = vst [vmem:[#allocation83_spill] sm:$0xff] %v5022_v24 }
 0x132   : > { %8514 = vst [vmem:[#allocation84_spill] sm:$0xff] %v5025_v57  ;;  %v5027_v45 = vpop.permute.xlu0 %882  ;;  %v177_v57 = vlaneseq }
 0x133   : > { %8515 = vst [vmem:[#allocation85_spill] sm:$0xff] %v5027_v45  ;;  %1410 = vperm.xlu0 %4158, %v4850_v37  }
 0x138   : > { %1374 = vperm.xlu2 %4157, %v4740_v1   ;;  %v5031_v61 = vpop.permute.xlu2 %1025  ;;  %4159 = vset.pattern.permute.xlu1 %v4283_v52  ;;  %v5033_v60 = vpop.permute.xlu1 %867  ;;  %v5046_v52 = vand.u32 127, %v177_v57 }
 0x139   : > { %8516 = vst [vmem:[#allocation86_spill] sm:$0xff] %v5031_v61  ;;  %1371 = vperm.xlu1 %4159, %v4752_v11  }
 0x13a   : > { %8517 = vst [vmem:[#allocation87_spill] sm:$0xff] %v5033_v60  ;;  %vm300_vm7 = vcmp.eq.s32.totalorder %v5046_v52, %v4646_v16  ;;  %vm302_vm10 = vcmp.eq.s32.totalorder %v5046_v52, %v4651_v20  ;;  %vm308_vm13 = vcmp.eq.s32.totalorder %v5046_v52, %v4656_v22  ;;  %vm314_vm1 = vcmp.eq.s32.totalorder %v5046_v52, %v4661_v31 }
 0x13b   : > { %4162 = vset.pattern.permute.xlu0 %v8242_v33  ;;  %v5037_v24 = vpop.permute.xlu0 %1019  ;;  %v5052_v33 = vadd.s32 128, %v5046_v52  ;;  %vm296_vm12 = vcmp.eq.s32.totalorder %v5046_v52, %v4664_v38 }
 0x13c   : > { %8518 = vst [vmem:[#allocation88_spill] sm:$0xff] %v5037_v24  ;;  %1547 = vperm.xlu0 %4162, %v4752_v11  }
 0x13d   : > { %vm301_vm15 = vcmp.eq.s32.totalorder %v5052_v33, %v4646_v16  ;;  %vm303_vm11 = vcmp.eq.s32.totalorder %v5052_v33, %v4651_v20  ;;  %vm309_vm3 = vcmp.eq.s32.totalorder %v5052_v33, %v4656_v22  ;;  %v8289_v16 = vmov 0.0  }
 0x13e   : > { %vm315_vm0 = vcmp.eq.s32.totalorder %v5052_v33, %v4661_v31  ;;  %v5082_v20 = vsel %vm301_vm15, 1.0, %v8289_v16  ;;  %v5085_v22 = vsel %vm302_vm10, 1.0, %v8289_v16  ;;  %vm297_vm4 = vcmp.eq.s32.totalorder %v5052_v33, %v4664_v38 }
 0x13f   : > { %8525 = vst [vmem:[#allocation95_spill] sm:$0xff] %v5082_v20  ;;  %v5098_v31 = vsel %vm309_vm3, 1.0, %v8289_v16  ;;  %v5107_v20 = vsel %vm315_vm0, 1.0, %v8289_v16  ;;  %v5110_v38 = vsel %vm296_vm12, 1.0, %v8289_v16  ;;  %vm320_vm3 = vcmp.eq.s32.totalorder %v5046_v52, %v4678_v58 }
 0x140   : > { %1380 = vperm.xlu2 %4157, %v4785_v5   ;;  %v5041_v45 = vpop.permute.xlu2 %1031  ;;  %v5043_v37 = vpop.permute.xlu1 %876  ;;  %vm298_vm15 = vcmp.eq.s32.totalorder %v5046_v52, %v4680_v0  ;;  %vm294_vm0 = vcmp.eq.s32.totalorder %v5046_v52, %v4694_v34  ;;  %vm295_vm12 = vcmp.eq.s32.totalorder %v5052_v33, %v4694_v34  ;;  %vm470_vm10 = vcmp.eq.s32.totalorder %v5046_v52, %v4709_v41 }
 0x141   : > { %8519 = vst [vmem:[#allocation89_spill] sm:$0xff] %v5041_v45  ;;  %1377 = vperm.xlu1 %4159, %v4797_v7   ;;  %v5141_v45 = vsel %vm320_vm3, 1.0, %v8289_v16  ;;  %v3485_v60 = vsel %vm470_vm10, 1.0, %v8289_v16  ;;  %vm304_vm3 = vcmp.eq.s32.totalorder %v5046_v52, %v4728_v55  ;;  %vm310_vm10 = vcmp.eq.s32.totalorder %v5046_v52, %v4773_v48 }
 0x142   : > { %8520 = vst [vmem:[#allocation90_spill] sm:$0xff] %v5043_v37 }
 0x143   : > { %v5048_v61 = vpop.permute.xlu0 %1034 }
 0x144   : > { %8521 = vst [vmem:[#allocation91_spill] sm:$0xff] %v5048_v61  ;;  %1562 = vperm.xlu0 %4162, %v4842_v8   ;;  %v5101_v61 = vsel %vm314_vm1, 1.0, %v8289_v16  ;;  %vm321_vm1 = vcmp.eq.s32.totalorder %v5052_v33, %v4678_v58 }
 0x145   : > { %v5148_v34 = vsel %vm321_vm1, 1.0, %v8289_v16  ;;  %vm305_vm1 = vcmp.eq.s32.totalorder %v5052_v33, %v4728_v55 }
 0x146   : > { %8528 = vst [vmem:[#allocation98_spill] sm:$0xff] %v5148_v34 }
 0x148   : > { %1389 = vperm.xlu2 %4157, %v4830_v62   ;;  %v5057_v11 = vpop.permute.xlu2 %1040 }
 0x149   : > { %8522 = vst [vmem:[#allocation92_spill] sm:$0xff] %v5057_v11  ;;  %1386 = vperm.xlu1 %4159, %v4842_v8   ;;  %v5072_v57 = vpop.permute.xlu1 %1013  ;;  %v5075_v11 = vsel %vm300_vm7, 1.0, %v8289_v16  ;;  %v5088_v8 = vsel %vm303_vm11, 1.0, %v8289_v16  ;;  %vm292_vm7 = vcmp.eq.s32.totalorder %v5046_v52, %v4668_v25  ;;  %vm299_vm11 = vcmp.eq.s32.totalorder %v5052_v33, %v4680_v0 }
 0x14a   : > { %8523 = vst [vmem:[#allocation93_spill] sm:$0xff] %v5072_v57  ;;  %v5126_v37 = vsel %vm292_vm7, 1.0, %v8289_v16  ;;  %vm306_vm7 = vcmp.eq.s32.totalorder %v5046_v52, %v4713_v42  ;;  %v3454_v0 = vsel %vm295_vm12, 1.0, %v8289_v16  ;;  %v5165_v51 = vsel %vm299_vm11, 1.0, %v8289_v16 }
 0x14b   : > { %8524 = vst [vmem:[#allocation94_spill] sm:$0xff] %v5075_v11  ;;  %v5092_v57 = vpop.permute.xlu0 %1043  ;;  %v5095_v11 = vsel %vm308_vm13, 1.0, %v8289_v16  ;;  %vm293_vm13 = vcmp.eq.s32.totalorder %v5052_v33, %v4668_v25  ;;  %v5168_v62 = vsel %vm306_vm7, 1.0, %v8289_v16  ;;  %vm313_vm12 = vcmp.eq.s32.totalorder %v5052_v33, %v4758_v15 }
 0x14c   : > { %8526 = vst [vmem:[#allocation96_spill] sm:$0xff] %v5092_v57  ;;  %1571 = vperm.xlu0 %4162, %v4879_v59   ;;  %v5117_v57 = vsel %vm297_vm4, 1.0, %v8289_v16  ;;  %vm471_vm4 = vcmp.eq.s32.totalorder %v5052_v33, %v4709_v41  ;;  %v5138_v58 = vsel %vm293_vm13, 1.0, %v8289_v16  ;;  %v5151_v41 = vsel %vm298_vm15, 1.0, %v8289_v16 }
 0x14d   : > { %vm307_vm13 = vcmp.eq.s32.totalorder %v5052_v33, %v4713_v42  ;;  %vm476_vm15 = vcmp.eq.s32.totalorder %v5046_v52, %v4754_v13  ;;  %v3463_v13 = vsel %vm304_vm3, 1.0, %v8289_v16  ;;  %vm481_vm11 = vcmp.eq.s32.totalorder %v5052_v33, %v4799_v40 }
 0x14e   : > { %v5177_v42 = vsel %vm307_vm13, 1.0, %v8289_v16  ;;  %v5195_v44 = vsel %vm476_vm15, 1.0, %v8289_v16  ;;  %vm311_vm7 = vcmp.eq.s32.totalorder %v5052_v33, %v4773_v48  ;;  %vm318_vm13 = vcmp.eq.s32.totalorder %v5046_v52, %v4803_v18 }
 0x14f   : > { %8533 = vst [vmem:[#allocation103_spill] sm:$0xff] %v5195_v44  ;;  %vm319_vm3 = vcmp.eq.s32.totalorder %v5052_v33, %v4803_v18  ;;  %v3496_v44 = vsel %vm481_vm11, 1.0, %v8289_v16  ;;  %vm316_vm15 = vcmp.eq.s32.totalorder %v5046_v52, %v4818_v30  ;;  %vm493_vm11 = vcmp.eq.s32.totalorder %v5052_v33, %v4881_v47 }
 0x150   : > { %1398 = vperm.xlu2 %4157, %v4874_v26   ;;  %v5135_v25 = vpop.permute.xlu2 %1049  ;;  %v3486_v26 = vsel %vm471_vm4, 1.0, %v8289_v16  ;;  %vm480_vm4 = vcmp.eq.s32.totalorder %v5046_v52, %v4799_v40 }
 0x151   : > { %8527 = vst [vmem:[#allocation97_spill] sm:$0xff] %v5135_v25  ;;  %v3453_v25 = vsel %vm294_vm0, 1.0, %v8289_v16  ;;  %1395 = vperm.xlu1 %4159, %v4879_v59   ;;  %v5157_v24 = vpop.permute.xlu1 %1022  ;;  %vm312_vm0 = vcmp.eq.s32.totalorder %v5046_v52, %v4758_v15  ;;  %v1716_v15 = vadd.s32 128, %v4376_v21  ;;  %v3495_v40 = vsel %vm480_vm4, 1.0, %v8289_v16 }
 0x152   : > { %8529 = vst [vmem:[#allocation99_spill] sm:$0xff] %v5157_v24  ;;  %v5186_v55 = vadd.f32 %v3485_v60, %v3453_v25  ;;  %v5188_v24 = vadd.f32 %v3486_v26, %v3454_v0  ;;  %v5201_v60 = vsel %vm312_vm0, 1.0, %v8289_v16  ;;  %v5204_v26 = vsel %vm313_vm12, 1.0, %v8289_v16 }
 0x153   : > { %v5174_v59 = vpop.permute.xlu0 %1052  ;;  %v3469_v25 = vsel %vm310_vm10, 1.0, %v8289_v16  ;;  %vm487_vm0 = vcmp.eq.s32.totalorder %v5052_v33, %v4844_v2  ;;  %v3470_v21 = vsel %vm311_vm7, 1.0, %v8289_v16  ;;  %vm317_vm12 = vcmp.eq.s32.totalorder %v5052_v33, %v4818_v30 }
 0x154   : > { %8530 = vst [vmem:[#allocation100_spill] sm:$0xff] %v5174_v59  ;;  %1580 = vperm.xlu0 %4162, %v4911_v43   ;;  %v3464_v59 = vsel %vm305_vm1, 1.0, %v8289_v16  ;;  %vm486_vm1 = vcmp.eq.s32.totalorder %v5046_v52, %v4844_v2  ;;  %vm468_vm10 = vcmp.eq.s32.totalorder %v5046_v52, %v4860_v29  ;;  %v5234_v18 = vsel %vm4415_vm14, %v1716_v15, 4294967295 }
 0x155   : > { %8531 = vst [vmem:[#allocation101_spill] sm:$0xff] %v5186_v55  ;;  %v5240_v2 = vsel %vm319_vm3, 1.0, %v8289_v16  ;;  %vm469_vm4 = vcmp.eq.s32.totalorder %v5052_v33, %v4860_v29  ;;  %v5247_v30 = vadd.f32 %v3496_v44, %v3464_v59  ;;  %v3502_v35 = vsel %vm487_vm0, 1.0, %v8289_v16 }
 0x156   : > { %8532 = vst [vmem:[#allocation102_spill] sm:$0xff] %v5188_v24  ;;  %v8271_v15 = vmov 8   ;;  %v3476_v55 = vsel %vm317_vm12, 1.0, %v8289_v16  ;;  %v3483_v34 = vsel %vm468_vm10, 1.0, %v8289_v16  ;;  %vm492_vm14 = vcmp.eq.s32.totalorder %v5046_v52, %v4881_v47 }
 0x157   : > { %v3484_v44 = vsel %vm469_vm4, 1.0, %v8289_v16  ;;  %vm474_vm7 = vcmp.eq.s32.totalorder %v5046_v52, %v4893_v56  ;;  %v1721_v29 = vadd.s32 128, %v4402_v28  ;;  %v5267_v59 = vadd.f32 %v3502_v35, %v3470_v21 }
 0x158   : > { %1407 = vperm.xlu2 %4157, %v4907_v32   ;;  %v5210_v0 = vpop.permute.xlu2 %1058  ;;  %v3475_v32 = vsel %vm316_vm15, 1.0, %v8289_v16  ;;  %vm323_vm3 = vcmp.eq.s32.totalorder %v5052_v33, %v4862_v54  ;;  %v8536_v47 = vmov 7   ;;  %vm472_vm15 = vcmp.eq.s32.totalorder %v5046_v52, %v4902_v23 }
 0x159   : > { %8534 = vst [vmem:[#allocation104_spill] sm:$0xff] %v5210_v0  ;;  %1404 = vperm.xlu1 %4159, %v4911_v43   ;;  %v5225_v48 = vpop.permute.xlu1 %1028  ;;  %v5237_v0 = vsel %vm318_vm13, 1.0, %v8289_v16  ;;  %v3501_v43 = vsel %vm486_vm1, 1.0, %v8289_v16  ;;  %vm322_vm13 = vcmp.eq.s32.totalorder %v5046_v52, %v4862_v54  ;;  %vm475_vm1 = vcmp.eq.s32.totalorder %v5052_v33, %v4893_v56 }
 0x15a   : > { %8535 = vst [vmem:[#allocation105_spill] sm:$0xff] %v5225_v48  ;;  %v5245_v48 = vadd.f32 %v3495_v40, %v3463_v13  ;;  %v5261_v13 = vadd.f32 %v3501_v43, %v3469_v25  ;;  %v5277_v25 = vadd.f32 %v3483_v34, %v5126_v37  ;;  %v3507_v40 = vsel %vm492_vm14, 1.0, %v8289_v16 }
 0x15b   : > { %v3508_v43 = vsel %vm493_vm11, 1.0, %v8289_v16  ;;  %v5287_v35 = vadd.f32 %v3484_v44, %v5138_v58  ;;  %vm473_vm0 = vcmp.eq.s32.totalorder %v5052_v33, %v4902_v23  ;;  %vm498_vm12 = vcmp.eq.s32.totalorder %v5046_v52, %v4913_v14 }
 0x15c   : > { %4163 = vset.pattern.permute.xlu0 %v8271_v15  ;;  %v5252_v24 = vpop.permute.xlu0 %1189  ;;  %v3489_v15 = vsel %vm474_vm7, 1.0, %v8289_v16  ;;  %v3482_v58 = vsel %vm323_vm3, 1.0, %v8289_v16  ;;  %v3490_v34 = vsel %vm475_vm1, 1.0, %v8289_v16  ;;  %v5312_v44 = vsel %vm4432_vm5, %v1721_v29, 4294967295 }
 0x15d   : > { %1749 = vperm.xlu0 %4163, %v5234_v18   ;;  %8537 = vst [vmem:[#allocation106_spill] sm:$0xff] %v5312_v44  ;;  %v5316_v28 = vadd.f32 %v3508_v43, %v3476_v55  ;;  %v3487_v54 = vsel %vm472_vm15, 1.0, %v8289_v16  ;;  %vm499_vm10 = vcmp.eq.s32.totalorder %v5052_v33, %v4913_v14  ;;  %v5325_v56 = vadd.f32 %v3489_v15, %v5151_v41 }
 0x15e   : > { %v3513_v39 = vsel %vm498_vm12, 1.0, %v8289_v16  ;;  %vm478_vm5 = vcmp.eq.s32.totalorder %v5046_v52, %v4917_v49  ;;  %v5334_v55 = vadd.f32 %v3490_v34, %v5165_v51  ;;  %vm479_vm4 = vcmp.eq.s32.totalorder %v5052_v33, %v4917_v49 }
 0x15f   : > { %vm482_vm14 = vcmp.eq.s32.totalorder %v5046_v52, %v4919_v19  ;;  %vm483_vm11 = vcmp.eq.s32.totalorder %v5052_v33, %v4919_v19  ;;  %v568_v14 = vadd.f32 %v3487_v54, %v5110_v38  ;;  %v3514_v23 = vsel %vm499_vm10, 1.0, %v8289_v16 }
 0x160   : > { %4161 = vset.pattern.permute.xlu2 %v8536_v47  ;;  %vm648_vm7 = vcmp.eq.s32.totalorder %v5046_v52, %v4922_v6  ;;  %v1724_v51 = vadd.s32 128, %v4465_v53  ;;  %v3493_v15 = vsel %vm478_vm5, 1.0, %v8289_v16  ;;  %v3494_v19 = vsel %vm479_vm4, 1.0, %v8289_v16  ;;  %v8572_v53 = vld [vmem:[#allocation70_spill] sm:$0xff] }
 0x161   : > { %1544 = vperm.xlu2 %4161, %v4684_v9   ;;  %v5284_v21 = vpop.permute.xlu2 %1195  ;;  %4160 = vset.pattern.permute.xlu1 %v8536_v47  ;;  %v5295_v37 = vpop.permute.xlu1 %1037  ;;  %v3481_v9 = vsel %vm322_vm13, 1.0, %v8289_v16  ;;  %v5314_v47 = vadd.f32 %v3507_v40, %v3475_v32  ;;  %vm649_vm13 = vcmp.eq.s32.totalorder %v5052_v33, %v4922_v6  ;;  %v3497_v38 = vsel %vm482_vm14, 1.0, %v8289_v16 }
 0x162   : > { %1541 = vperm.xlu1 %4160, %v4699_v36   ;;  %v3488_v36 = vsel %vm473_vm0, 1.0, %v8289_v16  ;;  %v5349_v49 = vadd.f32 %v3513_v39, %v3481_v9  ;;  %v3498_v29 = vsel %vm483_vm11, 1.0, %v8289_v16  ;;  %vm484_vm3 = vcmp.eq.s32.totalorder %v5046_v52, %v4925_v12 }
 0x163   : > { %v569_v41 = vadd.f32 %v3488_v36, %v5117_v57  ;;  %v5362_v57 = vadd.f32 %v3514_v23, %v3482_v58  ;;  %vm485_vm1 = vcmp.eq.s32.totalorder %v5052_v33, %v4925_v12  ;;  %vm488_vm15 = vcmp.eq.s32.totalorder %v5046_v52, %v4928_v4 }
 0x164   : > { %v5331_v32 = vpop.permute.xlu0 %1204  ;;  %v3519_v6 = vsel %vm648_vm7, 1.0, %v8289_v16  ;;  %v5372_v9 = vadd.f32 %v3493_v15, %v5085_v22  ;;  %vm489_vm0 = vcmp.eq.s32.totalorder %v5052_v33, %v4928_v4  ;;  %v5380_v58 = vsel %vm4484_vm6, %v1724_v51, 4294967295 }
 0x165   : > { %1764 = vperm.xlu0 %4163, %v5312_v44   ;;  %8539 = vst [vmem:[#allocation108_spill] sm:$0xff] %v5380_v58  ;;  %v5383_v34 = vadd.f32 %v3494_v19, %v5088_v8  ;;  %v578_v54 = vadd.f32 %v3497_v38, %v5168_v62  ;;  %v579_v36 = vadd.f32 %v3498_v29, %v5177_v42  ;;  %v3499_v4 = vsel %vm484_vm3, 1.0, %v8289_v16 }
 0x166   : > { %v3500_v22 = vsel %vm485_vm1, 1.0, %v8289_v16  ;;  %v5393_v39 = vadd.f32 %v3519_v6, %v568_v14  ;;  %vm490_vm6 = vcmp.eq.s32.totalorder %v5046_v52, %v4934_v27  ;;  %v3504_v62 = vsel %vm489_vm0, 1.0, %v8289_v16 }
 0x167   : > { %vm491_vm12 = vcmp.eq.s32.totalorder %v5052_v33, %v4934_v27  ;;  %vm494_vm10 = vcmp.eq.s32.totalorder %v5046_v52, %v4937_v10  ;;  %v5408_v12 = vadd.f32 %v3499_v4, %v5095_v11  ;;  %vm495_vm5 = vcmp.eq.s32.totalorder %v5052_v33, %v4937_v10 }
 0x168   : > { %vm658_vm4 = vcmp.eq.s32.totalorder %v5046_v52, %v4940_v50  ;;  %v1727_v42 = vadd.s32 128, %v4505_v3  ;;  %v5416_v14 = vadd.f32 %v3500_v22, %v5098_v31  ;;  %v3505_v23 = vsel %vm490_vm6, 1.0, %v8289_v16 }
 0x169   : > { %1553 = vperm.xlu2 %4161, %v4797_v7   ;;  %v5360_v40 = vpop.permute.xlu2 %1201  ;;  %v5369_v43 = vpop.permute.xlu1 %1046  ;;  %v3520_v7 = vsel %vm649_vm13, 1.0, %v8289_v16  ;;  %vm659_vm14 = vcmp.eq.s32.totalorder %v5052_v33, %v4940_v50  ;;  %v585_v11 = vadd.f32 %v3504_v62, %v5204_v26  ;;  %v3506_v51 = vsel %vm491_vm12, 1.0, %v8289_v16 }
 0x16a   : > { %8538 = vst [vmem:[#allocation107_spill] sm:$0xff] %v5360_v40  ;;  %1550 = vperm.xlu1 %4160, %v4740_v1   ;;  %v3503_v1 = vsel %vm488_vm15, 1.0, %v8289_v16  ;;  %v5400_v8 = vadd.f32 %v3520_v7, %v569_v41  ;;  %v3509_v10 = vsel %vm494_vm10, 1.0, %v8289_v16  ;;  %vm496_vm11 = vcmp.eq.s32.totalorder %v5046_v52, %v4943_v17  ;;  %v8540_v41 = vld [vmem:[#allocation58_spill] sm:$0xff]  ;;  %v8557_v40 = vld [vmem:[#allocation64_spill] sm:$0xff] }
 0x16b   : > { %v584_v27 = vadd.f32 %v3503_v1, %v5201_v60  ;;  %v3510_v60 = vsel %vm495_vm5, 1.0, %v8289_v16  ;;  %vm497_vm7 = vcmp.eq.s32.totalorder %v5052_v33, %v4943_v17  ;;  %v3529_v50 = vsel %vm658_vm4, 1.0, %v8289_v16 }
 0x16c   : > { %v5397_v63 = vpop.permute.xlu0 %1213  ;;  %vm644_vm13 = vcmp.eq.s32.totalorder %v5046_v52, %v8540_v41  ;;  %v5439_v15 = vadd.f32 %v3505_v23, %v5101_v61  ;;  %v3530_v19 = vsel %vm659_vm14, 1.0, %v8289_v16  ;;  %vm645_vm3 = vcmp.eq.s32.totalorder %v5052_v33, %v8540_v41  ;;  %v8543_v61 = vld [vmem:[#allocation59_spill] sm:$0xff]  ;;  %v8546_v23 = vld [vmem:[#allocation98_spill] sm:$0xff] }
 0x16d   : > { %1773 = vperm.xlu0 %4163, %v5380_v58   ;;  %v5447_v17 = vsel %vm4537_vm8, %v1727_v42, 4294967295  ;;  %v5450_v38 = vadd.f32 %v3506_v51, %v5107_v20  ;;  %v590_v29 = vadd.f32 %v3509_v10, %v5237_v0  ;;  %v3511_v6 = vsel %vm496_vm11, 1.0, %v8289_v16  ;;  %v8544_v0 = vld [vmem:[#allocation60_spill] sm:$0xff] }
 0x16e   : > { %8542 = vst [vmem:[#allocation58_spill] sm:$0xff] %v5447_v17  ;;  %vm664_vm1 = vcmp.eq.s32.totalorder %v5046_v52, %v8543_v61  ;;  %v591_v7 = vadd.f32 %v3510_v60, %v5240_v2  ;;  %v3512_v4 = vsel %vm497_vm7, 1.0, %v8289_v16  ;;  %v5458_v22 = vadd.f32 %v3529_v50, %v578_v54  ;;  %v8547_v60 = vld [vmem:[#allocation61_spill] sm:$0xff] }
 0x16f   : > { %v5463_v62 = vadd.f32 %v3530_v19, %v579_v36  ;;  %v3516_v20 = vsel %vm645_vm3, 1.0, %v8289_v16  ;;  %vm665_vm8 = vcmp.eq.s32.totalorder %v5052_v33, %v8543_v61  ;;  %vm646_vm15 = vcmp.eq.s32.totalorder %v5046_v52, %v8544_v0  ;;  %v8545_v36 = vld [vmem:[#allocation25_spill] sm:$0xff]  ;;  %v8548_v19 = vld [vmem:[#allocation62_spill] sm:$0xff] }
 0x170   : > { %v5472_v2 = vadd.f32 %v3511_v6, %v5141_v45  ;;  %v3535_v54 = vsel %vm664_vm1, 1.0, %v8289_v16  ;;  %vm647_vm0 = vcmp.eq.s32.totalorder %v5052_v33, %v8544_v0  ;;  %v1730_v42 = vadd.s32 128, %v8545_v36  ;;  %v8558_v36 = vld [vmem:[#allocation102_spill] sm:$0xff] }
 0x171   : > { %1559 = vperm.xlu2 %4161, %v4718_v46   ;;  %v5428_v31 = vpop.permute.xlu2 %1210  ;;  %v5436_v26 = vpop.permute.xlu1 %1055  ;;  %v5479_v51 = vadd.f32 %v3512_v4, %v8546_v23  ;;  %vm654_vm6 = vcmp.eq.s32.totalorder %v5046_v52, %v8547_v60  ;;  %vm655_vm12 = vcmp.eq.s32.totalorder %v5052_v33, %v8547_v60  ;;  %v741_v45 = vadd.f32 %v3516_v20, %v5287_v35  ;;  %v8549_v46 = vld [vmem:[#allocation41_spill] sm:$0xff]  ;;  %v8551_v4 = vld [vmem:[#allocation63_spill] sm:$0xff]  ;;  %v8552_v20 = vld [vmem:[#allocation48_spill] sm:$0xff] }
 0x172   : > { %1556 = vperm.xlu1 %4160, %v4785_v5   ;;  %v3515_v5 = vsel %vm644_vm13, 1.0, %v8289_v16  ;;  %v3536_v50 = vsel %vm665_vm8, 1.0, %v8289_v16  ;;  %v3517_v41 = vsel %vm646_vm15, 1.0, %v8289_v16  ;;  %vm670_vm10 = vcmp.eq.s32.totalorder %v5046_v52, %v8548_v19  ;;  %v8556_v60 = vld [vmem:[#allocation101_spill] sm:$0xff] }
 0x173   : > { %v740_v10 = vadd.f32 %v3515_v5, %v5277_v25  ;;  %v5494_v25 = vadd.f32 %v3535_v54, %v584_v27  ;;  %v3518_v61 = vsel %vm647_vm0, 1.0, %v8289_v16  ;;  %vm671_vm5 = vcmp.eq.s32.totalorder %v5052_v33, %v8548_v19  ;;  %v8560_v27 = vld [vmem:[#allocation65_spill] sm:$0xff] }
 0x174   : > { %v5461_v1 = vpop.permute.xlu0 %1222  ;;  %vm650_vm4 = vcmp.eq.s32.totalorder %v5046_v52, %v8551_v4  ;;  %v3525_v35 = vsel %vm654_vm6, 1.0, %v8289_v16  ;;  %v3526_v5 = vsel %vm655_vm12, 1.0, %v8289_v16  ;;  %vm651_vm14 = vcmp.eq.s32.totalorder %v5052_v33, %v8551_v4 }
 0x175   : > { %1782 = vperm.xlu0 %4163, %v5447_v17   ;;  %v5510_v54 = vsel %vm4586_vm9, %v1730_v42, 4294967295  ;;  %v5512_v23 = vadd.f32 %v3536_v50, %v585_v11  ;;  %v5515_v19 = vadd.f32 %v3517_v41, %v8556_v60  ;;  %vm660_vm11 = vcmp.eq.s32.totalorder %v5046_v52, %v8557_v40  ;;  %v8564_v17 = vld [vmem:[#allocation45_spill] sm:$0xff] }
 0x176   : > { %8555 = vst [vmem:[#allocation60_spill] sm:$0xff] %v5510_v54  ;;  %v5521_v4 = vadd.f32 %v3518_v61, %v8558_v36  ;;  %v3521_v3 = vsel %vm650_vm4, 1.0, %v8289_v16  ;;  %vm661_vm9 = vcmp.eq.s32.totalorder %v5052_v33, %v8557_v40  ;;  %v5530_v42 = vadd.f32 %v3525_v35, %v5372_v9  ;;  %v8561_v40 = vld [vmem:[#allocation66_spill] sm:$0xff] }
 0x177   : > { %v5533_v50 = vadd.f32 %v3526_v5, %v5383_v34  ;;  %v3522_v41 = vsel %vm651_vm14, 1.0, %v8289_v16  ;;  %vm884_vm7 = vcmp.eq.s32.totalorder %v5046_v52, %v8560_v27  ;;  %v3531_v61 = vsel %vm660_vm11, 1.0, %v8289_v16  ;;  %v8562_v5 = vld [vmem:[#allocation12_spill] sm:$0xff] }
 0x178   : > { %vm656_vm13 = vcmp.eq.s32.totalorder %v5046_v52, %v8561_v40  ;;  %vm885_vm3 = vcmp.eq.s32.totalorder %v5052_v33, %v8560_v27  ;;  %v746_v34 = vadd.f32 %v3521_v3, %v5325_v56  ;;  %v3532_v35 = vsel %vm661_vm9, 1.0, %v8289_v16 }
 0x179   : > { %1568 = vperm.xlu2 %4161, %v8549_v46   ;;  %v5492_v6 = vpop.permute.xlu2 %1219  ;;  %v3541_v46 = vsel %vm670_vm10, 1.0, %v8289_v16  ;;  %v1717_v60 = vadd.s32 128, %v8562_v5  ;;  %vm657_vm1 = vcmp.eq.s32.totalorder %v5052_v33, %v8561_v40  ;;  %v5561_v3 = vadd.f32 %v3531_v61, %v5408_v12 }
 0x17a   : > { %8550 = vst [vmem:[#allocation23_spill] sm:$0xff] %v5492_v6  ;;  %1565 = vperm.xlu1 %4160, %v8552_v20   ;;  %v5506_v0 = vpop.permute.xlu1 %1192  ;;  %v3542_v20 = vsel %vm671_vm5, 1.0, %v8289_v16  ;;  %v5539_v36 = vadd.f32 %v3541_v46, %v590_v29  ;;  %v8563_v29 = vld [vmem:[#allocation67_spill] sm:$0xff]  ;;  %v3547_v46 = vsel %vm884_vm7, 1.0, %v8289_v16  ;;  %v3527_v56 = vsel %vm656_vm13, 1.0, %v8289_v16 }
 0x17b   : > { %8553 = vst [vmem:[#allocation59_spill] sm:$0xff] %v5506_v0  ;;  %v5546_v9 = vadd.f32 %v3542_v20, %v591_v7  ;;  %vm666_vm8 = vcmp.eq.s32.totalorder %v5046_v52, %v8563_v29  ;;  %vm667_vm15 = vcmp.eq.s32.totalorder %v5052_v33, %v8563_v29  ;;  %v5568_v20 = vadd.f32 %v3532_v35, %v5416_v14 }
 0x17c   : > { %v5527_v11 = vpop.permute.xlu0 %1231  ;;  %v3528_v27 = vsel %vm657_vm1, 1.0, %v8289_v16  ;;  %v3537_v61 = vsel %vm666_vm8, 1.0, %v8289_v16  ;;  %v5579_v40 = vadd.f32 %v3547_v46, %v740_v10  ;;  %v5583_v14 = vsel %vm4461_vm2, %v1717_v60, 4294967295 }
 0x17d   : > { %8559 = vst [vmem:[#allocation98_spill] sm:$0xff] %v5527_v11  ;;  %1791 = vperm.xlu0 %4163, %v5510_v54   ;;  %v747_v54 = vadd.f32 %v3522_v41, %v5334_v55  ;;  %v3548_v55 = vsel %vm885_vm3, 1.0, %v8289_v16  ;;  %v8566_v41 = vld [vmem:[#allocation68_spill] sm:$0xff]  ;;  %v5586_v35 = vadd.f32 %v3527_v56, %v5245_v48  ;;  %v3538_v5 = vsel %vm667_vm15, 1.0, %v8289_v16  ;;  %v8600_v11 = vld [vmem:[#allocation26_spill] sm:$0xff] }
 0x17e   : > { %vm890_vm0 = vcmp.eq.s32.totalorder %v5046_v52, %v8566_v41  ;;  %vm891_vm6 = vcmp.eq.s32.totalorder %v5052_v33, %v8566_v41  ;;  %8570 = vst [vmem:[#allocation41_spill] sm:$0xff] %v5583_v14  ;;  %v5589_v41 = vadd.f32 %v3548_v55, %v741_v45  ;;  %vm672_vm5 = vcmp.eq.s32.totalorder %v5046_v52, %v8572_v53  ;;  %v8574_v55 = vld [vmem:[#allocation71_spill] sm:$0xff] }
 0x17f   : > { %v3553_v10 = vsel %vm890_vm0, 1.0, %v8289_v16  ;;  %v3554_v60 = vsel %vm891_vm6, 1.0, %v8289_v16  ;;  %v8281_v46 = vmov 9   ;;  %v5603_v45 = vadd.f32 %v3528_v27, %v5247_v30  ;;  %v8575_v30 = vld [vmem:[#allocation17_spill] sm:$0xff] }
 0x180   : > { %v5606_v56 = vadd.f32 %v3537_v61, %v5439_v15  ;;  %vm673_vm2 = vcmp.eq.s32.totalorder %v5052_v33, %v8572_v53  ;;  %vm894_vm4 = vcmp.eq.s32.totalorder %v5046_v52, %v8574_v55  ;;  %v5614_v29 = vadd.f32 %v3538_v5, %v5450_v38  ;;  %v8576_v5 = vld [vmem:[#allocation50_spill] sm:$0xff] }
 0x181   : > { %1577 = vperm.xlu2 %4161, %v8564_v17   ;;  %v5558_v7 = vpop.permute.xlu2 %1228  ;;  %v8567_v17 = vld [vmem:[#allocation53_spill] sm:$0xff]  ;;  %vm895_vm14 = vcmp.eq.s32.totalorder %v5052_v33, %v8574_v55  ;;  %v1722_v27 = vadd.s32 128, %v8575_v30  ;;  %v3543_v61 = vsel %vm672_vm5, 1.0, %v8289_v16  ;;  %v5628_v58 = vadd.f32 %v3553_v10, %v746_v34  ;;  %v8580_v10 = vld [vmem:[#allocation56_spill] sm:$0xff] }
 0x182   : > { %8565 = vst [vmem:[#allocation61_spill] sm:$0xff] %v5558_v7  ;;  %1574 = vperm.xlu1 %4160, %v8567_v17   ;;  %v5575_v12 = vpop.permute.xlu1 %1198  ;;  %v8571_v17 = vld [vmem:[#allocation69_spill] sm:$0xff]  ;;  %v5630_v38 = vadd.f32 %v3554_v60, %v747_v54  ;;  %v3544_v55 = vsel %vm673_vm2, 1.0, %v8289_v16  ;;  %v3558_v54 = vsel %vm895_vm14, 1.0, %v8289_v16  ;;  %vm8601_vm14 = vnez %v8600_v11 }
 0x183   : > { %8568 = vst [vmem:[#allocation62_spill] sm:$0xff] %v5575_v12  ;;  %vm662_vm12 = vcmp.eq.s32.totalorder %v5046_v52, %v8571_v17  ;;  %vm663_vm10 = vcmp.eq.s32.totalorder %v5052_v33, %v8571_v17  ;;  %v3557_v17 = vsel %vm894_vm4, 1.0, %v8289_v16  ;;  %v8579_v34 = vld [vmem:[#allocation73_spill] sm:$0xff]  ;;  %v5655_v12 = vadd.f32 %v3543_v61, %v5472_v2  ;;  %v8587_v61 = vld [vmem:[#allocation74_spill] sm:$0xff] }
 0x184   : > { %v3534_v15 = vsel %vm663_vm10, 1.0, %v8289_v16  ;;  %vm886_vm7 = vcmp.eq.s32.totalorder %v5046_v52, %v8579_v34  ;;  %vm887_vm13 = vcmp.eq.s32.totalorder %v5052_v33, %v8579_v34  ;;  %v5672_v2 = vadd.f32 %v3558_v54, %v5533_v50  ;;  %v8592_v54 = vld [vmem:[#allocation76_spill] sm:$0xff]  ;;  %v8593_v34 = vld [vmem:[#allocation22_spill] sm:$0xff] }
 0x185   : > { %4167 = vset.pattern.permute.xlu0 %v8281_v46  ;;  %v5600_v48 = vpop.permute.xlu0 %1368  ;;  %v3533_v46 = vsel %vm662_vm12, 1.0, %v8289_v16  ;;  %v5664_v16 = vadd.f32 %v3544_v55, %v5479_v51  ;;  %vm900_vm1 = vcmp.eq.s32.totalorder %v5046_v52, %v8587_v61  ;;  %vm901_vm8 = vcmp.eq.s32.totalorder %v5052_v33, %v8587_v61  ;;  %v8589_v55 = vld [vmem:[#allocation75_spill] sm:$0xff] }
 0x186   : > { %8573 = vst [vmem:[#allocation63_spill] sm:$0xff] %v5600_v48  ;;  %1928 = vperm.xlu0 %4167, %v5583_v14   ;;  %v8577_v48 = vld [vmem:[#allocation72_spill] sm:$0xff]  ;;  %v5642_v53 = vadd.f32 %v3533_v46, %v5261_v13  ;;  %vm674_vm15 = vcmp.eq.s32.totalorder %v5046_v52, %v8589_v55  ;;  %vm675_vm0 = vcmp.eq.s32.totalorder %v5052_v33, %v8589_v55 }
 0x187   : > { %vm668_vm11 = vcmp.eq.s32.totalorder %v5046_v52, %v8577_v48  ;;  %vm669_vm9 = vcmp.eq.s32.totalorder %v5052_v33, %v8577_v48  ;;  %v5652_v48 = vadd.f32 %v3534_v15, %v5267_v59  ;;  %v8583_v13 = vld [vmem:[#allocation20_spill] sm:$0xff]  ;;  %v5669_v59 = vadd.f32 %v3557_v17, %v5530_v42  ;;  %v8590_v42 = vld [vmem:[#allocation9_spill] sm:$0xff] }
 0x188   : > { %vm8584_vm3 = vnez %v8583_v13  ;;  %vm8591_vm6 = vnez %v8590_v42  ;;  %vm896_vm12 = vcmp.eq.s32.totalorder %v5046_v52, %v8592_v54  ;;  %vm897_vm10 = vcmp.eq.s32.totalorder %v5052_v33, %v8592_v54 }
 0x189   : > { %1586 = vperm.xlu2 %4161, %v8576_v5   ;;  %v8582_v5 = vld [vmem:[#allocation6_spill] sm:$0xff]  ;;  %v5661_v46 = vsel %vm8584_vm3, %v1722_v27, 4294967295  ;;  %v1725_v13 = vadd.s32 128, %v8593_v34  ;;  %v8595_v34 = vld [vmem:[#allocation77_spill] sm:$0xff] }
 0x18a   : > { %v5639_v30 = vpop.permute.xlu2 %1365  ;;  %1583 = vperm.xlu1 %4160, %v8580_v10   ;;  %v5648_v60 = vpop.permute.xlu1 %1207  ;;  %v1718_v44 = vadd.s32 128, %v8582_v5  ;;  %8585 = vst [vmem:[#allocation101_spill] sm:$0xff] %v5661_v46  ;;  %v8586_v10 = vmov 0.0   ;;  %vm906_vm5 = vcmp.eq.s32.totalorder %v5046_v52, %v8595_v34  ;;  %vm907_vm2 = vcmp.eq.s32.totalorder %v5052_v33, %v8595_v34 }
 0x18b   : > { %8578 = vst [vmem:[#allocation48_spill] sm:$0xff] %v5639_v30  ;;  %v3540_v5 = vsel %vm669_vm9, 1.0, %v8586_v10  ;;  %v3549_v15 = vsel %vm886_vm7, 1.0, %v8586_v10  ;;  %v3550_v27 = vsel %vm887_vm13, 1.0, %v8586_v10  ;;  %v3564_v42 = vsel %vm901_vm8, 1.0, %v8586_v10 }
 0x18c   : > { %8581 = vst [vmem:[#allocation29_spill] sm:$0xff] %v5648_v60  ;;  %v3539_v60 = vsel %vm668_vm11, 1.0, %v8586_v10  ;;  %v5689_v50 = vsel %vm8591_vm6, %v1718_v44, 4294967295  ;;  %v5700_v61 = vadd.f32 %v3540_v5, %v5316_v28  ;;  %v5703_v55 = vadd.f32 %v3549_v15, %v5515_v19  ;;  %v8598_v15 = vld [vmem:[#allocation5_spill] sm:$0xff] }
 0x18d   : > { %v5679_v51 = vpop.permute.xlu0 %1383  ;;  %v5692_v17 = vadd.f32 %v3539_v60, %v5314_v47  ;;  %v3563_v44 = vsel %vm900_vm1, 1.0, %v8586_v10  ;;  %v8594_v47 = vmov 8   ;;  %v5709_v60 = vadd.f32 %v3550_v27, %v5521_v4 }
 0x18e   : > { %8588 = vst [vmem:[#allocation64_spill] sm:$0xff] %v5679_v51  ;;  %1943 = vperm.xlu0 %4167, %v5661_v46   ;;  %v3545_v51 = vsel %vm674_vm15, 1.0, %v8586_v10  ;;  %v3546_v54 = vsel %vm675_vm0, 1.0, %v8586_v10  ;;  %v3559_v19 = vsel %vm896_vm12, 1.0, %v8586_v10  ;;  %v3560_v5 = vsel %vm897_vm10, 1.0, %v8586_v10 }
 0x18f   : > { %v1720_v27 = vadd.s32 128, %v8598_v15  ;;  %v5727_v30 = vadd.f32 %v3563_v44, %v5561_v3  ;;  %v5730_v7 = vadd.f32 %v3564_v42, %v5568_v20  ;;  %v5737_v0 = vsel %vm8601_vm14, %v1725_v13, 4294967295  ;;  %v8603_v20 = vld [vmem:[#allocation11_spill] sm:$0xff] }
 0x190   : > { %8602 = vst [vmem:[#allocation66_spill] sm:$0xff] %v5737_v0  ;;  %v5743_v15 = vadd.f32 %v3546_v54, %v5362_v57  ;;  %v3569_v3 = vsel %vm906_vm5, 1.0, %v8586_v10  ;;  %v1719_v44 = vadd.s32 128, %v8603_v20  ;;  %v5751_v42 = vadd.f32 %v3559_v19, %v5586_v35  ;;  %v8606_v35 = vld [vmem:[#allocation8_spill] sm:$0xff]  ;;  %v8611_v20 = vld [vmem:[#allocation82_spill] sm:$0xff] }
 0x191   : > { %4165 = vset.pattern.permute.xlu2 %v8594_v47  ;;  %v5754_v11 = vadd.f32 %v3560_v5, %v5603_v45  ;;  %v3570_v13 = vsel %vm907_vm2, 1.0, %v8586_v10  ;;  %vm8607_vm13 = vnez %v8606_v35  ;;  %v5772_v34 = vadd.f32 %v3569_v3, %v5606_v56  ;;  %v8609_v54 = vld [vmem:[#allocation80_spill] sm:$0xff] }
 0x192   : > { %1755 = vperm.xlu2 %4165, %v5689_v50   ;;  %v5716_v28 = vpop.permute.xlu2 %1374  ;;  %4164 = vset.pattern.permute.xlu1 %v8594_v47  ;;  %v5723_v4 = vpop.permute.xlu1 %1216  ;;  %v5740_v47 = vadd.f32 %v3545_v51, %v5349_v49  ;;  %v8605_v51 = vld [vmem:[#allocation79_spill] sm:$0xff]  ;;  %v5769_v45 = vsel %vm8607_vm13, %v1720_v27, 4294967295  ;;  %vm912_vm3 = vcmp.eq.s32.totalorder %v5046_v52, %v8609_v54  ;;  %vm913_vm1 = vcmp.eq.s32.totalorder %v5052_v33, %v8609_v54  ;;  %v8612_v27 = vld [vmem:[#allocation13_spill] sm:$0xff] }
 0x193   : > { %8596 = vst [vmem:[#allocation102_spill] sm:$0xff] %v5716_v28  ;;  %v8599_v28 = vld [vmem:[#allocation78_spill] sm:$0xff]  ;;  %1752 = vperm.xlu1 %4164, %v5583_v14   ;;  %vm902_vm9 = vcmp.eq.s32.totalorder %v5046_v52, %v8605_v51  ;;  %vm903_vm7 = vcmp.eq.s32.totalorder %v5052_v33, %v8605_v51  ;;  %v5780_v5 = vadd.f32 %v3570_v13, %v5614_v29  ;;  %v3575_v13 = vsel %vm912_vm3, 1.0, %v8586_v10 }
 0x194   : > { %8597 = vst [vmem:[#allocation65_spill] sm:$0xff] %v5723_v4  ;;  %vm888_vm4 = vcmp.eq.s32.totalorder %v5046_v52, %v8599_v28  ;;  %vm889_vm11 = vcmp.eq.s32.totalorder %v5052_v33, %v8599_v28  ;;  %v8610_v28 = vld [vmem:[#allocation28_spill] sm:$0xff]  ;;  %vm908_vm8 = vcmp.eq.s32.totalorder %v5046_v52, %v8611_v20  ;;  %vm8613_vm15 = vnez %v8612_v27 }
 0x195   : > { %v5759_v49 = vpop.permute.xlu0 %1392  ;;  %v3551_v57 = vsel %vm888_vm4, 1.0, %v8586_v10  ;;  %8608 = vst [vmem:[#allocation45_spill] sm:$0xff] %v5769_v45  ;;  %v1728_v19 = vadd.s32 128, %v8610_v28  ;;  %v3552_v51 = vsel %vm889_vm11, 1.0, %v8586_v10  ;;  %v5787_v56 = vsel %vm8613_vm15, %v1719_v44, 4294967295  ;;  %v8615_v44 = vld [vmem:[#allocation83_spill] sm:$0xff] }
 0x196   : > { %8604 = vst [vmem:[#allocation67_spill] sm:$0xff] %v5759_v49  ;;  %1952 = vperm.xlu0 %4167, %v5737_v0   ;;  %v5790_v3 = vadd.f32 %v3551_v57, %v5393_v39  ;;  %v3565_v35 = vsel %vm902_vm9, 1.0, %v8586_v10  ;;  %v3566_v54 = vsel %vm903_vm7, 1.0, %v8586_v10  ;;  %vm909_vm0 = vcmp.eq.s32.totalorder %v5052_v33, %v8611_v20  ;;  %v8617_v57 = vld [vmem:[#allocation16_spill] sm:$0xff] }
 0x197   : > { %v3576_v27 = vsel %vm913_vm1, 1.0, %v8586_v10  ;;  %vm1062_vm6 = vcmp.eq.s32.totalorder %v5046_v52, %v8615_v44  ;;  %v1723_v28 = vadd.s32 128, %v8617_v57  ;;  %v3571_v14 = vsel %vm908_vm8, 1.0, %v8586_v10  ;;  %v8618_v49 = vld [vmem:[#allocation84_spill] sm:$0xff] }
 0x198   : > { %vm898_vm12 = vcmp.eq.s32.totalorder %v5046_v52, %v8618_v49  ;;  %vm1063_vm10 = vcmp.eq.s32.totalorder %v5052_v33, %v8615_v44  ;;  %v985_v4 = vadd.f32 %v3552_v51, %v5400_v8  ;;  %v5821_v57 = vadd.f32 %v3566_v54, %v5652_v48 }
 0x199   : > { %v3572_v6 = vsel %vm909_vm0, 1.0, %v8586_v10  ;;  %v5828_v44 = vadd.f32 %v3575_v13, %v5655_v12  ;;  %vm899_vm2 = vcmp.eq.s32.totalorder %v5052_v33, %v8618_v49  ;;  %v3581_v8 = vsel %vm1062_vm6, 1.0, %v8586_v10  ;;  %v8623_v12 = vld [vmem:[#allocation18_spill] sm:$0xff]  ;;  %v8625_v49 = vld [vmem:[#allocation85_spill] sm:$0xff]  ;;  %v8627_v13 = vld [vmem:[#allocation87_spill] sm:$0xff] }
 0x19a   : > { %1761 = vperm.xlu2 %4165, %v5769_v45   ;;  %v5797_v29 = vpop.permute.xlu2 %1380  ;;  %v5803_v39 = vpop.permute.xlu1 %1225  ;;  %v5839_v48 = vadd.f32 %v3571_v14, %v5692_v17  ;;  %v3582_v20 = vsel %vm1063_vm10, 1.0, %v8586_v10  ;;  %vm8624_vm4 = vnez %v8623_v12  ;;  %v5849_v51 = vadd.f32 %v3572_v6, %v5700_v61  ;;  %v8626_v14 = vld [vmem:[#allocation32_spill] sm:$0xff]  ;;  %v8631_v12 = vld [vmem:[#allocation89_spill] sm:$0xff] }
 0x19b   : > { %8614 = vst [vmem:[#allocation68_spill] sm:$0xff] %v5797_v29  ;;  %1758 = vperm.xlu1 %4164, %v5787_v56   ;;  %v8619_v29 = vld [vmem:[#allocation31_spill] sm:$0xff]  ;;  %vm914_vm14 = vcmp.eq.s32.totalorder %v5046_v52, %v8625_v49  ;;  %vm915_vm11 = vcmp.eq.s32.totalorder %v5052_v33, %v8625_v49  ;;  %v1731_v17 = vadd.s32 128, %v8626_v14  ;;  %v5858_v54 = vadd.f32 %v3581_v8, %v5703_v55 }
 0x19c   : > { %8616 = vst [vmem:[#allocation53_spill] sm:$0xff] %v5803_v39  ;;  %vm8620_vm5 = vnez %v8619_v29  ;;  %v5818_v39 = vadd.f32 %v3565_v35, %v5642_v53  ;;  %v5831_v29 = vadd.f32 %v3576_v27, %v5664_v16  ;;  %v5846_v16 = vsel %vm8624_vm4, %v1723_v28, 4294967295  ;;  %v8629_v28 = vld [vmem:[#allocation88_spill] sm:$0xff] }
 0x19d   : > { %v5814_v45 = vsel %vm8620_vm5, %v1728_v19, 4294967295  ;;  %v5836_v53 = vpop.permute.xlu0 %1401  ;;  %v3561_v19 = vsel %vm898_vm12, 1.0, %v8586_v10  ;;  %v3562_v35 = vsel %vm899_vm2, 1.0, %v8586_v10  ;;  %vm904_vm9 = vcmp.eq.s32.totalorder %v5046_v52, %v8627_v13 }
 0x19e   : > { %8621 = vst [vmem:[#allocation14_spill] sm:$0xff] %v5814_v45  ;;  %1961 = vperm.xlu0 %4167, %v5814_v45   ;;  %vm905_vm7 = vcmp.eq.s32.totalorder %v5052_v33, %v8627_v13  ;;  %v994_v6 = vadd.f32 %v3561_v19, %v5458_v22  ;;  %v5866_v61 = vadd.f32 %v3582_v20, %v5709_v60  ;;  %v3577_v27 = vsel %vm914_vm14, 1.0, %v8586_v10  ;;  %v8633_v60 = vld [vmem:[#allocation21_spill] sm:$0xff] }
 0x19f   : > { %8622 = vst [vmem:[#allocation69_spill] sm:$0xff] %v5836_v53  ;;  %vm1064_vm13 = vcmp.eq.s32.totalorder %v5046_v52, %v8629_v28  ;;  %vm1065_vm3 = vcmp.eq.s32.totalorder %v5052_v33, %v8629_v28  ;;  %v3578_v8 = vsel %vm915_vm11, 1.0, %v8586_v10  ;;  %vm1072_vm1 = vcmp.eq.s32.totalorder %v5046_v52, %v8631_v12  ;;  %v8634_v28 = vld [vmem:[#allocation33_spill] sm:$0xff] }
 0x1a0   : > { %8628 = vst [vmem:[#allocation70_spill] sm:$0xff] %v5866_v61  ;;  %v1726_v19 = vadd.s32 128, %v8633_v60  ;;  %v995_v20 = vadd.f32 %v3562_v35, %v5463_v62  ;;  %v3567_v49 = vsel %vm904_vm9, 1.0, %v8586_v10  ;;  %v3568_v13 = vsel %vm905_vm7, 1.0, %v8586_v10  ;;  %v8637_v61 = vld [vmem:[#allocation90_spill] sm:$0xff] }
 0x1a1   : > { %vm8635_vm8 = vnez %v8634_v28  ;;  %v3584_v53 = vsel %vm1065_vm3, 1.0, %v8586_v10  ;;  %vm910_vm15 = vcmp.eq.s32.totalorder %v5046_v52, %v8637_v61  ;;  %vm1073_vm0 = vcmp.eq.s32.totalorder %v5052_v33, %v8631_v12 }
 0x1a2   : > { %1770 = vperm.xlu2 %4165, %v5846_v16   ;;  %v5873_v55 = vpop.permute.xlu2 %1389  ;;  %v5879_v22 = vpop.permute.xlu1 %1234  ;;  %v5888_v14 = vsel %vm8635_vm8, %v1731_v17, 4294967295  ;;  %v5897_v62 = vadd.f32 %v3577_v27, %v5740_v47  ;;  %v5900_v35 = vadd.f32 %v3578_v8, %v5743_v15  ;;  %vm911_vm6 = vcmp.eq.s32.totalorder %v5052_v33, %v8637_v61  ;;  %v8639_v47 = vld [vmem:[#allocation24_spill] sm:$0xff] }
 0x1a3   : > { %8630 = vst [vmem:[#allocation71_spill] sm:$0xff] %v5873_v55  ;;  %1767 = vperm.xlu1 %4164, %v5661_v46   ;;  %v3583_v55 = vsel %vm1064_vm13, 1.0, %v8586_v10  ;;  %v3591_v17 = vsel %vm1072_vm1, 1.0, %v8586_v10  ;;  %v1000_v60 = vadd.f32 %v3567_v49, %v5494_v25  ;;  %v1001_v46 = vadd.f32 %v3568_v13, %v5512_v23  ;;  %v8642_v49 = vld [vmem:[#allocation92_spill] sm:$0xff] }
 0x1a4   : > { %8632 = vst [vmem:[#allocation50_spill] sm:$0xff] %v5879_v22  ;;  %v8638_v22 = vld [vmem:[#allocation91_spill] sm:$0xff]  ;;  %vm8640_vm10 = vnez %v8639_v47  ;;  %v5917_v27 = vadd.f32 %v3583_v55, %v5790_v3  ;;  %v5919_v61 = vadd.f32 %v3584_v53, %v985_v4  ;;  %v3573_v8 = vsel %vm910_vm15, 1.0, %v8586_v10  ;;  %v8643_v4 = vld [vmem:[#allocation93_spill] sm:$0xff] }
 0x1a5   : > { %8636 = vst [vmem:[#allocation72_spill] sm:$0xff] %v5888_v14  ;;  %v5905_v28 = vpop.permute.xlu0 %1410  ;;  %vm1074_vm12 = vcmp.eq.s32.totalorder %v5046_v52, %v8638_v22  ;;  %v5914_v15 = vsel %vm8640_vm10, %v1726_v19, 4294967295  ;;  %v3592_v25 = vsel %vm1073_vm0, 1.0, %v8586_v10  ;;  %v3574_v23 = vsel %vm911_vm6, 1.0, %v8586_v10  ;;  %v8647_v19 = vld [vmem:[#allocation27_spill] sm:$0xff] }
 0x1a6   : > { %1970 = vperm.xlu0 %4167, %v5888_v14   ;;  %v5925_v12 = vadd.f32 %v3591_v17, %v5751_v42  ;;  %vm1075_vm5 = vcmp.eq.s32.totalorder %v5052_v33, %v8638_v22  ;;  %vm1078_vm2 = vcmp.eq.s32.totalorder %v5046_v52, %v8642_v49  ;;  %v3593_v3 = vsel %vm1074_vm12, 1.0, %v8586_v10  ;;  %v8646_v22 = vld [vmem:[#allocation96_spill] sm:$0xff] }
 0x1a7   : > { %vm1079_vm4 = vcmp.eq.s32.totalorder %v5052_v33, %v8642_v49  ;;  %vm1060_vm14 = vcmp.eq.s32.totalorder %v5046_v52, %v8643_v4  ;;  %vm1061_vm11 = vcmp.eq.s32.totalorder %v5052_v33, %v8643_v4  ;;  %v1006_v53 = vadd.f32 %v3573_v8, %v5539_v36 }
 0x1a8   : > { %8641 = vst [vmem:[#allocation73_spill] sm:$0xff] %v5925_v12  ;;  %v5943_v55 = vadd.f32 %v3592_v25, %v5754_v11  ;;  %vm1080_vm9 = vcmp.eq.s32.totalorder %v5046_v52, %v8646_v22  ;;  %v1729_v13 = vadd.s32 128, %v8647_v19  ;;  %v1007_v17 = vadd.f32 %v3574_v23, %v5546_v9  ;;  %v8649_v25 = vld [vmem:[#allocation97_spill] sm:$0xff] }
 0x1a9   : > { %v3594_v47 = vsel %vm1075_vm5, 1.0, %v8586_v10  ;;  %v3597_v49 = vsel %vm1078_vm2, 1.0, %v8586_v10  ;;  %v5954_v12 = vadd.f32 %v3593_v3, %v994_v6  ;;  %v3598_v36 = vsel %vm1079_vm4, 1.0, %v8586_v10  ;;  %v8650_v3 = vld [vmem:[#allocation99_spill] sm:$0xff] }
 0x1aa   : > { %1779 = vperm.xlu2 %4165, %v5914_v15   ;;  %v5939_v42 = vpop.permute.xlu2 %1398  ;;  %8645 = vst [vmem:[#allocation20_spill] sm:$0xff] %v5943_v55  ;;  %v3579_v11 = vsel %vm1060_vm14, 1.0, %v8586_v10  ;;  %v3580_v8 = vsel %vm1061_vm11, 1.0, %v8586_v10  ;;  %vm1081_vm7 = vcmp.eq.s32.totalorder %v5052_v33, %v8646_v22  ;;  %v3599_v9 = vsel %vm1080_vm9, 1.0, %v8586_v10  ;;  %v8651_v55 = vld [vmem:[#allocation30_spill] sm:$0xff] }
 0x1ab   : > { %8644 = vst [vmem:[#allocation56_spill] sm:$0xff] %v5939_v42  ;;  %1776 = vperm.xlu1 %4164, %v5737_v0   ;;  %v5952_v4 = vpop.permute.xlu1 %1371  ;;  %vm1084_vm13 = vcmp.eq.s32.totalorder %v5046_v52, %v8649_v25  ;;  %vm1085_vm3 = vcmp.eq.s32.totalorder %v5052_v33, %v8649_v25  ;;  %v5966_v23 = vadd.f32 %v3594_v47, %v995_v20  ;;  %v8313_v19 = vmov 10  }
 0x1ac   : > { %8648 = vst [vmem:[#allocation74_spill] sm:$0xff] %v5952_v4  ;;  %v5969_v6 = vadd.f32 %v3597_v49, %v5818_v39  ;;  %vm1066_vm1 = vcmp.eq.s32.totalorder %v5046_v52, %v8650_v3  ;;  %vm8652_vm8 = vnez %v8651_v55  ;;  %v5981_v4 = vadd.f32 %v3598_v36, %v5821_v57  ;;  %v8655_v36 = vld [vmem:[#allocation105_spill] sm:$0xff] }
 0x1ad   : > { %v5978_v42 = vsel %vm8652_vm8, %v1729_v13, 4294967295  ;;  %v1156_v20 = vadd.f32 %v3579_v11, %v5579_v40  ;;  %v1157_v39 = vadd.f32 %v3580_v8, %v5589_v41  ;;  %vm1067_vm15 = vcmp.eq.s32.totalorder %v5052_v33, %v8650_v3  ;;  %v8653_v13 = vld [vmem:[#allocation100_spill] sm:$0xff] }
 0x1ae   : > { %4171 = vset.pattern.permute.xlu0 %v8313_v19  ;;  %v5974_v0 = vpop.permute.xlu0 %1547  ;;  %v3600_v47 = vsel %vm1081_vm7, 1.0, %v8586_v10  ;;  %v5992_v55 = vadd.f32 %v3599_v9, %v1000_v60  ;;  %v3603_v57 = vsel %vm1084_vm13, 1.0, %v8586_v10  ;;  %v3604_v40 = vsel %vm1085_vm3, 1.0, %v8586_v10  ;;  %v8654_v60 = vld [vmem:[#allocation104_spill] sm:$0xff] }
 0x1af   : > { %2107 = vperm.xlu0 %4171, %v5689_v50   ;;  %v3585_v41 = vsel %vm1066_vm1, 1.0, %v8586_v10  ;;  %vm1086_vm0 = vcmp.eq.s32.totalorder %v5046_v52, %v8653_v13  ;;  %vm1087_vm6 = vcmp.eq.s32.totalorder %v5052_v33, %v8653_v13  ;;  %vm1090_vm12 = vcmp.eq.s32.totalorder %v5046_v52, %v8654_v60 }
 0x1b0   : > { %v3586_v49 = vsel %vm1067_vm15, 1.0, %v8586_v10  ;;  %vm1091_vm10 = vcmp.eq.s32.totalorder %v5052_v33, %v8654_v60  ;;  %vm1070_vm5 = vcmp.eq.s32.totalorder %v5046_v52, %v8655_v36  ;;  %vm1071_vm2 = vcmp.eq.s32.totalorder %v5052_v33, %v8655_v36 }
 0x1b1   : > { %v6019_v11 = vadd.f32 %v3600_v47, %v1001_v46  ;;  %v6022_v8 = vadd.f32 %v3603_v57, %v5839_v48  ;;  %v6025_v9 = vadd.f32 %v3604_v40, %v5849_v51  ;;  %vm1236_vm4 = vcmp.eq.s32.totalorder %v5046_v52, %v5252_v24 }
 0x1b2   : > { %1788 = vperm.xlu2 %4165, %v5978_v42   ;;  %v6010_v22 = vpop.permute.xlu2 %1407  ;;  %v6033_v3 = vadd.f32 %v3585_v41, %v5628_v58  ;;  %v3605_v46 = vsel %vm1086_vm0, 1.0, %v8586_v10  ;;  %v3606_v48 = vsel %vm1087_vm6, 1.0, %v8586_v10  ;;  %v3609_v51 = vsel %vm1090_vm12, 1.0, %v8586_v10 }
 0x1b3   : > { %1785 = vperm.xlu1 %4164, %v5814_v45   ;;  %v6030_v25 = vpop.permute.xlu1 %1377  ;;  %v6048_v47 = vadd.f32 %v3586_v49, %v5630_v38  ;;  %v3610_v58 = vsel %vm1091_vm10, 1.0, %v8586_v10  ;;  %v3589_v57 = vsel %vm1070_vm5, 1.0, %v8586_v10  ;;  %v3590_v40 = vsel %vm1071_vm2, 1.0, %v8586_v10 }
 0x1b4   : > { %8656 = vst [vmem:[#allocation75_spill] sm:$0xff] %v6030_v25  ;;  %vm1237_vm14 = vcmp.eq.s32.totalorder %v5052_v33, %v5252_v24  ;;  %v3611_v41 = vsel %vm1236_vm4, 1.0, %v8586_v10  ;;  %vm1240_vm11 = vcmp.eq.s32.totalorder %v5046_v52, %v5284_v21  ;;  %vm1241_vm9 = vcmp.eq.s32.totalorder %v5052_v33, %v5284_v21  ;;  %v8667_v25 = vld [vmem:[#allocation62_spill] sm:$0xff] }
 0x1b5   : > { %8657 = vst [vmem:[#allocation9_spill] sm:$0xff] %v6048_v47  ;;  %v6062_v38 = vadd.f32 %v3605_v46, %v1006_v53  ;;  %v6064_v60 = vadd.f32 %v3606_v48, %v1007_v17  ;;  %v6067_v49 = vadd.f32 %v3609_v51, %v5897_v62  ;;  %vm1076_vm7 = vcmp.eq.s32.totalorder %v5046_v52, %v5295_v37 }
 0x1b6   : > { %v6060_v13 = vpop.permute.xlu0 %1562  ;;  %v6073_v24 = vadd.f32 %v3610_v58, %v5900_v35  ;;  %v1166_v36 = vadd.f32 %v3589_v57, %v5669_v59  ;;  %v1167_v21 = vadd.f32 %v3590_v40, %v5672_v2  ;;  %vm1077_vm13 = vcmp.eq.s32.totalorder %v5052_v33, %v5295_v37 }
 0x1b7   : > { %2122 = vperm.xlu0 %4171, %v5846_v16   ;;  %v3612_v53 = vsel %vm1237_vm14, 1.0, %v8586_v10  ;;  %v6080_v17 = vadd.f32 %v3611_v41, %v1156_v20  ;;  %v3615_v62 = vsel %vm1240_vm11, 1.0, %v8586_v10  ;;  %v3616_v46 = vsel %vm1241_vm9, 1.0, %v8586_v10 }
 0x1b8   : > { %v8658_v48 = vmov 9   ;;  %v3595_v35 = vsel %vm1076_vm7, 1.0, %v8586_v10  ;;  %vm1246_vm3 = vcmp.eq.s32.totalorder %v5046_v52, %v5331_v32  ;;  %vm1247_vm1 = vcmp.eq.s32.totalorder %v5052_v33, %v5331_v32 }
 0x1b9   : > { %vm1082_vm8 = vcmp.eq.s32.totalorder %v5046_v52, %v5369_v43  ;;  %v3596_v59 = vsel %vm1077_vm13, 1.0, %v8586_v10  ;;  %vm1083_vm15 = vcmp.eq.s32.totalorder %v5052_v33, %v5369_v43  ;;  %vm1252_vm0 = vcmp.eq.s32.totalorder %v5046_v52, %v5397_v63 }
 0x1ba   : > { %4166 = vset.pattern.permute.xlu2 %v8658_v48  ;;  %vm1253_vm6 = vcmp.eq.s32.totalorder %v5052_v33, %v5397_v63  ;;  %v6105_v20 = vadd.f32 %v3612_v53, %v1157_v39  ;;  %v6108_v51 = vadd.f32 %v3615_v62, %v5917_v27  ;;  %v6111_v58 = vadd.f32 %v3616_v46, %v5919_v61 }
 0x1bb   : > { %v6092_v37 = vpop.permute.xlu2 %1544  ;;  %1925 = vperm.xlu2 %4166, %v5234_v18   ;;  %1794 = vperm.xlu1 %4164, %v5888_v14   ;;  %v6103_v2 = vpop.permute.xlu1 %1386  ;;  %vm1250_vm12 = vcmp.eq.s32.totalorder %v5046_v52, %v5428_v31  ;;  %v1172_v57 = vadd.f32 %v3595_v35, %v5727_v30  ;;  %v3621_v63 = vsel %vm1246_vm3, 1.0, %v8586_v10  ;;  %v3622_v39 = vsel %vm1247_vm1, 1.0, %v8586_v10 }
 0x1bc   : > { %v3601_v27 = vsel %vm1082_vm8, 1.0, %v8586_v10  ;;  %v1173_v61 = vadd.f32 %v3596_v59, %v5730_v7  ;;  %v3602_v40 = vsel %vm1083_vm15, 1.0, %v8586_v10  ;;  %v3627_v30 = vsel %vm1252_vm0, 1.0, %v8586_v10 }
 0x1bd   : > { %v3628_v41 = vsel %vm1253_vm6, 1.0, %v8586_v10  ;;  %vm1088_vm10 = vcmp.eq.s32.totalorder %v5046_v52, %v5436_v26  ;;  %vm1089_vm5 = vcmp.eq.s32.totalorder %v5052_v33, %v5436_v26  ;;  %vm1251_vm2 = vcmp.eq.s32.totalorder %v5052_v33, %v5428_v31 }
 0x1be   : > { %v6132_v53 = vpop.permute.xlu0 %1571  ;;  %v3625_v32 = vsel %vm1250_vm12, 1.0, %v8586_v10  ;;  %v6142_v43 = vadd.f32 %v3621_v63, %v1166_v36  ;;  %v6144_v7 = vadd.f32 %v3622_v39, %v1167_v21  ;;  %v1178_v62 = vadd.f32 %v3601_v27, %v5772_v34  ;;  %v8662_v39 = vld [vmem:[#allocation98_spill] sm:$0xff] }
 0x1bf   : > { %2131 = vperm.xlu0 %4171, %v5914_v15   ;;  %vm1258_vm4 = vcmp.eq.s32.totalorder %v5046_v52, %v5461_v1  ;;  %v1179_v46 = vadd.f32 %v3602_v40, %v5780_v5  ;;  %v6150_v35 = vadd.f32 %v3627_v30, %v1172_v57  ;;  %v6152_v26 = vadd.f32 %v3628_v41, %v1173_v61  ;;  %v8660_v57 = vld [vmem:[#allocation23_spill] sm:$0xff]  ;;  %v8663_v40 = vld [vmem:[#allocation61_spill] sm:$0xff] }
 0x1c0   : > { %vm1259_vm14 = vcmp.eq.s32.totalorder %v5052_v33, %v5461_v1  ;;  %v3607_v31 = vsel %vm1088_vm10, 1.0, %v8586_v10  ;;  %v3608_v36 = vsel %vm1089_vm5, 1.0, %v8586_v10  ;;  %v3626_v21 = vsel %vm1251_vm2, 1.0, %v8586_v10  ;;  %v8661_v1 = vld [vmem:[#allocation59_spill] sm:$0xff] }
 0x1c1   : > { %v6160_v34 = vadd.f32 %v3625_v32, %v5954_v12  ;;  %v3633_v5 = vsel %vm1258_vm4, 1.0, %v8586_v10  ;;  %vm1256_vm11 = vcmp.eq.s32.totalorder %v5046_v52, %v8660_v57  ;;  %vm1257_vm9 = vcmp.eq.s32.totalorder %v5052_v33, %v8660_v57 }
 0x1c2   : > { %vm1238_vm7 = vcmp.eq.s32.totalorder %v5046_v52, %v8661_v1  ;;  %v3634_v12 = vsel %vm1259_vm14, 1.0, %v8586_v10  ;;  %vm1239_vm13 = vcmp.eq.s32.totalorder %v5052_v33, %v8661_v1  ;;  %vm1264_vm3 = vcmp.eq.s32.totalorder %v5046_v52, %v8662_v39 }
 0x1c3   : > { %v6162_v59 = vpop.permute.xlu2 %1553  ;;  %1934 = vperm.xlu2 %4166, %v5787_v56   ;;  %4168 = vset.pattern.permute.xlu1 %v8658_v48  ;;  %v6173_v63 = vpop.permute.xlu1 %1395  ;;  %vm1265_vm1 = vcmp.eq.s32.totalorder %v5052_v33, %v8662_v39  ;;  %v1184_v27 = vadd.f32 %v3607_v31, %v5828_v44  ;;  %v1185_v61 = vadd.f32 %v3608_v36, %v5831_v29  ;;  %v3631_v41 = vsel %vm1256_vm11, 1.0, %v8586_v10  ;;  %v8664_v31 = vld [vmem:[#allocation65_spill] sm:$0xff]  ;;  %v8666_v39 = vld [vmem:[#allocation70_spill] sm:$0xff] }
 0x1c4   : > { %8659 = vst [vmem:[#allocation76_spill] sm:$0xff] %v6162_v59  ;;  %1931 = vperm.xlu1 %4168, %v5689_v50   ;;  %v6186_v48 = vadd.f32 %v3626_v21, %v5966_v23  ;;  %vm1262_vm8 = vcmp.eq.s32.totalorder %v5046_v52, %v8663_v40  ;;  %v6190_v30 = vadd.f32 %v3633_v5, %v1178_v62  ;;  %v3632_v32 = vsel %vm1257_vm9, 1.0, %v8586_v10  ;;  %v8665_v5 = vld [vmem:[#allocation7_spill] sm:$0xff] }
 0x1c5   : > { %v3613_v57 = vsel %vm1238_vm7, 1.0, %v8586_v10  ;;  %v6197_v50 = vadd.f32 %v3634_v12, %v1179_v46  ;;  %v3614_v44 = vsel %vm1239_vm13, 1.0, %v8586_v10  ;;  %v3639_v29 = vsel %vm1264_vm3, 1.0, %v8586_v10 }
 0x1c6   : > { %v6195_v1 = vpop.permute.xlu0 %1580  ;;  %v3640_v23 = vsel %vm1265_vm1, 1.0, %v8586_v10  ;;  %vm1263_vm15 = vcmp.eq.s32.totalorder %v5052_v33, %v8663_v40  ;;  %v3637_v62 = vsel %vm1262_vm8, 1.0, %v8586_v10  ;;  %vm1254_vm0 = vcmp.eq.s32.totalorder %v5046_v52, %v8664_v31 }
 0x1c7   : > { %2140 = vperm.xlu0 %4171, %v5978_v42   ;;  %vm1255_vm6 = vcmp.eq.s32.totalorder %v5052_v33, %v8664_v31  ;;  %v6211_v46 = vadd.f32 %v3631_v41, %v5992_v55  ;;  %v6214_v36 = vadd.f32 %v3632_v32, %v6019_v11  ;;  %v1334_v21 = vadd.f32 %v3613_v57, %v5858_v54  ;;  %v8669_v55 = vld [vmem:[#allocation106_spill] sm:$0xff]  ;;  %v8671_v57 = vld [vmem:[#allocation45_spill] sm:$0xff] }
 0x1c8   : > { %v2276_v12 = vadd.s32 169, %v8665_v5  ;;  %v6219_v40 = vadd.f32 %v3614_v44, %v8666_v39  ;;  %v6221_v19 = vadd.f32 %v3639_v29, %v1184_v27  ;;  %v6223_v59 = vadd.f32 %v3640_v23, %v1185_v61  ;;  %v8670_v61 = vld [vmem:[#allocation67_spill] sm:$0xff]  ;;  %v8676_v39 = vld [vmem:[#allocation53_spill] sm:$0xff] }
 0x1c9   : > { %vm1242_vm12 = vcmp.eq.s32.totalorder %v5046_v52, %v8667_v25  ;;  %v3638_v11 = vsel %vm1263_vm15, 1.0, %v8586_v10  ;;  %v6232_v54 = vadd.f32 %v3637_v62, %v6062_v38  ;;  %v3629_v41 = vsel %vm1254_vm0, 1.0, %v8586_v10  ;;  %v8672_v44 = vld [vmem:[#allocation63_spill] sm:$0xff] }
 0x1ca   : > { %v3630_v32 = vsel %vm1255_vm6, 1.0, %v8586_v10  ;;  %vm1243_vm10 = vcmp.eq.s32.totalorder %v5052_v33, %v8667_v25  ;;  %vm1430_vm5 = vcmp.eq.s32.totalorder %v5046_v52, %v8670_v61  ;;  %vm1431_vm2 = vcmp.eq.s32.totalorder %v5052_v33, %v8670_v61  ;;  %v8673_v29 = vld [vmem:[#allocation35_spill] sm:$0xff] }
 0x1cb   : > { %v6227_v31 = vpop.permute.xlu2 %1559  ;;  %1940 = vperm.xlu2 %4166, %v8669_v55   ;;  %v6236_v27 = vpop.permute.xlu1 %1404  ;;  %v3617_v38 = vsel %vm1242_vm12, 1.0, %v8586_v10  ;;  %vm1414_vm4 = vcmp.eq.s32.totalorder %v5046_v52, %v8672_v44  ;;  %vm1415_vm14 = vcmp.eq.s32.totalorder %v5052_v33, %v8672_v44  ;;  %vm8674_vm11 = vnez %v8673_v29 }
 0x1cc   : > { %8668 = vst [vmem:[#allocation77_spill] sm:$0xff] %v6227_v31  ;;  %1937 = vperm.xlu1 %4168, %v8671_v57   ;;  %v6252_v23 = vsel %vm8674_vm11, %v2276_v12, 4294967295  ;;  %v6255_v25 = vadd.f32 %v3638_v11, %v6064_v60  ;;  %v1350_v62 = vadd.f32 %v3629_v41, %v5969_v6  ;;  %v1351_v5 = vadd.f32 %v3630_v32, %v5981_v4  ;;  %v8680_v41 = vld [vmem:[#allocation48_spill] sm:$0xff]  ;;  %v8681_v32 = vld [vmem:[#allocation29_spill] sm:$0xff] }
 0x1cd   : > { %8675 = vst [vmem:[#allocation78_spill] sm:$0xff] %v6252_v23  ;;  %vm1260_vm9 = vcmp.eq.s32.totalorder %v5046_v52, %v8676_v39  ;;  %v6262_v61 = vsel %vm1243_vm10, 1.0, %v8586_v10  ;;  %v3661_v14 = vsel %vm1430_vm5, 1.0, %v8586_v10  ;;  %v3662_v44 = vsel %vm1431_vm2, 1.0, %v8586_v10 }
 0x1ce   : > { %8677 = vst [vmem:[#allocation26_spill] sm:$0xff] %v6262_v61  ;;  %vm1261_vm7 = vcmp.eq.s32.totalorder %v5052_v33, %v8676_v39  ;;  %v8318_v12 = vmov 11   ;;  %v6272_v4 = vadd.f32 %v3617_v38, %v6033_v3  ;;  %v3645_v6 = vsel %vm1414_vm4, 1.0, %v8586_v10  ;;  %v8682_v39 = vld [vmem:[#allocation10_spill] sm:$0xff]  ;;  %v8683_v61 = vld [vmem:[#allocation68_spill] sm:$0xff] }
 0x1cf   : > { %4172 = vset.pattern.permute.xlu0 %v8318_v12  ;;  %v6269_v60 = vpop.permute.xlu0 %1749  ;;  %v3646_v11 = vsel %vm1415_vm14, 1.0, %v8586_v10  ;;  %vm1412_vm13 = vcmp.eq.s32.totalorder %v5046_v52, %v8680_v41  ;;  %vm1248_vm3 = vcmp.eq.s32.totalorder %v5046_v52, %v8681_v32  ;;  %vm1413_vm1 = vcmp.eq.s32.totalorder %v5052_v33, %v8680_v41  ;;  %v8694_v41 = vld [vmem:[#allocation58_spill] sm:$0xff] }
 0x1d0   : > { %8678 = vst [vmem:[#allocation79_spill] sm:$0xff] %v6269_v60  ;;  %2309 = vperm.xlu0 %4172, %v6252_v23   ;;  %v3635_v29 = vsel %vm1260_vm9, 1.0, %v8586_v10  ;;  %v2281_v3 = vadd.s32 169, %v8682_v39  ;;  %v1526_v38 = vadd.f32 %v3661_v14, %v1350_v62  ;;  %v1527_v12 = vadd.f32 %v3662_v44, %v1351_v5  ;;  %v8684_v60 = vld [vmem:[#allocation108_spill] sm:$0xff]  ;;  %v8685_v23 = vld [vmem:[#allocation69_spill] sm:$0xff]  ;;  %v8686_v62 = vld [vmem:[#allocation50_spill] sm:$0xff] }
 0x1d1   : > { %8679 = vst [vmem:[#allocation8_spill] sm:$0xff] %v6272_v4  ;;  %v3636_v4 = vsel %vm1261_vm7, 1.0, %v8586_v10  ;;  %vm1422_vm8 = vcmp.eq.s32.totalorder %v5046_v52, %v8683_v61  ;;  %vm1436_vm15 = vcmp.eq.s32.totalorder %v5046_v52, %v8685_v23  ;;  %vm1437_vm0 = vcmp.eq.s32.totalorder %v5052_v33, %v8685_v23 }
 0x1d2   : > { %v1356_v14 = vadd.f32 %v3635_v29, %v6022_v8  ;;  %vm1266_vm10 = vcmp.eq.s32.totalorder %v5046_v52, %v8686_v62  ;;  %v1357_v45 = vadd.f32 %v3636_v4, %v6025_v9  ;;  %v6312_v29 = vadd.f32 %v3645_v6, %v1334_v21 }
 0x1d3   : > { %v1569_v47 = vpop.permute.xlu2 %1568  ;;  %1949 = vperm.xlu2 %4166, %v8684_v60   ;;  %vm1423_vm2 = vcmp.eq.s32.totalorder %v5052_v33, %v8683_v61  ;;  %v3668_v9 = vsel %vm1437_vm0, 1.0, %v8586_v10  ;;  %vm1249_vm4 = vcmp.eq.s32.totalorder %v5052_v33, %v8681_v32  ;;  %vm1267_vm14 = vcmp.eq.s32.totalorder %v5052_v33, %v8686_v62 }
 0x1d4   : > { %vm1606_vm6 = vcmp.eq.s32.totalorder %v5046_v52, %v1569_v47  ;;  %vm1607_vm12 = vcmp.eq.s32.totalorder %v5052_v33, %v1569_v47  ;;  %1946 = vperm.xlu1 %4168, %v5846_v16   ;;  %v6301_v39 = vpop.permute.xlu1 %1541  ;;  %v8689_v47 = vld [vmem:[#allocation42_spill] sm:$0xff]  ;;  %v3667_v16 = vsel %vm1436_vm15, 1.0, %v8586_v10  ;;  %v3641_v21 = vsel %vm1266_vm10, 1.0, %v8586_v10 }
 0x1d5   : > { %v3693_v5 = vsel %vm1606_vm6, 1.0, %v8586_v10  ;;  %v3694_v44 = vsel %vm1607_vm12, 1.0, %v8586_v10  ;;  %vm8690_vm5 = vnez %v8689_v47  ;;  %v6341_v23 = vsel %vm1248_vm3, 1.0, %v8586_v10 }
 0x1d6   : > { %v6304_v31 = vadd.f32 %v3693_v5, %v1526_v38  ;;  %v6306_v60 = vadd.f32 %v3694_v44, %v1527_v12  ;;  %v6310_v8 = vsel %vm8690_vm5, %v2281_v3, 4294967295  ;;  %v6325_v12 = vadd.f32 %v3646_v11, %v6219_v40  ;;  %v8692_v5 = vld [vmem:[#allocation15_spill] sm:$0xff] }
 0x1d7   : > { %8691 = vst [vmem:[#allocation13_spill] sm:$0xff] %v6310_v8  ;;  %v6335_v4 = vpop.permute.xlu0 %1764  ;;  %v3643_v40 = vsel %vm1412_vm13, 1.0, %v8586_v10  ;;  %v3644_v6 = vsel %vm1413_vm1, 1.0, %v8586_v10  ;;  %v3653_v11 = vsel %vm1422_vm8, 1.0, %v8586_v10  ;;  %v3654_v3 = vsel %vm1423_vm2, 1.0, %v8586_v10 }
 0x1d8   : > { %8687 = vst [vmem:[#allocation80_spill] sm:$0xff] %v6304_v31  ;;  %2324 = vperm.xlu0 %4172, %v6310_v8   ;;  %v1532_v38 = vadd.f32 %v3667_v16, %v1356_v14  ;;  %v1533_v62 = vadd.f32 %v3668_v9, %v1357_v45  ;;  %v2284_v44 = vadd.s32 169, %v8692_v5  ;;  %v3642_v47 = vsel %vm1267_vm14, 1.0, %v8586_v10  ;;  %v8693_v31 = vld [vmem:[#allocation71_spill] sm:$0xff]  ;;  %v8695_v45 = vld [vmem:[#allocation74_spill] sm:$0xff] }
 0x1d9   : > { %8688 = vst [vmem:[#allocation82_spill] sm:$0xff] %v6306_v60  ;;  %v1362_v60 = vadd.f32 %v3641_v21, %v6067_v49  ;;  %vm1428_vm11 = vcmp.eq.s32.totalorder %v5046_v52, %v8693_v31  ;;  %vm1429_vm9 = vcmp.eq.s32.totalorder %v5052_v33, %v8693_v31  ;;  %vm1442_vm7 = vcmp.eq.s32.totalorder %v5046_v52, %v5905_v28 }
 0x1da   : > { %vm1443_vm13 = vcmp.eq.s32.totalorder %v5052_v33, %v5905_v28  ;;  %vm1416_vm8 = vcmp.eq.s32.totalorder %v5046_v52, %v8695_v45  ;;  %vm1417_vm15 = vcmp.eq.s32.totalorder %v5052_v33, %v8695_v45  ;;  %v1363_v9 = vadd.f32 %v3642_v47, %v6073_v24 }
 0x1db   : > { %v1578_v61 = vpop.permute.xlu2 %1577  ;;  %1958 = vperm.xlu2 %4166, %v8694_v41   ;;  %v6393_v41 = vsel %vm1249_vm4, 1.0, %v8586_v10  ;;  %v3673_v24 = vsel %vm1442_vm7, 1.0, %v8586_v10  ;;  %v1518_v32 = vadd.f32 %v3653_v11, %v6142_v43  ;;  %v1519_v28 = vadd.f32 %v3654_v3, %v6144_v7 }
 0x1dc   : > { %vm1612_vm3 = vcmp.eq.s32.totalorder %v5046_v52, %v1578_v61  ;;  %vm1613_vm1 = vcmp.eq.s32.totalorder %v5052_v33, %v1578_v61  ;;  %1955 = vperm.xlu1 %4168, %v5914_v15   ;;  %v6378_v16 = vpop.permute.xlu1 %1550  ;;  %v8696_v61 = vld [vmem:[#allocation46_spill] sm:$0xff]  ;;  %v6396_v15 = vadd.f32 %v3643_v40, %v6080_v17  ;;  %v3647_v17 = vsel %vm1416_vm8, 1.0, %v8586_v10 }
 0x1dd   : > { %v3699_v49 = vsel %vm1612_vm3, 1.0, %v8586_v10  ;;  %v3700_v14 = vsel %vm1613_vm1, 1.0, %v8586_v10  ;;  %vm8697_vm0 = vnez %v8696_v61  ;;  %v3648_v40 = vsel %vm1417_vm15, 1.0, %v8586_v10  ;;  %v8701_v61 = vld [vmem:[#allocation51_spill] sm:$0xff] }
 0x1de   : > { %v6381_v21 = vadd.f32 %v3699_v49, %v1532_v38  ;;  %v6383_v5 = vadd.f32 %v3700_v14, %v1533_v62  ;;  %v6387_v8 = vsel %vm8697_vm0, %v2284_v44, 4294967295  ;;  %v3674_v38 = vsel %vm1443_vm13, 1.0, %v8586_v10  ;;  %v8699_v49 = vld [vmem:[#allocation56_spill] sm:$0xff] }
 0x1df   : > { %v6407_v62 = vadd.f32 %v3644_v6, %v6105_v20  ;;  %v6418_v44 = vpop.permute.xlu0 %1773  ;;  %v3659_v20 = vsel %vm1428_vm11, 1.0, %v8586_v10  ;;  %v3660_v43 = vsel %vm1429_vm9, 1.0, %v8586_v10  ;;  %v8698_v6 = vld [vmem:[#allocation19_spill] sm:$0xff]  ;;  %v1538_v47 = vadd.f32 %v3673_v24, %v1362_v60  ;;  %v8700_v14 = vld [vmem:[#allocation60_spill] sm:$0xff] }
 0x1e0   : > { %2333 = vperm.xlu0 %4172, %v6387_v8   ;;  %v2287_v11 = vadd.s32 169, %v8698_v6  ;;  %v1539_v45 = vadd.f32 %v3674_v38, %v1363_v9  ;;  %vm1434_vm6 = vcmp.eq.s32.totalorder %v5046_v52, %v8699_v49  ;;  %vm1592_vm12 = vcmp.eq.s32.totalorder %v5046_v52, %v5974_v0 }
 0x1e1   : > { %vm1435_vm10 = vcmp.eq.s32.totalorder %v5052_v33, %v8699_v49  ;;  %v1512_v7 = vadd.f32 %v3647_v17, %v6108_v51  ;;  %v1513_v31 = vadd.f32 %v3648_v40, %v6111_v58  ;;  %vm1593_vm5 = vcmp.eq.s32.totalorder %v5052_v33, %v5974_v0  ;;  %v8710_v49 = vld [vmem:[#allocation54_spill] sm:$0xff] }
 0x1e2   : > { %vm1806_vm2 = vcmp.eq.s32.totalorder %v5046_v52, %v6335_v4  ;;  %vm1807_vm4 = vcmp.eq.s32.totalorder %v5052_v33, %v6335_v4  ;;  %v3679_v51 = vsel %vm1592_vm12, 1.0, %v8586_v10  ;;  %vm8702_vm9 = vnez %v8701_v61 }
 0x1e3   : > { %v1587_v3 = vpop.permute.xlu2 %1586  ;;  %1967 = vperm.xlu2 %4166, %v8700_v14   ;;  %v6454_v24 = vsel %vm8702_vm9, %v2287_v11, 4294967295  ;;  %v3717_v17 = vsel %vm1806_vm2, 1.0, %v8586_v10  ;;  %v3718_v40 = vsel %vm1807_vm4, 1.0, %v8586_v10  ;;  %v3680_v11 = vsel %vm1593_vm5, 1.0, %v8586_v10 }
 0x1e4   : > { %vm1618_vm14 = vcmp.eq.s32.totalorder %v5046_v52, %v1587_v3  ;;  %vm1619_vm11 = vcmp.eq.s32.totalorder %v5052_v33, %v1587_v3  ;;  %1964 = vperm.xlu1 %4168, %v5978_v42   ;;  %v1557_v9 = vpop.permute.xlu1 %1556  ;;  %8703 = vst [vmem:[#allocation83_spill] sm:$0xff] %v6454_v24  ;;  %vm1440_vm3 = vcmp.eq.s32.totalorder %v5046_v52, %v6010_v22  ;;  %v3665_v0 = vsel %vm1434_vm6, 1.0, %v8586_v10 }
 0x1e5   : > { %v3705_v58 = vsel %vm1618_vm14, 1.0, %v8586_v10  ;;  %v3706_v60 = vsel %vm1619_vm11, 1.0, %v8586_v10  ;;  %vm1598_vm7 = vcmp.eq.s32.totalorder %v5046_v52, %v1557_v9  ;;  %vm1599_vm13 = vcmp.eq.s32.totalorder %v5052_v33, %v1557_v9  ;;  %v8707_v9 = vld [vmem:[#allocation73_spill] sm:$0xff] }
 0x1e6   : > { %v6456_v38 = vadd.f32 %v3705_v58, %v1538_v47  ;;  %v6458_v4 = vadd.f32 %v3706_v60, %v1539_v45  ;;  %v3685_v6 = vsel %vm1598_vm7, 1.0, %v8586_v10  ;;  %v3686_v42 = vsel %vm1599_vm13, 1.0, %v8586_v10  ;;  %v8706_v58 = vld [vmem:[#allocation25_spill] sm:$0xff] }
 0x1e7   : > { %v1694_v47 = vadd.f32 %v3685_v6, %v1518_v32  ;;  %v1695_v45 = vadd.f32 %v3686_v42, %v1519_v28  ;;  %v6470_v3 = vpop.permute.xlu0 %1782  ;;  %v2290_v60 = vadd.s32 169, %v8706_v58  ;;  %v6475_v61 = vadd.f32 %v6341_v23, %v8707_v9 }
 0x1e8   : > { %8704 = vst [vmem:[#allocation84_spill] sm:$0xff] %v6456_v38  ;;  %v1525_v38 = vadd.f32 %v3660_v43, %v6152_v26  ;;  %2342 = vperm.xlu0 %4172, %v6454_v24   ;;  %vm1812_vm1 = vcmp.eq.s32.totalorder %v5046_v52, %v6418_v44  ;;  %v1688_v26 = vadd.f32 %v3679_v51, %v1512_v7  ;;  %v3671_v43 = vsel %vm1440_vm3, 1.0, %v8586_v10 }
 0x1e9   : > { %8705 = vst [vmem:[#allocation31_spill] sm:$0xff] %v6458_v4  ;;  %v1524_v4 = vadd.f32 %v3659_v20, %v6150_v35  ;;  %v6488_v32 = vadd.f32 %v3717_v17, %v1694_v47  ;;  %v6490_v23 = vadd.f32 %v3718_v40, %v1695_v45  ;;  %v3666_v35 = vsel %vm1435_vm10, 1.0, %v8586_v10  ;;  %v8709_v40 = vld [vmem:[#allocation41_spill] sm:$0xff] }
 0x1ea   : > { %v1689_v28 = vadd.f32 %v3680_v11, %v1513_v31  ;;  %vm1441_vm8 = vcmp.eq.s32.totalorder %v5052_v33, %v6010_v22  ;;  %v8708_v20 = vmov 10   ;;  %vm1426_vm15 = vcmp.eq.s32.totalorder %v5046_v52, %v6103_v2 }
 0x1eb   : > { %4170 = vset.pattern.permute.xlu2 %v8708_v20  ;;  %vm1427_vm0 = vcmp.eq.s32.totalorder %v5052_v33, %v6103_v2  ;;  %vm8711_vm6 = vnez %v8710_v49  ;;  %vm1813_vm12 = vcmp.eq.s32.totalorder %v5052_v33, %v6418_v44  ;;  %v3723_v31 = vsel %vm1812_vm1, 1.0, %v8586_v10 }
 0x1ec   : > { %v1756_v17 = vpop.permute.xlu2 %1755  ;;  %2104 = vperm.xlu2 %4170, %v8709_v40   ;;  %v6507_v7 = vsel %vm8711_vm6, %v2290_v60, 4294967295  ;;  %4169 = vset.pattern.permute.xlu1 %v8708_v20  ;;  %v1566_v51 = vpop.permute.xlu1 %1565  ;;  %vm1602_vm14 = vcmp.eq.s32.totalorder %v5046_v52, %v6060_v13  ;;  %v3724_v60 = vsel %vm1813_vm12, 1.0, %v8586_v10  ;;  %vm1603_vm11 = vcmp.eq.s32.totalorder %v5052_v33, %v6060_v13 }
 0x1ed   : > { %8712 = vst [vmem:[#allocation18_spill] sm:$0xff] %v6507_v7  ;;  %vm1800_vm10 = vcmp.eq.s32.totalorder %v5046_v52, %v1756_v17  ;;  %vm1801_vm5 = vcmp.eq.s32.totalorder %v5052_v33, %v1756_v17  ;;  %vm1604_vm2 = vcmp.eq.s32.totalorder %v5046_v52, %v1566_v51  ;;  %vm1605_vm4 = vcmp.eq.s32.totalorder %v5052_v33, %v1566_v51 }
 0x1ee   : > { %v3711_v6 = vsel %vm1800_vm10, 1.0, %v8586_v10  ;;  %v3712_v42 = vsel %vm1801_vm5, 1.0, %v8586_v10  ;;  %2101 = vperm.xlu1 %4169, %v5234_v18   ;;  %v3691_v11 = vsel %vm1604_vm2, 1.0, %v8586_v10  ;;  %v3692_v47 = vsel %vm1605_vm4, 1.0, %v8586_v10  ;;  %v8713_v18 = vld [vmem:[#allocation20_spill] sm:$0xff] }
 0x1ef   : > { %v6522_v45 = vadd.f32 %v3711_v6, %v1688_v26  ;;  %v6524_v58 = vadd.f32 %v3712_v42, %v1689_v28  ;;  %v1700_v9 = vadd.f32 %v3691_v11, %v1524_v4  ;;  %v1701_v20 = vadd.f32 %v3692_v47, %v1525_v38  ;;  %v6532_v17 = vpop.permute.xlu0 %1791  ;;  %v8714_v4 = vld [vmem:[#allocation12_spill] sm:$0xff]  ;;  %v8719_v47 = vld [vmem:[#allocation17_spill] sm:$0xff] }
 0x1f0   : > { %v6536_v40 = vadd.f32 %v6393_v41, %v8713_v18  ;;  %v1530_v26 = vadd.f32 %v3665_v0, %v6190_v30  ;;  %v1531_v28 = vadd.f32 %v3666_v35, %v6197_v50  ;;  %2351 = vperm.xlu0 %4172, %v6507_v7   ;;  %v3672_v44 = vsel %vm1441_vm8, 1.0, %v8586_v10 }
 0x1f1   : > { %v3657_v41 = vsel %vm1426_vm15, 1.0, %v8586_v10  ;;  %v3658_v30 = vsel %vm1427_vm0, 1.0, %v8586_v10  ;;  %v6555_v50 = vadd.f32 %v3723_v31, %v1700_v9  ;;  %v6558_v13 = vadd.f32 %v3671_v43, %v6221_v19  ;;  %v8715_v31 = vld [vmem:[#allocation64_spill] sm:$0xff] }
 0x1f2   : > { %v3689_v38 = vsel %vm1602_vm14, 1.0, %v8586_v10  ;;  %v2277_v22 = vadd.s32 169, %v8714_v4  ;;  %v6562_v0 = vadd.f32 %v3724_v60, %v1701_v20  ;;  %vm1590_vm9 = vcmp.eq.s32.totalorder %v5046_v52, %v6092_v37 }
 0x1f3   : > { %vm1591_vm7 = vcmp.eq.s32.totalorder %v5052_v33, %v6092_v37  ;;  %v3690_v2 = vsel %vm1603_vm11, 1.0, %v8586_v10  ;;  %vm1818_vm13 = vcmp.eq.s32.totalorder %v5046_v52, %v6470_v3  ;;  %v1522_v19 = vadd.f32 %v3657_v41, %v6160_v34 }
 0x1f4   : > { %v6571_v35 = vpop.permute.xlu2 %1761  ;;  %2113 = vperm.xlu2 %4170, %v8671_v57   ;;  %v1523_v43 = vadd.f32 %v3658_v30, %v6186_v48  ;;  %vm1432_vm3 = vcmp.eq.s32.totalorder %v5046_v52, %v6173_v63  ;;  %vm1819_vm1 = vcmp.eq.s32.totalorder %v5052_v33, %v6470_v3  ;;  %v1575_v49 = vpop.permute.xlu1 %1574  ;;  %vm1424_vm8 = vcmp.eq.s32.totalorder %v5046_v52, %v8715_v31  ;;  %v8716_v3 = vld [vmem:[#allocation34_spill] sm:$0xff] }
 0x1f5   : > { %vm1433_vm15 = vcmp.eq.s32.totalorder %v5052_v33, %v6173_v63  ;;  %vm1610_vm0 = vcmp.eq.s32.totalorder %v5046_v52, %v1575_v49  ;;  %vm1611_vm6 = vcmp.eq.s32.totalorder %v5052_v33, %v1575_v49  ;;  %vm1425_vm12 = vcmp.eq.s32.totalorder %v5052_v33, %v8715_v31  ;;  %v8720_v49 = vld [vmem:[#allocation101_spill] sm:$0xff] }
 0x1f6   : > { %2110 = vperm.xlu1 %4169, %v5787_v56   ;;  %v3729_v34 = vsel %vm1818_vm13, 1.0, %v8586_v10  ;;  %v3697_v48 = vsel %vm1610_vm0, 1.0, %v8586_v10  ;;  %v3698_v57 = vsel %vm1611_vm6, 1.0, %v8586_v10  ;;  %vm8717_vm10 = vnez %v8716_v3 }
 0x1f7   : > { %v6594_v51 = vsel %vm8717_vm10, %v2277_v22, 4294967295  ;;  %v3730_v6 = vsel %vm1819_vm1, 1.0, %v8586_v10  ;;  %v1706_v42 = vadd.f32 %v3697_v48, %v1530_v26  ;;  %v1707_v11 = vadd.f32 %v3698_v57, %v1531_v28  ;;  %v8721_v48 = vld [vmem:[#allocation36_spill] sm:$0xff] }
 0x1f8   : > { %8718 = vst [vmem:[#allocation85_spill] sm:$0xff] %v6594_v51  ;;  %v2282_v60 = vadd.s32 169, %v8719_v47  ;;  %v1537_v56 = vadd.f32 %v3672_v44, %v6223_v59  ;;  %v3677_v9 = vsel %vm1590_vm9, 1.0, %v8586_v10  ;;  %v3663_v20 = vsel %vm1432_vm3, 1.0, %v8586_v10  ;;  %v6612_v28 = vpop.permute.xlu0 %1928 }
 0x1f9   : > { %v3664_v18 = vsel %vm1433_vm15, 1.0, %v8586_v10  ;;  %v8329_v26 = vmov 12   ;;  %v3678_v59 = vsel %vm1591_vm7, 1.0, %v8586_v10  ;;  %vm1608_vm5 = vcmp.eq.s32.totalorder %v5046_v52, %v6132_v53 }
 0x1fa   : > { %4176 = vset.pattern.permute.xlu0 %v8329_v26  ;;  %vm1824_vm2 = vcmp.eq.s32.totalorder %v5046_v52, %v6532_v17  ;;  %v6623_v63 = vadd.f32 %v3729_v34, %v1706_v42  ;;  %v1698_v44 = vadd.f32 %v3689_v38, %v1522_v19  ;;  %v1699_v41 = vadd.f32 %v3690_v2, %v1523_v43  ;;  %v8770_v26 = vld [vmem:[#allocation107_spill] sm:$0xff] }
 0x1fb   : > { %2488 = vperm.xlu0 %4176, %v6594_v51   ;;  %vm1609_vm4 = vcmp.eq.s32.totalorder %v5052_v33, %v6132_v53  ;;  %v6627_v30 = vadd.f32 %v3730_v6, %v1707_v11  ;;  %v1528_v37 = vadd.f32 %v3663_v20, %v6211_v46  ;;  %v1529_v4 = vadd.f32 %v3664_v18, %v6214_v36  ;;  %v8724_v18 = vld [vmem:[#allocation22_spill] sm:$0xff] }
 0x1fc   : > { %vm1438_vm14 = vcmp.eq.s32.totalorder %v5046_v52, %v6236_v27  ;;  %v1771_v22 = vpop.permute.xlu2 %1770  ;;  %2119 = vperm.xlu2 %4170, %v8720_v49   ;;  %vm8722_vm11 = vnez %v8721_v48  ;;  %vm1825_vm9 = vcmp.eq.s32.totalorder %v5052_v33, %v6532_v17  ;;  %v3735_v38 = vsel %vm1824_vm2, 1.0, %v8586_v10  ;;  %v1584_v2 = vpop.permute.xlu1 %1583 }
 0x1fd   : > { %v6636_v34 = vsel %vm8722_vm11, %v2282_v60, 4294967295  ;;  %vm1810_vm7 = vcmp.eq.s32.totalorder %v5046_v52, %v1771_v22  ;;  %vm1811_vm13 = vcmp.eq.s32.totalorder %v5052_v33, %v1771_v22  ;;  %vm1616_vm3 = vcmp.eq.s32.totalorder %v5046_v52, %v1584_v2 }
 0x1fe   : > { %8723 = vst [vmem:[#allocation87_spill] sm:$0xff] %v6636_v34  ;;  %vm1617_vm1 = vcmp.eq.s32.totalorder %v5052_v33, %v1584_v2  ;;  %v3721_v46 = vsel %vm1810_vm7, 1.0, %v8586_v10  ;;  %v3722_v36 = vsel %vm1811_vm13, 1.0, %v8586_v10  ;;  %2116 = vperm.xlu1 %4169, %v8669_v55   ;;  %v3703_v19 = vsel %vm1616_vm3, 1.0, %v8586_v10 }
 0x1ff   : > { %v3704_v17 = vsel %vm1617_vm1, 1.0, %v8586_v10  ;;  %v6650_v43 = vadd.f32 %v3721_v46, %v1698_v44  ;;  %v6652_v57 = vadd.f32 %v3722_v36, %v1699_v41  ;;  %vm1439_vm15 = vcmp.eq.s32.totalorder %v5052_v33, %v6236_v27  ;;  %v8729_v46 = vld [vmem:[#allocation40_spill] sm:$0xff] }
 0x200   : > { %v3736_v3 = vsel %vm1825_vm9, 1.0, %v8586_v10  ;;  %v1712_v6 = vadd.f32 %v3703_v19, %v6558_v13  ;;  %v1713_v42 = vadd.f32 %v3704_v17, %v1537_v56  ;;  %v3655_v55 = vsel %vm1424_vm8, 1.0, %v8586_v10  ;;  %v6674_v60 = vpop.permute.xlu0 %1943 }
 0x201   : > { %v3695_v11 = vsel %vm1608_vm5, 1.0, %v8586_v10  ;;  %v3696_v47 = vsel %vm1609_vm4, 1.0, %v8586_v10  ;;  %v3669_v13 = vsel %vm1438_vm14, 1.0, %v8586_v10  ;;  %v6680_v56 = vsel %vm1425_vm12, 1.0, %v8586_v10 }
 0x202   : > { %v1686_v20 = vadd.f32 %v3677_v9, %v6312_v29  ;;  %v2285_v53 = vadd.s32 169, %v8724_v18  ;;  %v6685_v44 = vadd.f32 %v3735_v38, %v1712_v6  ;;  %v1687_v41 = vadd.f32 %v3678_v59, %v6325_v12  ;;  %v8725_v9 = vld [vmem:[#allocation66_spill] sm:$0xff]  ;;  %v8727_v38 = vld [vmem:[#allocation39_spill] sm:$0xff] }
 0x203   : > { %2503 = vperm.xlu0 %4176, %v6636_v34   ;;  %v3670_v27 = vsel %vm1439_vm15, 1.0, %v8586_v10  ;;  %vm1614_vm8 = vcmp.eq.s32.totalorder %v5046_v52, %v6195_v1  ;;  %v6691_v22 = vadd.f32 %v3736_v3, %v1713_v42  ;;  %v1704_v31 = vadd.f32 %v3695_v11, %v1528_v37  ;;  %v8726_v37 = vld [vmem:[#allocation108_spill] sm:$0xff] }
 0x204   : > { %v1705_v49 = vadd.f32 %v3696_v47, %v1529_v4  ;;  %v1534_v48 = vadd.f32 %v3669_v13, %v6232_v54  ;;  %vm1615_vm0 = vcmp.eq.s32.totalorder %v5052_v33, %v6195_v1  ;;  %v1780_v29 = vpop.permute.xlu2 %1779  ;;  %2128 = vperm.xlu2 %4170, %v8725_v9   ;;  %vm1974_vm6 = vcmp.eq.s32.totalorder %v5046_v52, %v6612_v28  ;;  %v8731_v1 = vld [vmem:[#allocation28_spill] sm:$0xff] }
 0x205   : > { %vm1975_vm12 = vcmp.eq.s32.totalorder %v5052_v33, %v6612_v28  ;;  %vm1816_vm10 = vcmp.eq.s32.totalorder %v5046_v52, %v1780_v29  ;;  %vm1817_vm5 = vcmp.eq.s32.totalorder %v5052_v33, %v1780_v29  ;;  %v1535_v12 = vadd.f32 %v3670_v27, %v6255_v25  ;;  %v1753_v4 = vpop.permute.xlu1 %1752 }
 0x206   : > { %v3727_v54 = vsel %vm1816_vm10, 1.0, %v8586_v10  ;;  %v3728_v59 = vsel %vm1817_vm5, 1.0, %v8586_v10  ;;  %2125 = vperm.xlu1 %4169, %v8726_v37   ;;  %vm8728_vm2 = vnez %v8727_v38  ;;  %vm477_vm4 = vcmp.eq.s32.totalorder %v5052_v33, %v8729_v46 }
 0x207   : > { %v6709_v2 = vsel %vm8728_vm2, %v2285_v53, 4294967295  ;;  %v6713_v28 = vadd.f32 %v3727_v54, %v1704_v31  ;;  %v6715_v36 = vadd.f32 %v3728_v59, %v1705_v49  ;;  %vm1798_vm14 = vcmp.eq.s32.totalorder %v5046_v52, %v1753_v4  ;;  %v8730_v53 = vld [vmem:[#allocation102_spill] sm:$0xff]  ;;  %v8734_v54 = vld [vmem:[#allocation79_spill] sm:$0xff] }
 0x208   : > { %vm1799_vm11 = vcmp.eq.s32.totalorder %v5052_v33, %v1753_v4  ;;  %v3741_v25 = vsel %vm1974_vm6, 1.0, %v8586_v10  ;;  %v3742_v19 = vsel %vm1975_vm12, 1.0, %v8586_v10  ;;  %v3709_v17 = vsel %vm1798_vm14, 1.0, %v8586_v10  ;;  %v6731_v13 = vpop.permute.xlu0 %1952  ;;  %v8733_v49 = vld [vmem:[#allocation14_spill] sm:$0xff] }
 0x209   : > { %v3710_v3 = vsel %vm1799_vm11, 1.0, %v8586_v10  ;;  %v3701_v6 = vsel %vm1614_vm8, 1.0, %v8586_v10  ;;  %v3702_v42 = vsel %vm1615_vm0, 1.0, %v8586_v10  ;;  %v1894_v11 = vadd.f32 %v3709_v17, %v1686_v20  ;;  %v8735_v59 = vld [vmem:[#allocation58_spill] sm:$0xff] }
 0x20a   : > { %v1895_v47 = vadd.f32 %v3710_v3, %v1687_v41  ;;  %v1520_v18 = vadd.f32 %v3655_v55, %v6475_v61  ;;  %vm1418_vm9 = vcmp.eq.s32.totalorder %v5046_v52, %v8730_v53  ;;  %vm1588_vm7 = vcmp.eq.s32.totalorder %v5046_v52, %v6301_v39  ;;  %v8732_v61 = vld [vmem:[#allocation77_spill] sm:$0xff] }
 0x20b   : > { %vm1589_vm13 = vcmp.eq.s32.totalorder %v5052_v33, %v6301_v39  ;;  %2512 = vperm.xlu0 %4176, %v6709_v2   ;;  %vm1419_vm3 = vcmp.eq.s32.totalorder %v5052_v33, %v8730_v53  ;;  %v2288_v20 = vadd.s32 169, %v8731_v1  ;;  %v6744_v41 = vadd.f32 %v3741_v25, %v1894_v11 }
 0x20c   : > { %v6746_v27 = vadd.f32 %v3742_v19, %v1895_v47  ;;  %vm1600_vm1 = vcmp.eq.s32.totalorder %v5046_v52, %v8732_v61  ;;  %vm1601_vm15 = vcmp.eq.s32.totalorder %v5052_v33, %v8732_v61  ;;  %v1710_v55 = vadd.f32 %v3701_v6, %v1534_v48  ;;  %v1789_v39 = vpop.permute.xlu2 %1788  ;;  %2137 = vperm.xlu2 %4170, %v8733_v49   ;;  %v8736_v19 = vld [vmem:[#allocation44_spill] sm:$0xff]  ;;  %v8741_v49 = vld [vmem:[#allocation26_spill] sm:$0xff] }
 0x20d   : > { %v1711_v31 = vadd.f32 %v3702_v42, %v1535_v12  ;;  %v3675_v29 = vsel %vm1588_vm7, 1.0, %v8586_v10  ;;  %v3676_v9 = vsel %vm1589_vm13, 1.0, %v8586_v10  ;;  %vm1822_vm8 = vcmp.eq.s32.totalorder %v5046_v52, %v1789_v39  ;;  %v1759_v37 = vpop.permute.xlu1 %1758 }
 0x20e   : > { %vm1823_vm0 = vcmp.eq.s32.totalorder %v5052_v33, %v1789_v39  ;;  %vm1796_vm6 = vcmp.eq.s32.totalorder %v5046_v52, %v8734_v54  ;;  %vm1797_vm12 = vcmp.eq.s32.totalorder %v5052_v33, %v8734_v54  ;;  %v3733_v48 = vsel %vm1822_vm8, 1.0, %v8586_v10  ;;  %2134 = vperm.xlu1 %4169, %v8735_v59  }
 0x20f   : > { %v3734_v12 = vsel %vm1823_vm0, 1.0, %v8586_v10  ;;  %v3649_v4 = vsel %vm1418_vm9, 1.0, %v8586_v10  ;;  %v6768_v38 = vadd.f32 %v3733_v48, %v1710_v55  ;;  %vm8737_vm10 = vnez %v8736_v19  ;;  %v8744_v19 = vld [vmem:[#allocation49_spill] sm:$0xff] }
 0x210   : > { %v6770_v25 = vadd.f32 %v3734_v12, %v1711_v31  ;;  %v6774_v17 = vsel %vm8737_vm10, %v2288_v20, 4294967295  ;;  %v3687_v3 = vsel %vm1600_vm1, 1.0, %v8586_v10  ;;  %v3688_v6 = vsel %vm1601_vm15, 1.0, %v8586_v10  ;;  %v6790_v55 = vpop.permute.xlu0 %1961  ;;  %v8739_v31 = vld [vmem:[#allocation32_spill] sm:$0xff] }
 0x211   : > { %8738 = vst [vmem:[#allocation88_spill] sm:$0xff] %v6774_v17  ;;  %v1684_v42 = vadd.f32 %v3675_v29, %v6396_v15  ;;  %v1685_v11 = vadd.f32 %v3676_v9, %v6407_v62  ;;  %v1521_v47 = vadd.f32 %v6680_v56, %v6536_v40  ;;  %v3707_v1 = vsel %vm1796_vm6, 1.0, %v8586_v10  ;;  %v8740_v15 = vld [vmem:[#allocation9_spill] sm:$0xff]  ;;  %v8742_v56 = vld [vmem:[#allocation8_spill] sm:$0xff] }
 0x212   : > { %v3708_v20 = vsel %vm1797_vm12, 1.0, %v8586_v10  ;;  %v2291_v39 = vadd.s32 169, %v8739_v31  ;;  %v6797_v61 = vsel %vm477_vm4, 1.0, %v8586_v10  ;;  %v1339_v62 = vadd.f32 %v8741_v49, %v8740_v15 }
 0x213   : > { %vm1984_vm5 = vcmp.eq.s32.totalorder %v5046_v52, %v6674_v60  ;;  %vm1985_vm2 = vcmp.eq.s32.totalorder %v5052_v33, %v6674_v60  ;;  %2521 = vperm.xlu0 %4176, %v6774_v17   ;;  %v3650_v40 = vsel %vm1419_vm3, 1.0, %v8586_v10  ;;  %v1514_v46 = vadd.f32 %v3649_v4, %v8742_v56  ;;  %v8743_v60 = vld [vmem:[#allocation72_spill] sm:$0xff] }
 0x214   : > { %v1696_v29 = vadd.f32 %v3687_v3, %v1520_v18  ;;  %v1697_v9 = vadd.f32 %v3688_v6, %v1521_v47  ;;  %v1892_v54 = vadd.f32 %v3707_v1, %v1684_v42  ;;  %v1893_v48 = vadd.f32 %v3708_v20, %v1685_v11  ;;  %2146 = vperm.xlu2 %4170, %v8743_v60   ;;  %v8747_v18 = vld [vmem:[#allocation6_spill] sm:$0xff] }
 0x215   : > { %vm1594_vm4 = vcmp.eq.s32.totalorder %v5046_v52, %v6378_v16  ;;  %vm1595_vm14 = vcmp.eq.s32.totalorder %v5052_v33, %v6378_v16  ;;  %v3751_v12 = vsel %vm1984_vm5, 1.0, %v8586_v10  ;;  %v3752_v59 = vsel %vm1985_vm2, 1.0, %v8586_v10  ;;  %v1926_v53 = vpop.permute.xlu2 %1925  ;;  %v1768_v6 = vpop.permute.xlu1 %1767 }
 0x216   : > { %vm8745_vm11 = vnez %v8744_v19  ;;  %v2278_v3 = vadd.s32 169, %v8747_v18  ;;  %vm1802_vm9 = vcmp.eq.s32.totalorder %v5046_v52, %v1759_v37  ;;  %vm1803_vm7 = vcmp.eq.s32.totalorder %v5052_v33, %v1759_v37  ;;  %2143 = vperm.xlu1 %4169, %v8700_v14   ;;  %v8752_v37 = vld [vmem:[#allocation5_spill] sm:$0xff] }
 0x217   : > { %v6820_v4 = vsel %vm8745_vm11, %v2291_v39, 4294967295  ;;  %vm1972_vm13 = vcmp.eq.s32.totalorder %v5046_v52, %v1926_v53  ;;  %vm1973_vm3 = vcmp.eq.s32.totalorder %v5052_v33, %v1926_v53  ;;  %vm1808_vm1 = vcmp.eq.s32.totalorder %v5046_v52, %v1768_v6 }
 0x218   : > { %8746 = vst [vmem:[#allocation89_spill] sm:$0xff] %v6820_v4  ;;  %vm1809_vm15 = vcmp.eq.s32.totalorder %v5052_v33, %v1768_v6  ;;  %v3739_v42 = vsel %vm1972_vm13, 1.0, %v8586_v10  ;;  %v3740_v11 = vsel %vm1973_vm3, 1.0, %v8586_v10  ;;  %v3719_v47 = vsel %vm1808_vm1, 1.0, %v8586_v10  ;;  %v6846_v56 = vpop.permute.xlu0 %1970 }
 0x219   : > { %v3720_v1 = vsel %vm1809_vm15, 1.0, %v8586_v10  ;;  %v6834_v20 = vadd.f32 %v3739_v42, %v1892_v54  ;;  %v6836_v14 = vadd.f32 %v3740_v11, %v1893_v48  ;;  %v3681_v31 = vsel %vm1594_vm4, 1.0, %v8586_v10  ;;  %v8748_v54 = vld [vmem:[#allocation38_spill] sm:$0xff] }
 0x21a   : > { %v3682_v39 = vsel %vm1595_vm14, 1.0, %v8586_v10  ;;  %v1904_v15 = vadd.f32 %v3719_v47, %v1696_v29  ;;  %v1905_v49 = vadd.f32 %v3720_v1, %v1697_v9  ;;  %v1515_v60 = vadd.f32 %v3650_v40, %v1339_v62  ;;  %v8750_v9 = vld [vmem:[#allocation57_spill] sm:$0xff] }
 0x21b   : > { %vm1990_vm8 = vcmp.eq.s32.totalorder %v5046_v52, %v6731_v13  ;;  %vm1991_vm0 = vcmp.eq.s32.totalorder %v5052_v33, %v6731_v13  ;;  %2530 = vperm.xlu0 %4176, %v6820_v4   ;;  %vm8749_vm6 = vnez %v8748_v54  ;;  %v3713_v16 = vsel %vm1802_vm9, 1.0, %v8586_v10  ;;  %v8755_v54 = vld [vmem:[#allocation94_spill] sm:$0xff] }
 0x21c   : > { %v6855_v48 = vsel %vm8749_vm6, %v2278_v3, 4294967295  ;;  %v3714_v62 = vsel %vm1803_vm7, 1.0, %v8586_v10  ;;  %v6863_v40 = vadd.f32 %v3751_v12, %v1904_v15  ;;  %v6865_v29 = vadd.f32 %v3752_v59, %v1905_v49  ;;  %v8753_v12 = vld [vmem:[#allocation11_spill] sm:$0xff] }
 0x21d   : > { %vm652_vm12 = vcmp.eq.s32.totalorder %v5046_v52, %v8750_v9  ;;  %v1690_v13 = vadd.f32 %v3681_v31, %v1514_v46  ;;  %v1691_v53 = vadd.f32 %v3682_v39, %v1515_v60  ;;  %v8751_v19 = vmov 11   ;;  %v1935_v6 = vpop.permute.xlu2 %1934  ;;  %v1777_v1 = vpop.permute.xlu1 %1776 }
 0x21e   : > { %4174 = vset.pattern.permute.xlu2 %v8751_v19  ;;  %v3757_v18 = vsel %vm1990_vm8, 1.0, %v8586_v10  ;;  %v3758_v3 = vsel %vm1991_vm0, 1.0, %v8586_v10  ;;  %v2280_v42 = vadd.s32 169, %v8752_v37  ;;  %v2279_v11 = vadd.s32 169, %v8753_v12  ;;  %4173 = vset.pattern.permute.xlu1 %v8751_v19  ;;  %v8758_v19 = vld [vmem:[#allocation82_spill] sm:$0xff]  ;;  %v8759_v12 = vld [vmem:[#allocation81_spill] sm:$0xff] }
 0x21f   : > { %2315 = vperm.xlu2 %4174, %v6855_v48   ;;  %v1898_v59 = vadd.f32 %v3713_v16, %v1690_v13  ;;  %v1899_v47 = vadd.f32 %v3714_v62, %v1691_v53  ;;  %vm1978_vm10 = vcmp.eq.s32.totalorder %v5046_v52, %v1935_v6  ;;  %vm1979_vm5 = vcmp.eq.s32.totalorder %v5052_v33, %v1935_v6  ;;  %v8756_v16 = vld [vmem:[#allocation103_spill] sm:$0xff]  ;;  %v8757_v13 = vld [vmem:[#allocation80_spill] sm:$0xff] }
 0x220   : > { %vm1814_vm2 = vcmp.eq.s32.totalorder %v5046_v52, %v1777_v1  ;;  %vm1815_vm4 = vcmp.eq.s32.totalorder %v5052_v33, %v1777_v1  ;;  %v3745_v46 = vsel %vm1978_vm10, 1.0, %v8586_v10  ;;  %v3746_v31 = vsel %vm1979_vm5, 1.0, %v8586_v10  ;;  %2312 = vperm.xlu1 %4173, %v6594_v51   ;;  %v8760_v1 = vld [vmem:[#allocation43_spill] sm:$0xff] }
 0x221   : > { %v3725_v39 = vsel %vm1814_vm2, 1.0, %v8586_v10  ;;  %v3726_v15 = vsel %vm1815_vm4, 1.0, %v8586_v10  ;;  %v6885_v49 = vadd.f32 %v3745_v46, %v1898_v59  ;;  %v6887_v60 = vadd.f32 %v3746_v31, %v1899_v47  ;;  %v6904_v47 = vpop.permute.xlu0 %2107  ;;  %v8777_v51 = vld [vmem:[#allocation31_spill] sm:$0xff] }
 0x222   : > { %v572_v62 = vadd.f32 %v8756_v16, %v8755_v54  ;;  %vm653_vm14 = vcmp.eq.s32.totalorder %v5052_v33, %v8750_v9  ;;  %v1910_v53 = vadd.f32 %v3725_v39, %v8757_v13  ;;  %v1911_v6 = vadd.f32 %v3726_v15, %v8758_v19  ;;  %v8763_v15 = vld [vmem:[#allocation95_spill] sm:$0xff]  ;;  %v8764_v16 = vld [vmem:[#allocation37_spill] sm:$0xff] }
 0x223   : > { %8754 = vst [vmem:[#allocation33_spill] sm:$0xff] %v6887_v60  ;;  %v3523_v37 = vsel %vm652_vm12, 1.0, %v8586_v10  ;;  %vm892_vm11 = vcmp.eq.s32.totalorder %v5046_v52, %v8759_v12  ;;  %vm893_vm9 = vcmp.eq.s32.totalorder %v5052_v33, %v8759_v12  ;;  %v8327_v59 = vmov 15  }
 0x224   : > { %4181 = vset.pattern.permute.xlu0 %v8327_v59  ;;  %vm8761_vm7 = vnez %v8760_v1  ;;  %vm1996_vm13 = vcmp.eq.s32.totalorder %v5046_v52, %v6790_v55  ;;  %vm1997_vm3 = vcmp.eq.s32.totalorder %v5052_v33, %v6790_v55  ;;  %v6915_v31 = vadd.f32 %v3757_v18, %v1910_v53  ;;  %v8766_v53 = vld [vmem:[#allocation16_spill] sm:$0xff] }
 0x225   : > { %v6908_v46 = vsel %vm8761_vm7, %v2280_v42, 4294967295  ;;  %3037 = vperm.xlu0 %4181, %v6387_v8   ;;  %v6917_v39 = vadd.f32 %v3758_v3, %v1911_v6  ;;  %v573_v54 = vadd.f32 %v6797_v61, %v8763_v15  ;;  %v3524_v42 = vsel %vm653_vm14, 1.0, %v8586_v10  ;;  %v1941_v3 = vpop.permute.xlu2 %1940  ;;  %v1786_v9 = vpop.permute.xlu1 %1785 }
 0x226   : > { %8762 = vst [vmem:[#allocation90_spill] sm:$0xff] %v6908_v46  ;;  %vm8765_vm1 = vnez %v8764_v16  ;;  %v748_v19 = vadd.f32 %v3523_v37, %v572_v62  ;;  %v3555_v55 = vsel %vm892_vm11, 1.0, %v8586_v10  ;;  %v3556_v18 = vsel %vm893_vm9, 1.0, %v8586_v10 }
 0x227   : > { %v6927_v13 = vsel %vm8765_vm1, %v2279_v11, 4294967295  ;;  %2321 = vperm.xlu2 %4174, %v6908_v46   ;;  %v2283_v6 = vadd.s32 169, %v8766_v53  ;;  %v3763_v61 = vsel %vm1996_vm13, 1.0, %v8586_v10  ;;  %v3764_v12 = vsel %vm1997_vm3, 1.0, %v8586_v10 }
 0x228   : > { %vm1982_vm15 = vcmp.eq.s32.totalorder %v5046_v52, %v1941_v3  ;;  %vm1983_vm8 = vcmp.eq.s32.totalorder %v5052_v33, %v1941_v3  ;;  %vm1820_vm0 = vcmp.eq.s32.totalorder %v5046_v52, %v1786_v9  ;;  %vm1821_vm6 = vcmp.eq.s32.totalorder %v5052_v33, %v1786_v9  ;;  %2318 = vperm.xlu1 %4173, %v6927_v13   ;;  %v8769_v3 = vld [vmem:[#allocation86_spill] sm:$0xff] }
 0x229   : > { %v3749_v11 = vsel %vm1982_vm15, 1.0, %v8586_v10  ;;  %v3750_v62 = vsel %vm1983_vm8, 1.0, %v8586_v10  ;;  %v3731_v37 = vsel %vm1820_vm0, 1.0, %v8586_v10  ;;  %v3732_v1 = vsel %vm1821_vm6, 1.0, %v8586_v10 }
 0x22a   : > { %v6945_v15 = vadd.f32 %v3749_v11, %v6488_v32  ;;  %v6948_v16 = vadd.f32 %v3750_v62, %v6490_v23  ;;  %vm1068_vm12 = vcmp.eq.s32.totalorder %v5046_v52, %v8769_v3  ;;  %vm1069_vm10 = vcmp.eq.s32.totalorder %v5052_v33, %v8769_v3  ;;  %v6960_v32 = vpop.permute.xlu0 %2122  ;;  %v8771_v23 = vld [vmem:[#allocation47_spill] sm:$0xff] }
 0x22b   : > { %v1916_v53 = vadd.f32 %v3731_v37, %v6381_v21  ;;  %v1917_v9 = vadd.f32 %v3732_v1, %v6383_v5  ;;  %v749_v59 = vadd.f32 %v3524_v42, %v573_v54  ;;  %vm1244_vm5 = vcmp.eq.s32.totalorder %v5046_v52, %v8770_v26 }
 0x22c   : > { %8767 = vst [vmem:[#allocation91_spill] sm:$0xff] %v6945_v15  ;;  %vm1245_vm2 = vcmp.eq.s32.totalorder %v5052_v33, %v8770_v26  ;;  %vm8772_vm4 = vnez %v8771_v23  ;;  %vm2002_vm14 = vcmp.eq.s32.totalorder %v5046_v52, %v6846_v56  ;;  %vm2003_vm11 = vcmp.eq.s32.totalorder %v5052_v33, %v6846_v56  ;;  %v8778_v15 = vld [vmem:[#allocation52_spill] sm:$0xff] }
 0x22d   : > { %8768 = vst [vmem:[#allocation24_spill] sm:$0xff] %v6948_v16  ;;  %v6964_v11 = vsel %vm8772_vm4, %v2283_v6, 4294967295  ;;  %3040 = vperm.xlu0 %4181, %v6709_v2   ;;  %v6971_v21 = vadd.f32 %v3763_v61, %v1916_v53  ;;  %v6973_v5 = vadd.f32 %v3764_v12, %v1917_v9  ;;  %v988_v54 = vadd.f32 %v3555_v55, %v748_v19  ;;  %v1950_v61 = vpop.permute.xlu2 %1949  ;;  %v8774_v12 = vld [vmem:[#allocation21_spill] sm:$0xff] }
 0x22e   : > { %8773 = vst [vmem:[#allocation92_spill] sm:$0xff] %v6964_v11  ;;  %v989_v26 = vadd.f32 %v3556_v18, %v749_v59  ;;  %v3587_v42 = vsel %vm1068_vm12, 1.0, %v8586_v10  ;;  %v3588_v6 = vsel %vm1069_vm10, 1.0, %v8586_v10  ;;  %v3619_v56 = vsel %vm1244_vm5, 1.0, %v8586_v10  ;;  %v1795_v18 = vpop.permute.xlu1 %1794 }
 0x22f   : > { %v3620_v62 = vsel %vm1245_vm2, 1.0, %v8586_v10  ;;  %2330 = vperm.xlu2 %4174, %v6964_v11   ;;  %v2286_v19 = vadd.s32 169, %v8774_v12  ;;  %v3769_v59 = vsel %vm2002_vm14, 1.0, %v8586_v10  ;;  %v3770_v55 = vsel %vm2003_vm11, 1.0, %v8586_v10  ;;  %v8776_v12 = vld [vmem:[#allocation84_spill] sm:$0xff] }
 0x230   : > { %vm1988_vm9 = vcmp.eq.s32.totalorder %v5046_v52, %v1950_v61  ;;  %vm1989_vm7 = vcmp.eq.s32.totalorder %v5052_v33, %v1950_v61  ;;  %vm1826_vm13 = vcmp.eq.s32.totalorder %v5046_v52, %v1795_v18  ;;  %vm1827_vm3 = vcmp.eq.s32.totalorder %v5052_v33, %v1795_v18  ;;  %2327 = vperm.xlu1 %4173, %v6636_v34   ;;  %v8775_v61 = vld [vmem:[#allocation75_spill] sm:$0xff] }
 0x231   : > { %v3755_v37 = vsel %vm1988_vm9, 1.0, %v8586_v10  ;;  %v3756_v1 = vsel %vm1989_vm7, 1.0, %v8586_v10  ;;  %v3737_v3 = vsel %vm1826_vm13, 1.0, %v8586_v10  ;;  %v3738_v53 = vsel %vm1827_vm3, 1.0, %v8586_v10 }
 0x232   : > { %v6999_v9 = vadd.f32 %v3755_v37, %v6555_v50  ;;  %v7002_v23 = vadd.f32 %v3756_v1, %v6562_v0  ;;  %vm1420_vm1 = vcmp.eq.s32.totalorder %v5046_v52, %v8775_v61  ;;  %v1922_v18 = vadd.f32 %v3737_v3, %v8776_v12  ;;  %v8780_v50 = vld [vmem:[#allocation76_spill] sm:$0xff]  ;;  %v7016_v0 = vpop.permute.xlu0 %2131 }
 0x233   : > { %v1923_v16 = vadd.f32 %v3738_v53, %v8777_v51  ;;  %vm8779_vm15 = vnez %v8778_v15  ;;  %v1164_v7 = vadd.f32 %v3587_v42, %v988_v54  ;;  %v1165_v60 = vadd.f32 %v3588_v6, %v989_v26 }
 0x234   : > { %v7010_v34 = vsel %vm8779_vm15, %v2286_v19, 4294967295  ;;  %vm1421_vm8 = vcmp.eq.s32.totalorder %v5052_v33, %v8775_v61  ;;  %vm1596_vm0 = vcmp.eq.s32.totalorder %v5046_v52, %v8780_v50  ;;  %v8339_v37 = vmov 14  }
 0x235   : > { %4186 = vset.pattern.permute.xlu0 %v8339_v37  ;;  %v7019_v1 = vadd.f32 %v3769_v59, %v1922_v18  ;;  %v7021_v51 = vadd.f32 %v3770_v55, %v1923_v16  ;;  %v1340_v15 = vadd.f32 %v3619_v56, %v1164_v7  ;;  %v1341_v19 = vadd.f32 %v3620_v62, %v1165_v60  ;;  %v1959_v6 = vpop.permute.xlu2 %1958  ;;  %v8781_v59 = vld [vmem:[#allocation27_spill] sm:$0xff] }
 0x236   : > { %v3651_v54 = vsel %vm1420_vm1, 1.0, %v8586_v10  ;;  %2867 = vperm.xlu0 %4186, %v7010_v34   ;;  %v3652_v26 = vsel %vm1421_vm8, 1.0, %v8586_v10  ;;  %vm1597_vm6 = vcmp.eq.s32.totalorder %v5052_v33, %v8780_v50  ;;  %v3683_v42 = vsel %vm1596_vm0, 1.0, %v8586_v10  ;;  %v1932_v16 = vpop.permute.xlu1 %1931 }
 0x237   : > { %2339 = vperm.xlu2 %4174, %v7010_v34   ;;  %v2289_v3 = vadd.s32 169, %v8781_v59  ;;  %vm2152_vm12 = vcmp.eq.s32.totalorder %v5046_v52, %v6904_v47  ;;  %vm2153_vm10 = vcmp.eq.s32.totalorder %v5052_v33, %v6904_v47  ;;  %vm1994_vm5 = vcmp.eq.s32.totalorder %v5046_v52, %v1959_v6 }
 0x238   : > { %vm1995_vm2 = vcmp.eq.s32.totalorder %v5052_v33, %v1959_v6  ;;  %vm1804_vm4 = vcmp.eq.s32.totalorder %v5046_v52, %v6571_v35  ;;  %vm1805_vm14 = vcmp.eq.s32.totalorder %v5052_v33, %v6571_v35  ;;  %v3761_v7 = vsel %vm1994_vm5, 1.0, %v8586_v10  ;;  %2336 = vperm.xlu1 %4173, %v6709_v2   ;;  %v8782_v6 = vld [vmem:[#allocation55_spill] sm:$0xff] }
 0x239   : > { %v3762_v60 = vsel %vm1995_vm2, 1.0, %v8586_v10  ;;  %v7045_v56 = vadd.f32 %v3761_v7, %v6623_v63  ;;  %vm1976_vm11 = vcmp.eq.s32.totalorder %v5046_v52, %v1932_v16  ;;  %vm1977_vm9 = vcmp.eq.s32.totalorder %v5052_v33, %v1932_v16 }
 0x23a   : > { %v7048_v47 = vadd.f32 %v3762_v60, %v6627_v30  ;;  %v3775_v62 = vsel %vm2152_vm12, 1.0, %v8586_v10  ;;  %v3776_v55 = vsel %vm2153_vm10, 1.0, %v8586_v10  ;;  %v3743_v53 = vsel %vm1976_vm11, 1.0, %v8586_v10  ;;  %v7062_v18 = vpop.permute.xlu0 %2140 }
 0x23b   : > { %v3744_v61 = vsel %vm1977_vm9, 1.0, %v8586_v10  ;;  %v3684_v63 = vsel %vm1597_vm6, 1.0, %v8586_v10  ;;  %v2072_v30 = vadd.f32 %v3743_v53, %v6522_v45  ;;  %vm8783_vm7 = vnez %v8782_v6 }
 0x23c   : > { %v2073_v12 = vadd.f32 %v3744_v61, %v6524_v58  ;;  %v7066_v59 = vsel %vm8783_vm7, %v2289_v3, 4294967295  ;;  %v1516_v7 = vadd.f32 %v3651_v54, %v1340_v15  ;;  %v1517_v60 = vadd.f32 %v3652_v26, %v1341_v19 }
 0x23d   : > { %8784 = vst [vmem:[#allocation93_spill] sm:$0xff] %v7066_v59  ;;  %v3715_v16 = vsel %vm1804_vm4, 1.0, %v8586_v10  ;;  %v3716_v45 = vsel %vm1805_vm14, 1.0, %v8586_v10  ;;  %v7077_v58 = vadd.f32 %v3775_v62, %v2072_v30  ;;  %v1968_v15 = vpop.permute.xlu2 %1967  ;;  %vm2162_vm8 = vcmp.eq.s32.totalorder %v5046_v52, %v6960_v32 }
 0x23e   : > { %2870 = vperm.xlu0 %4186, %v6454_v24   ;;  %v7079_v50 = vadd.f32 %v3776_v55, %v2073_v12  ;;  %v1692_v3 = vadd.f32 %v3683_v42, %v1516_v7  ;;  %v1693_v53 = vadd.f32 %v3684_v63, %v1517_v60  ;;  %vm2000_vm13 = vcmp.eq.s32.totalorder %v5046_v52, %v1968_v15  ;;  %v1938_v62 = vpop.permute.xlu1 %1937  ;;  %v8786_v7 = vld [vmem:[#allocation78_spill] sm:$0xff] }
 0x23f   : > { %2348 = vperm.xlu2 %4174, %v7066_v59   ;;  %vm2001_vm3 = vcmp.eq.s32.totalorder %v5052_v33, %v1968_v15  ;;  %v3767_v35 = vsel %vm2000_vm13, 1.0, %v8586_v10  ;;  %vm1980_vm1 = vcmp.eq.s32.totalorder %v5046_v52, %v1938_v62  ;;  %vm1981_vm15 = vcmp.eq.s32.totalorder %v5052_v33, %v1938_v62 }
 0x240   : > { %v1900_v19 = vadd.f32 %v3715_v16, %v1692_v3  ;;  %v1901_v54 = vadd.f32 %v3716_v45, %v1693_v53  ;;  %v3768_v26 = vsel %vm2001_vm3, 1.0, %v8586_v10  ;;  %2345 = vperm.xlu1 %4173, %v6774_v17   ;;  %v7088_v55 = vadd.f32 %v3767_v35, %v6685_v44 }
 0x241   : > { %v7091_v42 = vadd.f32 %v3768_v26, %v6691_v22  ;;  %v3747_v61 = vsel %vm1980_vm1, 1.0, %v8586_v10  ;;  %v3748_v63 = vsel %vm1981_vm15, 1.0, %v8586_v10  ;;  %vm2163_vm0 = vcmp.eq.s32.totalorder %v5052_v33, %v6960_v32 }
 0x242   : > { %v2076_v30 = vadd.f32 %v3747_v61, %v1900_v19  ;;  %v2077_v12 = vadd.f32 %v3748_v63, %v1901_v54  ;;  %v7097_v6 = vpop.permute.xlu0 %2309  ;;  %v8337_v44 = vmov 13   ;;  %v8785_v22 = vmov 12  }
 0x243   : > { %v3785_v16 = vsel %vm2162_vm8, 1.0, %v8586_v10  ;;  %v3786_v45 = vsel %vm2163_vm0, 1.0, %v8586_v10  ;;  %vm2168_vm2 = vcmp.eq.s32.totalorder %v5046_v52, %v7016_v0  ;;  %vm2169_vm4 = vcmp.eq.s32.totalorder %v5052_v33, %v7016_v0 }
 0x244   : > { %vm2174_vm13 = vcmp.eq.s32.totalorder %v5046_v52, %v7062_v18  ;;  %vm2175_vm3 = vcmp.eq.s32.totalorder %v5052_v33, %v7062_v18 }
 0x246   : > { %4191 = vset.pattern.permute.xlu0 %v8337_v44  ;;  %v2105_v60 = vpop.permute.xlu2 %2104  ;;  %v1947_v3 = vpop.permute.xlu1 %1946  ;;  %v8791_v44 = vld [vmem:[#allocation91_spill] sm:$0xff] }
 0x247   : > { %2667 = vperm.xlu0 %4191, %v6855_v48   ;;  %4175 = vset.pattern.permute.xlu2 %v8785_v22  ;;  %vm2150_vm6 = vcmp.eq.s32.totalorder %v5046_v52, %v2105_v60  ;;  %vm2151_vm12 = vcmp.eq.s32.totalorder %v5052_v33, %v2105_v60  ;;  %vm1986_vm10 = vcmp.eq.s32.totalorder %v5046_v52, %v1947_v3 }
 0x248   : > { %2485 = vperm.xlu2 %4175, %v8786_v7   ;;  %2354 = vperm.xlu1 %4173, %v6820_v4   ;;  %vm1987_vm5 = vcmp.eq.s32.totalorder %v5052_v33, %v1947_v3  ;;  %v3773_v32 = vsel %vm2150_vm6, 1.0, %v8586_v10  ;;  %v3774_v53 = vsel %vm2151_vm12, 1.0, %v8586_v10  ;;  %v3753_v15 = vsel %vm1986_vm10, 1.0, %v8586_v10  ;;  %v8792_v4 = vld [vmem:[#allocation24_spill] sm:$0xff] }
 0x249   : > { %v3754_v19 = vsel %vm1987_vm5, 1.0, %v8586_v10  ;;  %v7119_v54 = vadd.f32 %v3773_v32, %v6744_v41  ;;  %v7122_v35 = vadd.f32 %v3774_v53, %v6746_v27  ;;  %v2082_v26 = vadd.f32 %v3753_v15, %v6650_v43 }
 0x24a   : > { %v2083_v62 = vadd.f32 %v3754_v19, %v6652_v57  ;;  %v7126_v61 = vpop.permute.xlu0 %2324  ;;  %v3791_v43 = vsel %vm2168_vm2, 1.0, %v8586_v10  ;;  %v3792_v57 = vsel %vm2169_vm4, 1.0, %v8586_v10 }
 0x24b   : > { %v7132_v63 = vadd.f32 %v3785_v16, %v2082_v26 }
 0x24c   : > { %v7134_v60 = vadd.f32 %v3786_v45, %v2083_v62 }
 0x24e   : > { %v2114_v41 = vpop.permute.xlu2 %2113  ;;  %v1956_v27 = vpop.permute.xlu1 %1955 }
 0x24f   : > { %2682 = vperm.xlu0 %4191, %v6964_v11   ;;  %vm2156_vm14 = vcmp.eq.s32.totalorder %v5046_v52, %v2114_v41  ;;  %vm2157_vm11 = vcmp.eq.s32.totalorder %v5052_v33, %v2114_v41  ;;  %vm1992_vm9 = vcmp.eq.s32.totalorder %v5046_v52, %v1956_v27  ;;  %vm1993_vm7 = vcmp.eq.s32.totalorder %v5052_v33, %v1956_v27 }
 0x250   : > { %2494 = vperm.xlu2 %4175, %v6927_v13   ;;  %4177 = vset.pattern.permute.xlu1 %v8785_v22  ;;  %v3779_v0 = vsel %vm2156_vm14, 1.0, %v8586_v10  ;;  %v3780_v16 = vsel %vm2157_vm11, 1.0, %v8586_v10  ;;  %v3759_v45 = vsel %vm1992_vm9, 1.0, %v8586_v10  ;;  %v3760_v3 = vsel %vm1993_vm7, 1.0, %v8586_v10 }
 0x251   : > { %2491 = vperm.xlu1 %4177, %v6855_v48   ;;  %v7150_v22 = vadd.f32 %v3779_v0, %v2076_v30  ;;  %v7152_v32 = vadd.f32 %v3780_v16, %v2077_v12  ;;  %v2088_v53 = vadd.f32 %v3759_v45, %v6713_v28  ;;  %v2089_v15 = vadd.f32 %v3760_v3, %v6715_v36  ;;  %v8787_v30 = vld [vmem:[#allocation13_spill] sm:$0xff] }
 0x252   : > { %v7156_v19 = vpop.permute.xlu0 %2333  ;;  %v3797_v28 = vsel %vm2174_vm13, 1.0, %v8586_v10  ;;  %v3798_v36 = vsel %vm2175_vm3, 1.0, %v8586_v10  ;;  %vm2366_vm9 = vcmp.eq.s32.totalorder %v5046_v52, %v7126_v61  ;;  %vm2367_vm7 = vcmp.eq.s32.totalorder %v5052_v33, %v7126_v61 }
 0x253   : > { %v7162_v26 = vadd.f32 %v3791_v43, %v2088_v53  ;;  %v7164_v62 = vadd.f32 %v3792_v57, %v2089_v15  ;;  %v3813_v61 = vsel %vm2366_vm9, 1.0, %v8586_v10 }
 0x256   : > { %v2120_v12 = vpop.permute.xlu2 %2119  ;;  %v1965_v41 = vpop.permute.xlu1 %1964 }
 0x257   : > { %2697 = vperm.xlu0 %4191, %v6774_v17   ;;  %vm2160_vm1 = vcmp.eq.s32.totalorder %v5046_v52, %v2120_v12  ;;  %vm2161_vm15 = vcmp.eq.s32.totalorder %v5052_v33, %v2120_v12  ;;  %vm1998_vm8 = vcmp.eq.s32.totalorder %v5046_v52, %v1965_v41  ;;  %vm1999_vm0 = vcmp.eq.s32.totalorder %v5052_v33, %v1965_v41  ;;  %v8796_v17 = vld [vmem:[#allocation85_spill] sm:$0xff] }
 0x258   : > { %2500 = vperm.xlu2 %4175, %v8787_v30   ;;  %v3783_v18 = vsel %vm2160_vm1, 1.0, %v8586_v10  ;;  %v3784_v43 = vsel %vm2161_vm15, 1.0, %v8586_v10  ;;  %v3765_v57 = vsel %vm1998_vm8, 1.0, %v8586_v10  ;;  %v3766_v27 = vsel %vm1999_vm0, 1.0, %v8586_v10 }
 0x259   : > { %2497 = vperm.xlu1 %4177, %v6908_v46   ;;  %v7180_v0 = vadd.f32 %v3783_v18, %v6863_v40  ;;  %v7183_v16 = vadd.f32 %v3784_v43, %v6865_v29  ;;  %v2094_v45 = vadd.f32 %v3765_v57, %v6768_v38  ;;  %v2095_v3 = vadd.f32 %v3766_v27, %v6770_v25 }
 0x25a   : > { %v7187_v53 = vpop.permute.xlu0 %2342 }
 0x25b   : > { %v7189_v15 = vadd.f32 %v3797_v28, %v2094_v45  ;;  %v7191_v12 = vadd.f32 %v3798_v36, %v2095_v3 }
 0x25e   : > { %v2129_v41 = vpop.permute.xlu2 %2128 }
 0x25f   : > { %2700 = vperm.xlu0 %4191, %v7066_v59   ;;  %vm2166_vm6 = vcmp.eq.s32.totalorder %v5046_v52, %v2129_v41  ;;  %vm2167_vm12 = vcmp.eq.s32.totalorder %v5052_v33, %v2129_v41 }
 0x260   : > { %2509 = vperm.xlu2 %4175, %v6387_v8   ;;  %v3789_v40 = vsel %vm2166_vm6, 1.0, %v8586_v10  ;;  %v3790_v38 = vsel %vm2167_vm12, 1.0, %v8586_v10  ;;  %v2102_v25 = vpop.permute.xlu1 %2101 }
 0x261   : > { %2506 = vperm.xlu1 %4177, %v6964_v11   ;;  %v7201_v29 = vadd.f32 %v3789_v40, %v6915_v31  ;;  %v7204_v28 = vadd.f32 %v3790_v38, %v6917_v39  ;;  %vm2148_vm10 = vcmp.eq.s32.totalorder %v5046_v52, %v2102_v25  ;;  %vm2149_vm5 = vcmp.eq.s32.totalorder %v5052_v33, %v2102_v25 }
 0x262   : > { %v3771_v36 = vsel %vm2148_vm10, 1.0, %v8586_v10  ;;  %v3772_v18 = vsel %vm2149_vm5, 1.0, %v8586_v10  ;;  %v7216_v27 = vpop.permute.xlu0 %2351  ;;  %v8788_v31 = vmov 15   ;;  %vm2378_vm10 = vcmp.eq.s32.totalorder %v5046_v52, %v7187_v53 }
 0x263   : > { %v7211_v43 = vadd.f32 %v3771_v36, %v6834_v20  ;;  %v7214_v57 = vadd.f32 %v3772_v18, %v6836_v14  ;;  %v8789_v36 = vld [vmem:[#allocation33_spill] sm:$0xff]  ;;  %vm2379_vm5 = vcmp.eq.s32.totalorder %v5052_v33, %v7187_v53  ;;  %vm2384_vm9 = vcmp.eq.s32.totalorder %v5046_v52, %v7216_v27 }
 0x266   : > { %v2138_v39 = vpop.permute.xlu2 %2137 }
 0x267   : > { %4200 = vset.pattern.permute.xlu0 %v8788_v31  ;;  %vm2172_vm2 = vcmp.eq.s32.totalorder %v5046_v52, %v2138_v39  ;;  %vm2173_vm4 = vcmp.eq.s32.totalorder %v5052_v33, %v2138_v39 }
 0x268   : > { %3025 = vperm.xlu0 %4200, %v6908_v46   ;;  %2518 = vperm.xlu2 %4175, %v6454_v24   ;;  %v3795_v45 = vsel %vm2172_vm2, 1.0, %v8586_v10  ;;  %v3796_v20 = vsel %vm2173_vm4, 1.0, %v8586_v10  ;;  %v2111_v14 = vpop.permute.xlu1 %2110 }
 0x269   : > { %2515 = vperm.xlu1 %4177, %v7010_v34   ;;  %v7227_v3 = vadd.f32 %v3795_v45, %v6971_v21  ;;  %v7230_v41 = vadd.f32 %v3796_v20, %v6973_v5  ;;  %vm2154_vm14 = vcmp.eq.s32.totalorder %v5046_v52, %v2111_v14  ;;  %vm2155_vm11 = vcmp.eq.s32.totalorder %v5052_v33, %v2111_v14  ;;  %v8790_v21 = vld [vmem:[#allocation18_spill] sm:$0xff] }
 0x26a   : > { %v3777_v40 = vsel %vm2154_vm14, 1.0, %v8586_v10  ;;  %v3778_v38 = vsel %vm2155_vm11, 1.0, %v8586_v10 }
 0x26b   : > { %v7237_v25 = vadd.f32 %v3777_v40, %v6885_v49  ;;  %v7240_v18 = vadd.f32 %v3778_v38, %v8789_v36  ;;  %v3814_v38 = vsel %vm2367_vm7, 1.0, %v8586_v10  ;;  %vm2385_vm7 = vcmp.eq.s32.totalorder %v5052_v33, %v7216_v27 }
 0x26d   : > { %v7242_v39 = vpop.permute.xlu0 %2488 }
 0x26e   : > { %v2147_v5 = vpop.permute.xlu2 %2146 }
 0x26f   : > { %vm2178_vm13 = vcmp.eq.s32.totalorder %v5046_v52, %v2147_v5  ;;  %vm2179_vm3 = vcmp.eq.s32.totalorder %v5052_v33, %v2147_v5 }
 0x270   : > { %3028 = vperm.xlu0 %4200, %v8787_v30   ;;  %2527 = vperm.xlu2 %4175, %v8790_v21   ;;  %v3801_v49 = vsel %vm2178_vm13, 1.0, %v8586_v10  ;;  %v3802_v45 = vsel %vm2179_vm3, 1.0, %v8586_v10  ;;  %v2117_v20 = vpop.permute.xlu1 %2116  ;;  %v8793_v21 = vmov 14  }
 0x271   : > { %2524 = vperm.xlu1 %4177, %v7066_v59   ;;  %v7256_v14 = vadd.f32 %v3801_v49, %v7019_v1  ;;  %v7259_v40 = vadd.f32 %v3802_v45, %v7021_v51  ;;  %vm2158_vm1 = vcmp.eq.s32.totalorder %v5046_v52, %v2117_v20  ;;  %vm2159_vm15 = vcmp.eq.s32.totalorder %v5052_v33, %v2117_v20  ;;  %v8795_v59 = vld [vmem:[#allocation87_spill] sm:$0xff] }
 0x272   : > { %v3781_v36 = vsel %vm2158_vm1, 1.0, %v8586_v10  ;;  %v3782_v5 = vsel %vm2159_vm15, 1.0, %v8586_v10  ;;  %v8794_v20 = vmov 13  }
 0x273   : > { %v2254_v37 = vadd.f32 %v3781_v36, %v8791_v44  ;;  %v2255_v1 = vadd.f32 %v3782_v5, %v8792_v4 }
 0x275   : > { %v7269_v49 = vpop.permute.xlu0 %2503  ;;  %v7271_v51 = vadd.f32 %v3813_v61, %v2254_v37  ;;  %v7273_v45 = vadd.f32 %v3814_v38, %v2255_v1 }
 0x278   : > { %4207 = vset.pattern.permute.xlu0 %v8793_v21  ;;  %4179 = vset.pattern.permute.xlu2 %v8794_v20  ;;  %v2126_v44 = vpop.permute.xlu1 %2125 }
 0x279   : > { %2855 = vperm.xlu0 %4207, %v8795_v59   ;;  %2664 = vperm.xlu2 %4179, %v8796_v17   ;;  %v2316_v24 = vpop.permute.xlu2 %2315  ;;  %vm2164_vm6 = vcmp.eq.s32.totalorder %v5046_v52, %v2126_v44  ;;  %vm2165_vm12 = vcmp.eq.s32.totalorder %v5052_v33, %v2126_v44 }
 0x27a   : > { %4178 = vset.pattern.permute.xlu1 %v8794_v20  ;;  %vm2360_vm8 = vcmp.eq.s32.totalorder %v5046_v52, %v2316_v24  ;;  %vm2361_vm0 = vcmp.eq.s32.totalorder %v5052_v33, %v2316_v24  ;;  %v3787_v61 = vsel %vm2164_vm6, 1.0, %v8586_v10  ;;  %v3788_v38 = vsel %vm2165_vm12, 1.0, %v8586_v10 }
 0x27b   : > { %v3807_v4 = vsel %vm2360_vm8, 1.0, %v8586_v10  ;;  %v3808_v37 = vsel %vm2361_vm0, 1.0, %v8586_v10  ;;  %2661 = vperm.xlu1 %4178, %v8786_v7   ;;  %v7296_v24 = vadd.f32 %v3787_v61, %v6999_v9  ;;  %v7299_v1 = vadd.f32 %v3788_v38, %v7002_v23 }
 0x27c   : > { %v7290_v36 = vadd.f32 %v3807_v4, %v7077_v58  ;;  %v7293_v5 = vadd.f32 %v3808_v37, %v7079_v50  ;;  %v3825_v50 = vsel %vm2378_vm10, 1.0, %v8586_v10  ;;  %v3826_v9 = vsel %vm2379_vm5, 1.0, %v8586_v10 }
 0x27d   : > { %v7305_v44 = vpop.permute.xlu0 %2512  ;;  %vm2534_vm8 = vcmp.eq.s32.totalorder %v5046_v52, %v7242_v39  ;;  %vm2535_vm0 = vcmp.eq.s32.totalorder %v5052_v33, %v7242_v39 }
 0x27e   : > { %8797 = vst [vmem:[#allocation96_spill] sm:$0xff] %v7305_v44 }
 0x280   : > { %v2135_v4 = vpop.permute.xlu1 %2134 }
 0x281   : > { %2673 = vperm.xlu2 %4179, %v6908_v46   ;;  %v2322_v58 = vpop.permute.xlu2 %2321  ;;  %4212 = vset.pattern.permute.xlu0 %v8788_v31  ;;  %vm2170_vm14 = vcmp.eq.s32.totalorder %v5046_v52, %v2135_v4  ;;  %vm2171_vm11 = vcmp.eq.s32.totalorder %v5052_v33, %v2135_v4 }
 0x282   : > { %vm2364_vm2 = vcmp.eq.s32.totalorder %v5046_v52, %v2322_v58  ;;  %vm2365_vm4 = vcmp.eq.s32.totalorder %v5052_v33, %v2322_v58  ;;  %3034 = vperm.xlu0 %4212, %v6964_v11   ;;  %v3793_v37 = vsel %vm2170_vm14, 1.0, %v8586_v10  ;;  %v3794_v61 = vsel %vm2171_vm11, 1.0, %v8586_v10 }
 0x283   : > { %v3811_v23 = vsel %vm2364_vm2, 1.0, %v8586_v10  ;;  %v3812_v53 = vsel %vm2365_vm4, 1.0, %v8586_v10  ;;  %2670 = vperm.xlu1 %4178, %v6927_v13   ;;  %v2266_v11 = vadd.f32 %v3793_v37, %v7045_v56  ;;  %v2267_v4 = vadd.f32 %v3794_v61, %v7048_v47 }
 0x284   : > { %v7322_v38 = vadd.f32 %v3811_v23, %v7150_v22  ;;  %v7325_v58 = vadd.f32 %v3812_v53, %v7152_v32  ;;  %v3831_v32 = vsel %vm2384_vm9, 1.0, %v8586_v10  ;;  %v3832_v23 = vsel %vm2385_vm7, 1.0, %v8586_v10 }
 0x285   : > { %v7333_v44 = vadd.f32 %v3825_v50, %v2266_v11  ;;  %v7335_v46 = vadd.f32 %v3826_v9, %v2267_v4  ;;  %v7340_v56 = vpop.permute.xlu0 %2521  ;;  %vm2356_vm14 = vcmp.eq.s32.totalorder %v5046_v52, %v7097_v6  ;;  %vm2357_vm11 = vcmp.eq.s32.totalorder %v5052_v33, %v7097_v6 }
 0x286   : > { %8798 = vst [vmem:[#allocation97_spill] sm:$0xff] %v7340_v56 }
 0x288   : > { %v2144_v47 = vpop.permute.xlu1 %2143 }
 0x289   : > { %2679 = vperm.xlu2 %4179, %v8795_v59   ;;  %v2331_v22 = vpop.permute.xlu2 %2330  ;;  %vm2176_vm1 = vcmp.eq.s32.totalorder %v5046_v52, %v2144_v47  ;;  %vm2177_vm15 = vcmp.eq.s32.totalorder %v5052_v33, %v2144_v47 }
 0x28a   : > { %vm2370_vm13 = vcmp.eq.s32.totalorder %v5046_v52, %v2331_v22  ;;  %vm2371_vm3 = vcmp.eq.s32.totalorder %v5052_v33, %v2331_v22  ;;  %v3799_v50 = vsel %vm2176_vm1, 1.0, %v8586_v10  ;;  %v3800_v9 = vsel %vm2177_vm15, 1.0, %v8586_v10 }
 0x28b   : > { %v3817_v11 = vsel %vm2370_vm13, 1.0, %v8586_v10  ;;  %v3818_v27 = vsel %vm2371_vm3, 1.0, %v8586_v10  ;;  %2676 = vperm.xlu1 %4178, %v8787_v30   ;;  %v2272_v61 = vadd.f32 %v3799_v50, %v7088_v55  ;;  %v2273_v4 = vadd.f32 %v3800_v9, %v7091_v42 }
 0x28c   : > { %v7352_v53 = vadd.f32 %v3817_v11, %v7132_v63  ;;  %v7355_v37 = vadd.f32 %v3818_v27, %v7134_v60  ;;  %vm2544_vm13 = vcmp.eq.s32.totalorder %v5046_v52, %v7269_v49  ;;  %vm2545_vm3 = vcmp.eq.s32.totalorder %v5052_v33, %v7269_v49 }
 0x28d   : > { %v7359_v22 = vadd.f32 %v3831_v32, %v2272_v61  ;;  %v7361_v47 = vadd.f32 %v3832_v23, %v2273_v4  ;;  %v7374_v60 = vpop.permute.xlu0 %2530  ;;  %v3837_v23 = vsel %vm2534_vm8, 1.0, %v8586_v10 }
 0x291   : > { %4180 = vset.pattern.permute.xlu2 %v8793_v21  ;;  %v2340_v56 = vpop.permute.xlu2 %2339 }
 0x292   : > { %vm2376_vm6 = vcmp.eq.s32.totalorder %v5046_v52, %v2340_v56  ;;  %vm2377_vm12 = vcmp.eq.s32.totalorder %v5052_v33, %v2340_v56  ;;  %2861 = vperm.xlu2 %4180, %v6387_v8   ;;  %v2313_v63 = vpop.permute.xlu1 %2312  ;;  %v3838_v56 = vsel %vm2535_vm0, 1.0, %v8586_v10 }
 0x293   : > { %v3823_v55 = vsel %vm2376_vm6, 1.0, %v8586_v10  ;;  %v3824_v42 = vsel %vm2377_vm12, 1.0, %v8586_v10  ;;  %2685 = vperm.xlu1 %4178, %v6387_v8   ;;  %vm2358_vm10 = vcmp.eq.s32.totalorder %v5046_v52, %v2313_v63  ;;  %vm2359_vm5 = vcmp.eq.s32.totalorder %v5052_v33, %v2313_v63 }
 0x294   : > { %v7377_v32 = vadd.f32 %v3823_v55, %v7162_v26  ;;  %v7380_v39 = vadd.f32 %v3824_v42, %v7164_v62  ;;  %v3805_v11 = vsel %vm2358_vm10, 1.0, %v8586_v10  ;;  %v3806_v8 = vsel %vm2359_vm5, 1.0, %v8586_v10 }
 0x295   : > { %v2454_v27 = vadd.f32 %v3805_v11, %v7119_v54  ;;  %v2455_v26 = vadd.f32 %v3806_v8, %v7122_v35  ;;  %v3804_v11 = vsel %vm2357_vm11, 1.0, %v8586_v10 }
 0x297   : > { %v7390_v50 = vadd.f32 %v3837_v23, %v2454_v27  ;;  %v7392_v62 = vadd.f32 %v3838_v56, %v2455_v26  ;;  %v7414_v63 = vpop.permute.xlu0 %3037  ;;  %v2453_v27 = vadd.f32 %v3804_v11, %v7214_v57 }
 0x299   : > { %v2349_v9 = vpop.permute.xlu2 %2348 }
 0x29a   : > { %vm2382_vm2 = vcmp.eq.s32.totalorder %v5046_v52, %v2349_v9  ;;  %vm2383_vm4 = vcmp.eq.s32.totalorder %v5052_v33, %v2349_v9  ;;  %2837 = vperm.xlu2 %4180, %v8786_v7   ;;  %v2319_v61 = vpop.permute.xlu1 %2318 }
 0x29b   : > { %v3829_v54 = vsel %vm2382_vm2, 1.0, %v8586_v10  ;;  %v3830_v35 = vsel %vm2383_vm4, 1.0, %v8586_v10  ;;  %2688 = vperm.xlu1 %4178, %v6709_v2   ;;  %vm2362_vm9 = vcmp.eq.s32.totalorder %v5046_v52, %v2319_v61  ;;  %vm2363_vm7 = vcmp.eq.s32.totalorder %v5052_v33, %v2319_v61 }
 0x29c   : > { %v7405_v4 = vadd.f32 %v3829_v54, %v7189_v15  ;;  %v7408_v55 = vadd.f32 %v3830_v35, %v7191_v12  ;;  %v3809_v42 = vsel %vm2362_vm9, 1.0, %v8586_v10  ;;  %v3810_v6 = vsel %vm2363_vm7, 1.0, %v8586_v10 }
 0x29d   : > { %v2458_v23 = vadd.f32 %v3809_v42, %v7237_v25  ;;  %v2459_v56 = vadd.f32 %v3810_v6, %v7240_v18  ;;  %v3803_v15 = vsel %vm2356_vm14, 1.0, %v8586_v10  ;;  %v3847_v25 = vsel %vm2544_vm13, 1.0, %v8586_v10 }
 0x29e   : > { %v2452_v8 = vadd.f32 %v3803_v15, %v7211_v43  ;;  %v3848_v18 = vsel %vm2545_vm3, 1.0, %v8586_v10  ;;  %vm2372_vm2 = vcmp.eq.s32.totalorder %v5046_v52, %v7156_v19  ;;  %vm2373_vm4 = vcmp.eq.s32.totalorder %v5052_v33, %v7156_v19 }
 0x29f   : > { %v7446_v42 = vpop.permute.xlu0 %3040  ;;  %vm2562_vm13 = vcmp.eq.s32.totalorder %v5046_v52, %v7374_v60  ;;  %vm2563_vm3 = vcmp.eq.s32.totalorder %v5052_v33, %v7374_v60 }
 0x2a2   : > { %4183 = vset.pattern.permute.xlu2 %v8788_v31  ;;  %v2486_v12 = vpop.permute.xlu2 %2485  ;;  %v2328_v26 = vpop.permute.xlu1 %2327 }
 0x2a3   : > { %4182 = vset.pattern.permute.xlu1 %v8793_v21  ;;  %vm2532_vm1 = vcmp.eq.s32.totalorder %v5046_v52, %v2486_v12  ;;  %vm2533_vm15 = vcmp.eq.s32.totalorder %v5052_v33, %v2486_v12  ;;  %3013 = vperm.xlu2 %4183, %v8786_v7   ;;  %vm2368_vm8 = vcmp.eq.s32.totalorder %v5046_v52, %v2328_v26 }
 0x2a4   : > { %vm2369_vm0 = vcmp.eq.s32.totalorder %v5052_v33, %v2328_v26  ;;  %v3835_v43 = vsel %vm2532_vm1, 1.0, %v8586_v10  ;;  %v3836_v57 = vsel %vm2533_vm15, 1.0, %v8586_v10  ;;  %2864 = vperm.xlu1 %4182, %v6709_v2   ;;  %v3815_v49 = vsel %vm2368_vm8, 1.0, %v8586_v10 }
 0x2a5   : > { %v3816_v9 = vsel %vm2369_vm0, 1.0, %v8586_v10  ;;  %v7440_v54 = vadd.f32 %v3835_v43, %v2452_v8  ;;  %v7442_v35 = vadd.f32 %v3836_v57, %v2453_v27  ;;  %v2464_v7 = vadd.f32 %v3815_v49, %v7180_v0 }
 0x2a6   : > { %v2465_v61 = vadd.f32 %v3816_v9, %v7183_v16 }
 0x2a7   : > { %v7448_v6 = vadd.f32 %v3847_v25, %v2464_v7 }
 0x2a8   : > { %v7450_v15 = vadd.f32 %v3848_v18, %v2465_v61  ;;  %v7474_v43 = vpop.permute.xlu0 %2867 }
 0x2aa   : > { %v2495_v11 = vpop.permute.xlu2 %2494  ;;  %v2337_v2 = vpop.permute.xlu1 %2336 }
 0x2ab   : > { %vm2538_vm6 = vcmp.eq.s32.totalorder %v5046_v52, %v2495_v11  ;;  %vm2539_vm12 = vcmp.eq.s32.totalorder %v5052_v33, %v2495_v11  ;;  %4185 = vset.pattern.permute.xlu2 %v8793_v21  ;;  %vm2374_vm10 = vcmp.eq.s32.totalorder %v5046_v52, %v2337_v2  ;;  %vm2375_vm5 = vcmp.eq.s32.totalorder %v5052_v33, %v2337_v2 }
 0x2ac   : > { %v3841_v0 = vsel %vm2538_vm6, 1.0, %v8586_v10  ;;  %v3842_v16 = vsel %vm2539_vm12, 1.0, %v8586_v10  ;;  %4184 = vset.pattern.permute.xlu1 %v8794_v20  ;;  %2840 = vperm.xlu2 %4185, %v8796_v17   ;;  %v3821_v12 = vsel %vm2374_vm10, 1.0, %v8586_v10  ;;  %v3822_v8 = vsel %vm2375_vm5, 1.0, %v8586_v10 }
 0x2ad   : > { %v7463_v27 = vadd.f32 %v3841_v0, %v2458_v23  ;;  %v7465_v25 = vadd.f32 %v3842_v16, %v2459_v56  ;;  %2691 = vperm.xlu1 %4184, %v7010_v34   ;;  %v7469_v18 = vadd.f32 %v3821_v12, %v7201_v29  ;;  %v7472_v26 = vadd.f32 %v3822_v8, %v7204_v28 }
 0x2ae   : > { %v3866_v2 = vsel %vm2563_vm3, 1.0, %v8586_v10 }
 0x2b0   : > { %v7522_v19 = vpop.permute.xlu0 %2870 }
 0x2b2   : > { %v2501_v57 = vpop.permute.xlu2 %2500  ;;  %v2346_v23 = vpop.permute.xlu1 %2345 }
 0x2b3   : > { %vm2542_vm14 = vcmp.eq.s32.totalorder %v5046_v52, %v2501_v57  ;;  %vm2543_vm11 = vcmp.eq.s32.totalorder %v5052_v33, %v2501_v57  ;;  %vm2380_vm9 = vcmp.eq.s32.totalorder %v5046_v52, %v2346_v23  ;;  %vm2381_vm7 = vcmp.eq.s32.totalorder %v5052_v33, %v2346_v23 }
 0x2b4   : > { %v3845_v29 = vsel %vm2542_vm14, 1.0, %v8586_v10  ;;  %v3846_v28 = vsel %vm2543_vm11, 1.0, %v8586_v10  ;;  %4188 = vset.pattern.permute.xlu2 %v8788_v31  ;;  %v3827_v56 = vsel %vm2380_vm9, 1.0, %v8586_v10  ;;  %v3828_v49 = vsel %vm2381_vm7, 1.0, %v8586_v10 }
 0x2b5   : > { %v7490_v9 = vadd.f32 %v3845_v29, %v7271_v51  ;;  %v7493_v7 = vadd.f32 %v3846_v28, %v7273_v45  ;;  %4187 = vset.pattern.permute.xlu1 %v8788_v31  ;;  %3043 = vperm.xlu2 %4188, %v7010_v34   ;;  %v7498_v61 = vadd.f32 %v3827_v56, %v7227_v3  ;;  %v3819_v51 = vsel %vm2372_vm2, 1.0, %v8586_v10  ;;  %v8799_v29 = vld [vmem:[#allocation83_spill] sm:$0xff] }
 0x2b6   : > { %v7501_v11 = vadd.f32 %v3828_v49, %v7230_v41  ;;  %3016 = vperm.xlu1 %4187, %v8796_v17   ;;  %v3820_v45 = vsel %vm2373_vm4, 1.0, %v8586_v10  ;;  %v2468_v3 = vadd.f32 %v3819_v51, %v7296_v24  ;;  %v3865_v41 = vsel %vm2562_vm13, 1.0, %v8586_v10 }
 0x2b7   : > { %v2469_v17 = vadd.f32 %v3820_v45, %v7299_v1 }
 0x2ba   : > { %v2510_v34 = vpop.permute.xlu2 %2509  ;;  %v2355_v0 = vpop.permute.xlu1 %2354 }
 0x2bb   : > { %vm2548_vm1 = vcmp.eq.s32.totalorder %v5046_v52, %v2510_v34  ;;  %vm2549_vm15 = vcmp.eq.s32.totalorder %v5052_v33, %v2510_v34  ;;  %vm2386_vm8 = vcmp.eq.s32.totalorder %v5046_v52, %v2355_v0  ;;  %vm2387_vm0 = vcmp.eq.s32.totalorder %v5052_v33, %v2355_v0 }
 0x2bc   : > { %v3851_v60 = vsel %vm2548_vm1, 1.0, %v8586_v10  ;;  %v3852_v24 = vsel %vm2549_vm15, 1.0, %v8586_v10  ;;  %v3833_v1 = vsel %vm2386_vm8, 1.0, %v8586_v10  ;;  %v3834_v16 = vsel %vm2387_vm0, 1.0, %v8586_v10 }
 0x2bd   : > { %v7530_v12 = vadd.f32 %v3851_v60, %v2468_v3  ;;  %v7532_v8 = vadd.f32 %v3852_v24, %v2469_v17  ;;  %4190 = vset.pattern.permute.xlu2 %v8793_v21  ;;  %v2482_v57 = vadd.f32 %v3833_v1, %v7256_v14  ;;  %v2483_v23 = vadd.f32 %v3834_v16, %v7259_v40  ;;  %v7556_v3 = vpop.permute.xlu0 %2667  ;;  %v3202_v60 = vld [vmem:[%s8120_s1 + $0x70] sm:$0xff]  ;;  %v3217_v1 = vld [vmem:[%s8120_s1 + $0xe8] sm:$0xff] }
 0x2be   : > { %4189 = vset.pattern.permute.xlu1 %v8794_v20  ;;  %2843 = vperm.xlu2 %4190, %v6855_v48   ;;  %v3218_v24 = vld [vmem:[%s8120_s1 + $0xf0] sm:$0xff] }
 0x2bf   : > { %2694 = vperm.xlu1 %4189, %v8799_v29   ;;  %v7540_v28 = vadd.f32 %v3865_v41, %v2482_v57  ;;  %v7542_v56 = vadd.f32 %v3866_v2, %v2483_v23  ;;  %v3200_v23 = vld [vmem:[%s8120_s1 + $0x60] sm:$0xff] }
 0x2c1   : > { %8800 = vst [vmem:[#allocation99_spill] sm:$0xff] %v7540_v28 }
 0x2c2   : > { %8801 = vst [vmem:[#allocation30_spill] sm:$0xff] %v7542_v56  ;;  %v2519_v49 = vpop.permute.xlu2 %2518 }
 0x2c3   : > { %vm2554_vm6 = vcmp.eq.s32.totalorder %v5046_v52, %v2519_v49  ;;  %vm2555_vm12 = vcmp.eq.s32.totalorder %v5052_v33, %v2519_v49  ;;  %v2492_v40 = vpop.permute.xlu1 %2491 }
 0x2c4   : > { %v3857_v51 = vsel %vm2554_vm6, 1.0, %v8586_v10  ;;  %v3858_v14 = vsel %vm2555_vm12, 1.0, %v8586_v10  ;;  %vm2536_vm10 = vcmp.eq.s32.totalorder %v5046_v52, %v2492_v40  ;;  %vm2537_vm5 = vcmp.eq.s32.totalorder %v5052_v33, %v2492_v40 }
 0x2c5   : > { %v7549_v45 = vadd.f32 %v3857_v51, %v7333_v44  ;;  %v7552_v34 = vadd.f32 %v3858_v14, %v7335_v46  ;;  %v3839_v17 = vsel %vm2536_vm10, 1.0, %v8586_v10  ;;  %v3840_v41 = vsel %vm2537_vm5, 1.0, %v8586_v10  ;;  %v3203_v44 = vld [vmem:[%s8120_s1 + $0x78] sm:$0xff] }
 0x2c6   : > { %4193 = vset.pattern.permute.xlu2 %v8788_v31  ;;  %v3219_v46 = vld [vmem:[%s8120_s1 + $0xf8] sm:$0xff]  ;;  %v7568_v2 = vadd.f32 %v3839_v17, %v7290_v36  ;;  %v7571_v0 = vadd.f32 %v3840_v41, %v7293_v5  ;;  %3220 = vmatpush.msra.mxu0 %v3203_v44  ;;  %v3201_v36 = vld [vmem:[%s8120_s1 + $0x68] sm:$0xff] }
 0x2c7   : > { %4192 = vset.pattern.permute.xlu1 %v8788_v31  ;;  %3046 = vperm.xlu2 %4193, %v8799_v29   ;;  %v3216_v29 = vld [vmem:[%s8120_s1 + $0xe0] sm:$0xff]  ;;  %v3199_v17 = vld [vmem:[%s8120_s1 + $0x58] sm:$0xff] }
 0x2c8   : > { %3019 = vperm.xlu1 %4192, %v6855_v48   ;;  %3285 = vmatpush.msra.mxu1 %v3219_v46  ;;  %v3215_v41 = vld [vmem:[%s8120_s1 + $0xd8] sm:$0xff] }
 0x2c9   : > { %3969 = vmatpush.msra.mxu2 %v3203_v44  ;;  %3221 = vmatpush.msra.mxu0 %v3202_v60  ;;  %v2683_v44 = vpop.permute.xlu0 %2682 }
 0x2ca   : > { %v2528_v5 = vpop.permute.xlu2 %2527  ;;  %3985 = vmatpush.msra.mxu3 %v3219_v46  ;;  %3286 = vmatpush.msra.mxu1 %v3218_v24  ;;  %v8802_v46 = vld [vmem:[#allocation88_spill] sm:$0xff]  ;;  %vm2722_vm9 = vcmp.eq.s32.totalorder %v5046_v52, %v2683_v44  ;;  %vm2723_vm7 = vcmp.eq.s32.totalorder %v5052_v33, %v2683_v44 }
 0x2cb   : > { %vm2560_vm2 = vcmp.eq.s32.totalorder %v5046_v52, %v2528_v5  ;;  %vm2561_vm4 = vcmp.eq.s32.totalorder %v5052_v33, %v2528_v5  ;;  %3970 = vmatpush.msra.mxu2 %v3202_v60  ;;  %v2498_v57 = vpop.permute.xlu1 %2497  ;;  %3222 = vmatpush.msra.mxu0 %v3201_v36  ;;  %v3197_v60 = vld [vmem:[%s8120_s1 + $0x48] sm:$0xff]  ;;  %v3881_v5 = vsel %vm2722_vm9, 1.0, %v8586_v10 }
 0x2cc   : > { %v3863_v48 = vsel %vm2560_vm2, 1.0, %v8586_v10  ;;  %v3864_v16 = vsel %vm2561_vm4, 1.0, %v8586_v10  ;;  %3986 = vmatpush.msra.mxu3 %v3218_v24  ;;  %vm2540_vm14 = vcmp.eq.s32.totalorder %v5046_v52, %v2498_v57  ;;  %vm2541_vm11 = vcmp.eq.s32.totalorder %v5052_v33, %v2498_v57  ;;  %3287 = vmatpush.msra.mxu1 %v3217_v1 }
 0x2cd   : > { %v7599_v49 = vadd.f32 %v3863_v48, %v7359_v22  ;;  %v7602_v51 = vadd.f32 %v3864_v16, %v7361_v47  ;;  %v3843_v14 = vsel %vm2540_vm14, 1.0, %v8586_v10  ;;  %v3844_v40 = vsel %vm2541_vm11, 1.0, %v8586_v10  ;;  %3223 = vmatpush.msra.mxu0 %v3200_v23  ;;  %3971 = vmatpush.msra.mxu2 %v3201_v36  ;;  %v3213_v36 = vld [vmem:[%s8120_s1 + $0xc8] sm:$0xff] }
 0x2ce   : > { %v7612_v22 = vadd.f32 %v3843_v14, %v7322_v38  ;;  %v7615_v47 = vadd.f32 %v3844_v40, %v7325_v58  ;;  %3288 = vmatpush.msra.mxu1 %v3216_v29  ;;  %v3198_v38 = vld [vmem:[%s8120_s1 + $0x50] sm:$0xff]  ;;  %3987 = vmatpush.msra.mxu3 %v3217_v1  ;;  %v3882_v48 = vsel %vm2723_vm7, 1.0, %v8586_v10  ;;  %v3196_v1 = vld [vmem:[%s8120_s1 + $0x40] sm:$0xff] }
 0x2cf   : > { %4195 = vset.pattern.permute.xlu2 %v8793_v21  ;;  %3224 = vmatpush.msra.mxu0 %v3199_v17  ;;  %v3214_v58 = vld [vmem:[%s8120_s1 + $0xd0] sm:$0xff]  ;;  %v3212_v14 = vld [vmem:[%s8120_s1 + $0xc0] sm:$0xff] }
 0x2d0   : > { %4194 = vset.pattern.permute.xlu1 %v8793_v21  ;;  %2873 = vperm.xlu2 %4195, %v8802_v46  }
 0x2d1   : > { %2846 = vperm.xlu1 %4194, %v6927_v13   ;;  %3289 = vmatpush.msra.mxu1 %v3215_v41 }
 0x2d2   : > { %3225 = vmatpush.msra.mxu0 %v3198_v38  ;;  %3972 = vmatpush.msra.mxu2 %v3200_v23 }
 0x2d3   : > { %v2665_v24 = vpop.permute.xlu2 %2664  ;;  %v2507_v16 = vpop.permute.xlu1 %2506  ;;  %3290 = vmatpush.msra.mxu1 %v3214_v58  ;;  %3988 = vmatpush.msra.mxu3 %v3216_v29 }
 0x2d4   : > { %vm2710_vm13 = vcmp.eq.s32.totalorder %v5046_v52, %v2665_v24  ;;  %vm2711_vm3 = vcmp.eq.s32.totalorder %v5052_v33, %v2665_v24  ;;  %vm2546_vm1 = vcmp.eq.s32.totalorder %v5046_v52, %v2507_v16  ;;  %vm2547_vm15 = vcmp.eq.s32.totalorder %v5052_v33, %v2507_v16  ;;  %3226 = vmatpush.msra.mxu0 %v3197_v60 }
 0x2d5   : > { %v3869_v57 = vsel %vm2710_vm13, 1.0, %v8586_v10  ;;  %v3870_v23 = vsel %vm2711_vm3, 1.0, %v8586_v10  ;;  %3973 = vmatpush.msra.mxu2 %v3199_v17  ;;  %v3849_v40 = vsel %vm2546_vm1, 1.0, %v8586_v10  ;;  %v3850_v44 = vsel %vm2547_vm15, 1.0, %v8586_v10  ;;  %3291 = vmatpush.msra.mxu1 %v3213_v36  ;;  %v3195_v17 = vld [vmem:[%s8120_s1 + $0x38] sm:$0xff] }
 0x2d6   : > { %v7655_v29 = vadd.f32 %v3869_v57, %v7390_v50  ;;  %v7658_v24 = vadd.f32 %v3870_v23, %v7392_v62  ;;  %3989 = vmatpush.msra.mxu3 %v3215_v41  ;;  %v2642_v16 = vadd.f32 %v3849_v40, %v7352_v53  ;;  %v2643_v56 = vadd.f32 %v3850_v44, %v7355_v37  ;;  %v3211_v50 = vld [vmem:[%s8120_s1 + $0xb8] sm:$0xff]  ;;  %v3194_v53 = vld [vmem:[%s8120_s1 + $0x30] sm:$0xff]  ;;  %v3208_v44 = vld [vmem:[%s8120_s1 + $0xa0] sm:$0xff] }
 0x2d7   : > { %3227 = vmatpush.msra.mxu0 %v3196_v1  ;;  %3974 = vmatpush.msra.mxu2 %v3198_v38  ;;  %v3210_v41 = vld [vmem:[%s8120_s1 + $0xb0] sm:$0xff] }
 0x2d8   : > { %4197 = vset.pattern.permute.xlu2 %v8788_v31  ;;  %3292 = vmatpush.msra.mxu1 %v3212_v14  ;;  %v7674_v37 = vadd.f32 %v3881_v5, %v2642_v16  ;;  %v7676_v62 = vadd.f32 %v3882_v48, %v2643_v56 }
 0x2d9   : > { %4196 = vset.pattern.permute.xlu1 %v8788_v31  ;;  %3049 = vperm.xlu2 %4197, %v8802_v46   ;;  %v3193_v46 = vld [vmem:[%s8120_s1 + $0x28] sm:$0xff] }
 0x2da   : > { %3022 = vperm.xlu1 %4196, %v6927_v13   ;;  %3228 = vmatpush.msra.mxu0 %v3195_v17  ;;  %v3209_v13 = vld [vmem:[%s8120_s1 + $0xa8] sm:$0xff] }
 0x2db   : > { %v2674_v38 = vpop.permute.xlu2 %2673  ;;  %3293 = vmatpush.msra.mxu1 %v3211_v50  ;;  %3990 = vmatpush.msra.mxu3 %v3214_v58  ;;  %v2516_v57 = vpop.permute.xlu1 %2515  ;;  %v3192_v58 = vld [vmem:[%s8120_s1 + $0x20] sm:$0xff] }
 0x2dc   : > { %vm2716_vm8 = vcmp.eq.s32.totalorder %v5046_v52, %v2674_v38  ;;  %vm2717_vm0 = vcmp.eq.s32.totalorder %v5052_v33, %v2674_v38  ;;  %3229 = vmatpush.msra.mxu0 %v3194_v53  ;;  %3975 = vmatpush.msra.mxu2 %v3197_v60  ;;  %vm2552_vm6 = vcmp.eq.s32.totalorder %v5046_v52, %v2516_v57 }
 0x2dd   : > { %vm2553_vm12 = vcmp.eq.s32.totalorder %v5052_v33, %v2516_v57  ;;  %v3875_v56 = vsel %vm2716_vm8, 1.0, %v8586_v10  ;;  %v3876_v5 = vsel %vm2717_vm0, 1.0, %v8586_v10  ;;  %3294 = vmatpush.msra.mxu1 %v3210_v41  ;;  %3991 = vmatpush.msra.mxu3 %v3213_v36  ;;  %v3855_v48 = vsel %vm2552_vm6, 1.0, %v8586_v10  ;;  %v3189_v57 = vld [vmem:[%s8120_s1 + $0x8] sm:$0xff] }
 0x2de   : > { %v3856_v23 = vsel %vm2553_vm12, 1.0, %v8586_v10  ;;  %v7700_v60 = vadd.f32 %v3875_v56, %v7612_v22  ;;  %v7703_v40 = vadd.f32 %v3876_v5, %v7615_v47  ;;  %3230 = vmatpush.msra.mxu0 %v3193_v46  ;;  %3976 = vmatpush.msra.mxu2 %v3196_v1  ;;  %v7709_v16 = vadd.f32 %v3855_v48, %v7377_v32  ;;  %v3191_v22 = vld [vmem:[%s8120_s1 + $0x18] sm:$0xff]  ;;  %v8803_v32 = vld [vmem:[#allocation93_spill] sm:$0xff]  ;;  %v8804_v1 = vld [vmem:[#allocation90_spill] sm:$0xff] }
 0x2df   : > { %v7712_v36 = vadd.f32 %v3856_v23, %v7380_v39  ;;  %3295 = vmatpush.msra.mxu1 %v3209_v13  ;;  %3992 = vmatpush.msra.mxu3 %v3212_v14  ;;  %v3207_v47 = vld [vmem:[%s8120_s1 + $0x98] sm:$0xff]  ;;  %v3190_v39 = vld [vmem:[%s8120_s1 + $0x10] sm:$0xff]  ;;  %v3205_v48 = vld [vmem:[%s8120_s1 + $0x88] sm:$0xff] }
 0x2e0   : > { %3231 = vmatpush.msra.mxu0 %v3192_v58  ;;  %3977 = vmatpush.msra.mxu2 %v3195_v17  ;;  %v3206_v17 = vld [vmem:[%s8120_s1 + $0x90] sm:$0xff] }
 0x2e1   : > { %4199 = vset.pattern.permute.xlu2 %v8793_v21  ;;  %3296 = vmatpush.msra.mxu1 %v3208_v44 }
 0x2e2   : > { %4198 = vset.pattern.permute.xlu1 %v8793_v21  ;;  %2876 = vperm.xlu2 %4199, %v8803_v32  }
 0x2e3   : > { %2849 = vperm.xlu1 %4198, %v8804_v1   ;;  %v2680_v14 = vpop.permute.xlu2 %2679  ;;  %3232 = vmatpush.msra.mxu0 %v3191_v22  ;;  %v2525_v38 = vpop.permute.xlu1 %2524 }
 0x2e4   : > { %vm2720_vm10 = vcmp.eq.s32.totalorder %v5046_v52, %v2680_v14  ;;  %vm2721_vm5 = vcmp.eq.s32.totalorder %v5052_v33, %v2680_v14  ;;  %3297 = vmatpush.msra.mxu1 %v3207_v47  ;;  %3993 = vmatpush.msra.mxu3 %v3211_v50  ;;  %vm2558_vm2 = vcmp.eq.s32.totalorder %v5046_v52, %v2525_v38 }
 0x2e5   : > { %vm2559_vm4 = vcmp.eq.s32.totalorder %v5052_v33, %v2525_v38  ;;  %v3879_v56 = vsel %vm2720_vm10, 1.0, %v8586_v10  ;;  %v3880_v5 = vsel %vm2721_vm5, 1.0, %v8586_v10  ;;  %3233 = vmatpush.msra.mxu0 %v3190_v39  ;;  %3978 = vmatpush.msra.mxu2 %v3194_v53  ;;  %v3861_v50 = vsel %vm2558_vm2, 1.0, %v8586_v10  ;;  %v3188_v53 = vld [vmem:[%s8120_s1] sm:$0xff] }
 0x2e6   : > { %v3862_v23 = vsel %vm2559_vm4, 1.0, %v8586_v10  ;;  %v7745_v1 = vadd.f32 %v3879_v56, %v7448_v6  ;;  %v7748_v14 = vadd.f32 %v3880_v5, %v7450_v15  ;;  %3298 = vmatpush.msra.mxu1 %v3206_v17  ;;  %3994 = vmatpush.msra.mxu3 %v3210_v41  ;;  %v7754_v38 = vadd.f32 %v3861_v50, %v7405_v4  ;;  %v3204_v6 = vld [vmem:[%s8120_s1 + $0x80] sm:$0xff]  ;;  %v8805_v4 = vld [vmem:[#allocation18_spill] sm:$0xff] }
 0x2e7   : > { %v7757_v28 = vadd.f32 %v3862_v23, %v7408_v55  ;;  %3234 = vmatpush.msra.mxu0 %v3189_v57  ;;  %3979 = vmatpush.msra.mxu2 %v3193_v46  ;;  %v8806_v5 = vld [vmem:[#allocation89_spill] sm:$0xff]  ;;  %vm3076_vm10 = vcmp.eq.s32.totalorder %v5046_v52, %v7414_v63  ;;  %vm3077_vm5 = vcmp.eq.s32.totalorder %v5052_v33, %v7414_v63 }
 0x2e8   : > { %3299 = vmatpush.msra.mxu1 %v3205_v48  ;;  %3995 = vmatpush.msra.mxu3 %v3209_v13 }
 0x2e9   : > { %3235 = vmatpush.msra.mxu0 %v3188_v53  ;;  %3980 = vmatpush.msra.mxu2 %v3192_v58 }
 0x2ea   : > { %4202 = vset.pattern.permute.xlu2 %v8794_v20  ;;  %3300 = vmatpush.msra.mxu1 %v3204_v6 }
 0x2eb   : > { %4201 = vset.pattern.permute.xlu1 %v8788_v31  ;;  %2703 = vperm.xlu2 %4202, %v8805_v4  }
 0x2ec   : > { %3052 = vperm.xlu1 %4201, %v8803_v32   ;;  %v7766_v55 = vpop.permute.xlu2 %2861  ;;  %3996 = vmatpush.msra.mxu3 %v3208_v44 }
 0x2ed   : > { %v2662_v15 = vpop.permute.xlu1 %2661  ;;  %3981 = vmatpush.msra.mxu2 %v3191_v22  ;;  %vm2900_vm6 = vcmp.eq.s32.totalorder %v5046_v52, %v7766_v55  ;;  %vm2901_vm12 = vcmp.eq.s32.totalorder %v5052_v33, %v7766_v55 }
 0x2ee   : > { %3997 = vmatpush.msra.mxu3 %v3207_v47  ;;  %vm2708_vm14 = vcmp.eq.s32.totalorder %v5046_v52, %v2662_v15  ;;  %vm2709_vm11 = vcmp.eq.s32.totalorder %v5052_v33, %v2662_v15 }
 0x2ef   : > { %3982 = vmatpush.msra.mxu2 %v3190_v39  ;;  %v3867_v44 = vsel %vm2708_vm14, 1.0, %v8586_v10  ;;  %v3868_v22 = vsel %vm2709_vm11, 1.0, %v8586_v10 }
 0x2f0   : > { %3998 = vmatpush.msra.mxu3 %v3206_v17  ;;  %v2804_v17 = vadd.f32 %v3867_v44, %v7440_v54  ;;  %v3948_v44 = vsel %vm3077_vm5, 1.0, %v8586_v10 }
 0x2f1   : > { %3983 = vmatpush.msra.mxu2 %v3189_v57  ;;  %v2805_v57 = vadd.f32 %v3868_v22, %v7442_v35 }
 0x2f2   : > { %3999 = vmatpush.msra.mxu3 %v3205_v48 }
 0x2f3   : > { %4204 = vset.pattern.permute.xlu2 %v8793_v21  ;;  %3984 = vmatpush.msra.mxu2 %v3188_v53 }
 0x2f4   : > { %4203 = vset.pattern.permute.xlu1 %v8793_v21  ;;  %2879 = vperm.xlu2 %4204, %v8805_v4   ;;  %v2838_v41 = vpop.permute.xlu2 %2837 }
 0x2f5   : > { %2852 = vperm.xlu1 %4203, %v8787_v30   ;;  %v2671_v46 = vpop.permute.xlu1 %2670  ;;  %4000 = vmatpush.msra.mxu3 %v3204_v6  ;;  %vm2884_vm13 = vcmp.eq.s32.totalorder %v5046_v52, %v2838_v41  ;;  %vm2885_vm3 = vcmp.eq.s32.totalorder %v5052_v33, %v2838_v41 }
 0x2f6   : > { %vm2714_vm9 = vcmp.eq.s32.totalorder %v5046_v52, %v2671_v46  ;;  %vm2715_vm7 = vcmp.eq.s32.totalorder %v5052_v33, %v2671_v46  ;;  %v3899_v32 = vsel %vm2884_vm13, 1.0, %v8586_v10  ;;  %v3900_v39 = vsel %vm2885_vm3, 1.0, %v8586_v10 }
 0x2f7   : > { %v3873_v13 = vsel %vm2714_vm9, 1.0, %v8586_v10  ;;  %v3874_v58 = vsel %vm2715_vm7, 1.0, %v8586_v10  ;;  %v2980_v48 = vadd.f32 %v3899_v32, %v2804_v17  ;;  %v2981_v50 = vadd.f32 %v3900_v39, %v2805_v57 }
 0x2f8   : > { %v7783_v30 = vadd.f32 %v3873_v13, %v7463_v27  ;;  %v7786_v47 = vadd.f32 %v3874_v58, %v7465_v25  ;;  %vm3078_vm13 = vcmp.eq.s32.totalorder %v5046_v52, %v7446_v42  ;;  %vm3079_vm3 = vcmp.eq.s32.totalorder %v5052_v33, %v7446_v42 }
 0x2fc   : > { %4206 = vset.pattern.permute.xlu2 %v8794_v20 }
 0x2fd   : > { %4205 = vset.pattern.permute.xlu1 %v8788_v31  ;;  %v2677_v56 = vpop.permute.xlu1 %2676  ;;  %2706 = vperm.xlu2 %4206, %v8806_v5   ;;  %v3014_v27 = vpop.permute.xlu2 %3013 }
 0x2fe   : > { %vm2718_vm1 = vcmp.eq.s32.totalorder %v5046_v52, %v2677_v56  ;;  %vm2719_vm15 = vcmp.eq.s32.totalorder %v5052_v33, %v2677_v56  ;;  %3055 = vperm.xlu1 %4205, %v8805_v4   ;;  %vm3060_vm8 = vcmp.eq.s32.totalorder %v5046_v52, %v3014_v27  ;;  %vm3061_vm0 = vcmp.eq.s32.totalorder %v5052_v33, %v3014_v27  ;;  %v8807_v56 = vld [vmem:[#allocation96_spill] sm:$0xff] }
 0x2ff   : > { %v3877_v20 = vsel %vm2718_vm1, 1.0, %v8586_v10  ;;  %v3878_v54 = vsel %vm2719_vm15, 1.0, %v8586_v10  ;;  %v3931_v35 = vsel %vm3060_vm8, 1.0, %v8586_v10  ;;  %v3932_v25 = vsel %vm3061_vm0, 1.0, %v8586_v10 }
 0x300   : > { %v7805_v23 = vadd.f32 %v3877_v20, %v7490_v9  ;;  %v7808_v53 = vadd.f32 %v3878_v54, %v7493_v7  ;;  %v3156_v6 = vadd.f32 %v3931_v35, %v2980_v48  ;;  %v3157_v4 = vadd.f32 %v3932_v25, %v2981_v50 }
 0x301   : > { %v3915_v9 = vsel %vm2900_vm6, 1.0, %v8586_v10  ;;  %v3916_v7 = vsel %vm2901_vm12, 1.0, %v8586_v10  ;;  %vm2550_vm14 = vcmp.eq.s32.totalorder %v5046_v52, %v8807_v56  ;;  %vm2551_vm11 = vcmp.eq.s32.totalorder %v5052_v33, %v8807_v56 }
 0x302   : > { %3236 = vmatmul.f32.vlgmr.msra.gmra.mxu0 %v3156_v6  ;;  %3301 = vmatmul.f32.vlgmr.msra.gmra.mxu1 %v3157_v4  ;;  %v3854_v27 = vsel %vm2551_vm11, 1.0, %v8586_v10  ;;  %v3949_v6 = vsel %vm3078_vm13, 1.0, %v8586_v10  ;;  %v3950_v4 = vsel %vm3079_vm3, 1.0, %v8586_v10  ;;  %vm2904_vm8 = vcmp.eq.s32.totalorder %v5046_v52, %v7474_v43 }
 0x303   : > { %vm2905_vm0 = vcmp.eq.s32.totalorder %v5052_v33, %v7474_v43  ;;  %vm2907_vm13 = vcmp.eq.s32.totalorder %v5052_v33, %v7522_v19 }
 0x305   : > { %v2686_v15 = vpop.permute.xlu1 %2685  ;;  %4209 = vset.pattern.permute.xlu2 %v8788_v31 }
 0x306   : > { %vm2724_vm2 = vcmp.eq.s32.totalorder %v5046_v52, %v2686_v15  ;;  %vm2725_vm4 = vcmp.eq.s32.totalorder %v5052_v33, %v2686_v15  ;;  %4208 = vset.pattern.permute.xlu1 %v8793_v21  ;;  %3031 = vperm.xlu2 %4209, %v8795_v59   ;;  %v7828_v46 = vpop.permute.xlu2 %2840  ;;  %v3947_v59 = vsel %vm3076_vm10, 1.0, %v8586_v10 }
 0x307   : > { %v3883_v55 = vsel %vm2724_vm2, 1.0, %v8586_v10  ;;  %v3884_v41 = vsel %vm2725_vm4, 1.0, %v8586_v10  ;;  %2882 = vperm.xlu1 %4208, %v8806_v5   ;;  %vm2886_vm2 = vcmp.eq.s32.totalorder %v5046_v52, %v7828_v46  ;;  %vm2887_vm4 = vcmp.eq.s32.totalorder %v5052_v33, %v7828_v46 }
 0x308   : > { %v2820_v13 = vadd.f32 %v3883_v55, %v7530_v12  ;;  %v2821_v58 = vadd.f32 %v3884_v41, %v7532_v8  ;;  %v8808_v12 = vld [vmem:[#allocation92_spill] sm:$0xff]  ;;  %v3853_v8 = vsel %vm2550_vm14, 1.0, %v8586_v10  ;;  %v3919_v55 = vsel %vm2904_vm8, 1.0, %v8586_v10 }
 0x309   : > { %v3920_v41 = vsel %vm2905_vm0, 1.0, %v8586_v10  ;;  %v3902_v56 = vsel %vm2887_vm4, 1.0, %v8586_v10 }
 0x30a   : > { %v2996_v22 = vadd.f32 %v3915_v9, %v2820_v13  ;;  %v2997_v32 = vadd.f32 %v3916_v7, %v2821_v58  ;;  %v2983_v46 = vadd.f32 %v3902_v56, %v7658_v24 }
 0x30c   : > { %v3172_v39 = vadd.f32 %v3947_v59, %v2996_v22  ;;  %v3173_v17 = vadd.f32 %v3948_v44, %v2997_v32 }
 0x30d   : > { %v2689_v57 = vpop.permute.xlu1 %2688 }
 0x30e   : > { %3260 = vmatmul.f32.vlgmr.msra.gmra.mxu2 %v3172_v39  ;;  %3325 = vmatmul.f32.vlgmr.msra.gmra.mxu3 %v3173_v17  ;;  %vm2726_vm9 = vcmp.eq.s32.totalorder %v5046_v52, %v2689_v57  ;;  %vm2727_vm7 = vcmp.eq.s32.totalorder %v5052_v33, %v2689_v57  ;;  %v3901_v57 = vsel %vm2886_vm2, 1.0, %v8586_v10 }
 0x30f   : > { %4210 = vset.pattern.permute.xlu1 %v8788_v31  ;;  %4211 = vset.pattern.permute.xlu2 %v8793_v21  ;;  %v3044_v63 = vpop.permute.xlu2 %3043  ;;  %v3885_v48 = vsel %vm2726_vm9, 1.0, %v8586_v10  ;;  %v3886_v50 = vsel %vm2727_vm7, 1.0, %v8586_v10  ;;  %v2646_v31 = vadd.f32 %v3853_v8, %v7469_v18  ;;  %v2647_v21 = vadd.f32 %v3854_v27, %v7472_v26 }
 0x310   : > { %3058 = vperm.xlu1 %4210, %v8806_v5   ;;  %2858 = vperm.xlu2 %4211, %v8808_v12   ;;  %vm3080_vm6 = vcmp.eq.s32.totalorder %v5046_v52, %v3044_v63  ;;  %vm3081_vm12 = vcmp.eq.s32.totalorder %v5052_v33, %v3044_v63  ;;  %vm2906_vm7 = vcmp.eq.s32.totalorder %v5046_v52, %v7522_v19 }
 0x311   : > { %v2822_v20 = vadd.f32 %v3885_v48, %v2646_v31  ;;  %v2823_v54 = vadd.f32 %v3886_v50, %v2647_v21  ;;  %v3951_v22 = vsel %vm3080_vm6, 1.0, %v8586_v10  ;;  %v3952_v32 = vsel %vm3081_vm12, 1.0, %v8586_v10  ;;  %v8809_v21 = vld [vmem:[#allocation97_spill] sm:$0xff] }
 0x312   : > { %vm2556_vm9 = vcmp.eq.s32.totalorder %v5046_v52, %v8809_v21  ;;  %vm2557_vm3 = vcmp.eq.s32.totalorder %v5052_v33, %v8809_v21  ;;  %v3921_v24 = vsel %vm2906_vm7, 1.0, %v8586_v10 }
 0x316   : > { %v2865_v5 = vpop.permute.xlu1 %2864 }
 0x317   : > { %vm2902_vm1 = vcmp.eq.s32.totalorder %v5046_v52, %v2865_v5  ;;  %vm2903_vm15 = vcmp.eq.s32.totalorder %v5052_v33, %v2865_v5  ;;  %v3922_v5 = vsel %vm2907_vm13, 1.0, %v8586_v10 }
 0x318   : > { %v3917_v35 = vsel %vm2902_vm1, 1.0, %v8586_v10  ;;  %v3918_v25 = vsel %vm2903_vm15, 1.0, %v8586_v10  ;;  %v7863_v42 = vpop.permute.xlu2 %2843  ;;  %vm2712_vm1 = vcmp.eq.s32.totalorder %v5046_v52, %v7556_v3  ;;  %vm2713_vm15 = vcmp.eq.s32.totalorder %v5052_v33, %v7556_v3 }
 0x319   : > { %v2998_v18 = vadd.f32 %v3917_v35, %v2822_v20  ;;  %v2999_v15 = vadd.f32 %v3918_v25, %v2823_v54  ;;  %v2698_v54 = vpop.permute.xlu0 %2697  ;;  %v3871_v19 = vsel %vm2712_vm1, 1.0, %v8586_v10 }
 0x31a   : > { %vm2732_vm2 = vcmp.eq.s32.totalorder %v5046_v52, %v2698_v54  ;;  %vm2733_vm4 = vcmp.eq.s32.totalorder %v5052_v33, %v2698_v54 }
 0x31b   : > { %v3174_v26 = vadd.f32 %v3949_v6, %v2998_v18  ;;  %v3175_v9 = vadd.f32 %v3950_v4, %v2999_v15  ;;  %v3872_v6 = vsel %vm2713_vm15, 1.0, %v8586_v10  ;;  %v3860_v15 = vsel %vm2557_vm3, 1.0, %v8586_v10 }
 0x31d   : > { %3263 = vmatmul.f32.gmra.mxu2 %v3174_v26  ;;  %3328 = vmatmul.f32.gmra.mxu3 %v3175_v9 }
 0x31f   : > { %v2692_v7 = vpop.permute.xlu1 %2691 }
 0x320   : > { %vm2728_vm10 = vcmp.eq.s32.totalorder %v5046_v52, %v2692_v7  ;;  %vm2729_vm5 = vcmp.eq.s32.totalorder %v5052_v33, %v2692_v7 }
 0x321   : > { %v3887_v13 = vsel %vm2728_vm10, 1.0, %v8586_v10  ;;  %v3888_v58 = vsel %vm2729_vm5, 1.0, %v8586_v10  ;;  %v3047_v59 = vpop.permute.xlu2 %3046  ;;  %vm2888_vm10 = vcmp.eq.s32.totalorder %v5046_v52, %v7863_v42  ;;  %vm2889_vm5 = vcmp.eq.s32.totalorder %v5052_v33, %v7863_v42  ;;  %v2701_v21 = vpop.permute.xlu0 %2700 }
 0x322   : > { %v2824_v43 = vadd.f32 %v3887_v13, %v7709_v16  ;;  %v2825_v44 = vadd.f32 %v3888_v58, %v7712_v36  ;;  %v2982_v36 = vadd.f32 %v3901_v57, %v7655_v29  ;;  %v3859_v29 = vsel %vm2556_vm9, 1.0, %v8586_v10 }
 0x323   : > { %vm3082_vm8 = vcmp.eq.s32.totalorder %v5046_v52, %v3047_v59  ;;  %vm3083_vm0 = vcmp.eq.s32.totalorder %v5052_v33, %v3047_v59  ;;  %v3903_v7 = vsel %vm2888_vm10, 1.0, %v8586_v10  ;;  %v2809_v13 = vadd.f32 %v3872_v6, %v7571_v0 }
 0x324   : > { %v3000_v39 = vadd.f32 %v3919_v55, %v2824_v43  ;;  %v3001_v17 = vadd.f32 %v3920_v41, %v2825_v44  ;;  %v3953_v26 = vsel %vm3082_vm8, 1.0, %v8586_v10  ;;  %v3954_v9 = vsel %vm3083_vm0, 1.0, %v8586_v10 }
 0x325   : > { %v2808_v41 = vadd.f32 %v3871_v19, %v7568_v2  ;;  %v2653_v43 = vadd.f32 %v3860_v15, %v7501_v11  ;;  %v3891_v44 = vsel %vm2732_vm2, 1.0, %v8586_v10  ;;  %vm2734_vm10 = vcmp.eq.s32.totalorder %v5046_v52, %v2701_v21 }
 0x326   : > { %v3176_v63 = vadd.f32 %v3951_v22, %v3000_v39  ;;  %v3177_v16 = vadd.f32 %v3952_v32, %v3001_v17 }
 0x327   : > { %v2984_v22 = vadd.f32 %v3903_v7, %v2808_v41 }
 0x328   : > { %v3017_v12 = vpop.permute.xlu1 %3016  ;;  %3266 = vmatmul.f32.gmra.mxu2 %v3176_v63  ;;  %3331 = vmatmul.f32.gmra.mxu3 %v3177_v16 }
 0x329   : > { %vm3062_vm14 = vcmp.eq.s32.totalorder %v5046_v52, %v3017_v12  ;;  %vm3063_vm11 = vcmp.eq.s32.totalorder %v5052_v33, %v3017_v12 }
 0x32a   : > { %v2874_v8 = vpop.permute.xlu2 %2873  ;;  %v3933_v27 = vsel %vm3062_vm14, 1.0, %v8586_v10  ;;  %v3934_v48 = vsel %vm3063_vm11, 1.0, %v8586_v10 }
 0x32b   : > { %v3158_v50 = vadd.f32 %v3933_v27, %v2982_v36  ;;  %v3159_v31 = vadd.f32 %v3934_v48, %v2983_v46  ;;  %vm2908_vm14 = vcmp.eq.s32.totalorder %v5046_v52, %v2874_v8  ;;  %vm2909_vm11 = vcmp.eq.s32.totalorder %v5052_v33, %v2874_v8 }
 0x32c   : > { %v3923_v32 = vsel %vm2908_vm14, 1.0, %v8586_v10  ;;  %v3924_v39 = vsel %vm2909_vm11, 1.0, %v8586_v10 }
 0x32d   : > { %3239 = vmatmul.f32.gmra.mxu0 %v3158_v50  ;;  %3304 = vmatmul.f32.gmra.mxu1 %v3159_v31 }
 0x331   : > { %v2695_v20 = vpop.permute.xlu1 %2694 }
 0x332   : > { %vm2730_vm6 = vcmp.eq.s32.totalorder %v5046_v52, %v2695_v20  ;;  %vm2731_vm12 = vcmp.eq.s32.totalorder %v5052_v33, %v2695_v20 }
 0x333   : > { %v3889_v35 = vsel %vm2730_vm6, 1.0, %v8586_v10  ;;  %v3890_v25 = vsel %vm2731_vm12, 1.0, %v8586_v10  ;;  %v3050_v3 = vpop.permute.xlu2 %3049 }
 0x334   : > { %v2826_v4 = vadd.f32 %v3889_v35, %v7549_v45  ;;  %v2827_v18 = vadd.f32 %v3890_v25, %v7552_v34  ;;  %v2652_v45 = vadd.f32 %v3859_v29, %v7498_v61  ;;  %v3904_v34 = vsel %vm2889_vm5, 1.0, %v8586_v10 }
 0x335   : > { %v3892_v61 = vsel %vm2733_vm4, 1.0, %v8586_v10  ;;  %vm3084_vm9 = vcmp.eq.s32.totalorder %v5046_v52, %v3050_v3  ;;  %vm3085_vm7 = vcmp.eq.s32.totalorder %v5052_v33, %v3050_v3  ;;  %v2985_v0 = vadd.f32 %v3904_v34, %v2809_v13 }
 0x336   : > { %v3002_v42 = vadd.f32 %v3921_v24, %v2826_v4  ;;  %v3003_v55 = vadd.f32 %v3922_v5, %v2827_v18  ;;  %v2828_v11 = vadd.f32 %v3891_v44, %v2652_v45  ;;  %v2829_v17 = vadd.f32 %v3892_v61, %v2653_v43  ;;  %v3026_v4 = vpop.permute.xlu0 %3025 }
 0x337   : > { %v3955_v36 = vsel %vm3084_vm9, 1.0, %v8586_v10  ;;  %v3956_v46 = vsel %vm3085_vm7, 1.0, %v8586_v10  ;;  %vm3068_vm6 = vcmp.eq.s32.totalorder %v5046_v52, %v3026_v4  ;;  %vm3069_vm12 = vcmp.eq.s32.totalorder %v5052_v33, %v3026_v4 }
 0x338   : > { %v3178_v58 = vadd.f32 %v3953_v26, %v3002_v42  ;;  %v3179_v59 = vadd.f32 %v3954_v9, %v3003_v55  ;;  %v3004_v8 = vadd.f32 %v3923_v32, %v2828_v11  ;;  %v3005_v27 = vadd.f32 %v3924_v39, %v2829_v17 }
 0x339   : > { %vm2735_vm5 = vcmp.eq.s32.totalorder %v5052_v33, %v2701_v21  ;;  %v3939_v26 = vsel %vm3068_vm6, 1.0, %v8586_v10  ;;  %v3940_v9 = vsel %vm3069_vm12, 1.0, %v8586_v10  ;;  %v3893_v55 = vsel %vm2734_vm10, 1.0, %v8586_v10 }
 0x33a   : > { %v3020_v2 = vpop.permute.xlu1 %3019  ;;  %3269 = vmatmul.f32.gmra.mxu2 %v3178_v58  ;;  %3334 = vmatmul.f32.gmra.mxu3 %v3179_v59  ;;  %v3180_v48 = vadd.f32 %v3955_v36, %v3004_v8  ;;  %v3181_v50 = vadd.f32 %v3956_v46, %v3005_v27  ;;  %v3894_v45 = vsel %vm2735_vm5, 1.0, %v8586_v10 }
 0x33b   : > { %vm3064_vm13 = vcmp.eq.s32.totalorder %v5046_v52, %v3020_v2  ;;  %vm3065_vm3 = vcmp.eq.s32.totalorder %v5052_v33, %v3020_v2 }
 0x33c   : > { %v3935_v57 = vsel %vm3064_vm13, 1.0, %v8586_v10  ;;  %v3936_v56 = vsel %vm3065_vm3, 1.0, %v8586_v10  ;;  %v2877_v63 = vpop.permute.xlu2 %2876 }
 0x33d   : > { %v3160_v16 = vadd.f32 %v3935_v57, %v2984_v22  ;;  %v3161_v12 = vadd.f32 %v3936_v56, %v2985_v0  ;;  %vm2910_vm14 = vcmp.eq.s32.totalorder %v5046_v52, %v2877_v63  ;;  %vm2911_vm11 = vcmp.eq.s32.totalorder %v5052_v33, %v2877_v63 }
 0x33e   : > { %v3029_v34 = vpop.permute.xlu0 %3028  ;;  %v3925_v59 = vsel %vm2910_vm14, 1.0, %v8586_v10  ;;  %v3926_v43 = vsel %vm2911_vm11, 1.0, %v8586_v10 }
 0x33f   : > { %3242 = vmatmul.f32.gmra.mxu0 %v3160_v16  ;;  %3307 = vmatmul.f32.gmra.mxu1 %v3161_v12  ;;  %vm3070_vm3 = vcmp.eq.s32.totalorder %v5046_v52, %v3029_v34 }
 0x340   : > { %v3941_v63 = vsel %vm3070_vm3, 1.0, %v8586_v10 }
 0x342   : > { %3272 = vmatmul.f32.gmra.mxu2 %v3180_v48  ;;  %3337 = vmatmul.f32.gmra.mxu3 %v3181_v50 }
 0x343   : > { %v2847_v31 = vpop.permute.xlu1 %2846 }
 0x344   : > { %vm2890_vm1 = vcmp.eq.s32.totalorder %v5046_v52, %v2847_v31  ;;  %vm2891_vm15 = vcmp.eq.s32.totalorder %v5052_v33, %v2847_v31 }
 0x345   : > { %v7958_v29 = vpop.permute.xlu2 %2703  ;;  %v3905_v24 = vsel %vm2890_vm1, 1.0, %v8586_v10  ;;  %v3906_v5 = vsel %vm2891_vm15, 1.0, %v8586_v10  ;;  %vm3071_vm1 = vcmp.eq.s32.totalorder %v5052_v33, %v3029_v34 }
 0x346   : > { %v2986_v54 = vadd.f32 %v3905_v24, %v7783_v30  ;;  %v2987_v19 = vadd.f32 %v3906_v5, %v7786_v47  ;;  %v2856_v11 = vpop.permute.xlu0 %2855  ;;  %vm2736_vm13 = vcmp.eq.s32.totalorder %v5046_v52, %v7958_v29  ;;  %v3942_v16 = vsel %vm3071_vm1, 1.0, %v8586_v10 }
 0x347   : > { %vm2896_vm15 = vcmp.eq.s32.totalorder %v5046_v52, %v2856_v11  ;;  %v3895_v17 = vsel %vm2736_vm13, 1.0, %v8586_v10 }
 0x348   : > { %v3911_v8 = vsel %vm2896_vm15, 1.0, %v8586_v10  ;;  %v2832_v31 = vadd.f32 %v3895_v17, %v7599_v49 }
 0x34c   : > { %v3023_v20 = vpop.permute.xlu1 %3022 }
 0x34d   : > { %vm3066_vm8 = vcmp.eq.s32.totalorder %v5046_v52, %v3023_v20  ;;  %vm3067_vm0 = vcmp.eq.s32.totalorder %v5052_v33, %v3023_v20 }
 0x34e   : > { %v3937_v35 = vsel %vm3066_vm8, 1.0, %v8586_v10  ;;  %v3938_v25 = vsel %vm3067_vm0, 1.0, %v8586_v10  ;;  %v7968_v18 = vpop.permute.xlu2 %2879  ;;  %vm2897_vm8 = vcmp.eq.s32.totalorder %v5052_v33, %v2856_v11  ;;  %vm2737_vm0 = vcmp.eq.s32.totalorder %v5052_v33, %v7958_v29 }
 0x34f   : > { %v3162_v3 = vadd.f32 %v3937_v35, %v2986_v54  ;;  %v3163_v6 = vadd.f32 %v3938_v25, %v2987_v19  ;;  %vm2912_vm10 = vcmp.eq.s32.totalorder %v5046_v52, %v7968_v18  ;;  %vm2913_vm5 = vcmp.eq.s32.totalorder %v5052_v33, %v7968_v18 }
 0x350   : > { %v3896_v46 = vsel %vm2737_vm0, 1.0, %v8586_v10  ;;  %v3912_v50 = vsel %vm2897_vm8, 1.0, %v8586_v10  ;;  %v3927_v21 = vsel %vm2912_vm10, 1.0, %v8586_v10  ;;  %v2992_v54 = vadd.f32 %v3911_v8, %v7745_v1 }
 0x351   : > { %3245 = vmatmul.f32.gmra.mxu0 %v3162_v3  ;;  %3310 = vmatmul.f32.gmra.mxu1 %v3163_v6  ;;  %v3008_v5 = vadd.f32 %v3927_v21, %v2832_v31  ;;  %v2993_v49 = vadd.f32 %v3912_v50, %v7748_v14  ;;  %v3035_v3 = vpop.permute.xlu0 %3034 }
 0x352   : > { %vm3074_vm13 = vcmp.eq.s32.totalorder %v5046_v52, %v3035_v3  ;;  %vm3075_vm3 = vcmp.eq.s32.totalorder %v5052_v33, %v3035_v3 }
 0x355   : > { %v2850_v15 = vpop.permute.xlu1 %2849 }
 0x356   : > { %vm2892_vm2 = vcmp.eq.s32.totalorder %v5046_v52, %v2850_v15  ;;  %vm2893_vm4 = vcmp.eq.s32.totalorder %v5052_v33, %v2850_v15 }
 0x357   : > { %v3907_v30 = vsel %vm2892_vm2, 1.0, %v8586_v10  ;;  %v3908_v47 = vsel %vm2893_vm4, 1.0, %v8586_v10  ;;  %v7986_v58 = vpop.permute.xlu2 %2706 }
 0x358   : > { %v2988_v7 = vadd.f32 %v3907_v30, %v7700_v60  ;;  %v2989_v42 = vadd.f32 %v3908_v47, %v7703_v40  ;;  %v2830_v60 = vadd.f32 %v3893_v55, %v7754_v38  ;;  %v2831_v40 = vadd.f32 %v3894_v45, %v7757_v28 }
 0x359   : > { %vm2738_vm1 = vcmp.eq.s32.totalorder %v5046_v52, %v7986_v58  ;;  %vm2739_vm15 = vcmp.eq.s32.totalorder %v5052_v33, %v7986_v58 }
 0x35a   : > { %v3164_v41 = vadd.f32 %v3939_v26, %v2988_v7  ;;  %v3165_v13 = vadd.f32 %v3940_v9, %v2989_v42  ;;  %v3006_v61 = vadd.f32 %v3925_v59, %v2830_v60  ;;  %v3007_v22 = vadd.f32 %v3926_v43, %v2831_v40  ;;  %v8810_v59 = vld [vmem:[#allocation99_spill] sm:$0xff]  ;;  %v8811_v60 = vld [vmem:[#allocation30_spill] sm:$0xff] }
 0x35b   : > { %v3945_v26 = vsel %vm3074_vm13, 1.0, %v8586_v10  ;;  %v3946_v9 = vsel %vm3075_vm3, 1.0, %v8586_v10 }
 0x35c   : > { %3248 = vmatmul.f32.gmra.mxu0 %v3164_v41  ;;  %3313 = vmatmul.f32.gmra.mxu1 %v3165_v13 }
 0x35e   : > { %v3053_v44 = vpop.permute.xlu1 %3052 }
 0x35f   : > { %vm3086_vm9 = vcmp.eq.s32.totalorder %v5046_v52, %v3053_v44  ;;  %vm3087_vm7 = vcmp.eq.s32.totalorder %v5052_v33, %v3053_v44 }
 0x360   : > { %v3957_v2 = vsel %vm3086_vm9, 1.0, %v8586_v10  ;;  %v3958_v0 = vsel %vm3087_vm7, 1.0, %v8586_v10  ;;  %v3032_v28 = vpop.permute.xlu2 %3031 }
 0x361   : > { %v3182_v32 = vadd.f32 %v3957_v2, %v3006_v61  ;;  %v3183_v39 = vadd.f32 %v3958_v0, %v3007_v22  ;;  %vm3072_vm2 = vcmp.eq.s32.totalorder %v5046_v52, %v3032_v28  ;;  %vm3073_vm4 = vcmp.eq.s32.totalorder %v5052_v33, %v3032_v28 }
 0x362   : > { %v3944_v19 = vsel %vm3073_vm4, 1.0, %v8586_v10 }
 0x363   : > { %3275 = vmatmul.f32.gmra.mxu2 %v3182_v32  ;;  %3340 = vmatmul.f32.gmra.mxu3 %v3183_v39  ;;  %v3169_v4 = vadd.f32 %v3944_v19, %v2993_v49 }
 0x367   : > { %v2853_v38 = vpop.permute.xlu1 %2852 }
 0x368   : > { %vm2894_vm6 = vcmp.eq.s32.totalorder %v5046_v52, %v2853_v38  ;;  %vm2895_vm12 = vcmp.eq.s32.totalorder %v5052_v33, %v2853_v38 }
 0x369   : > { %v3909_v57 = vsel %vm2894_vm6, 1.0, %v8586_v10  ;;  %v3910_v56 = vsel %vm2895_vm12, 1.0, %v8586_v10 }
 0x36a   : > { %v2990_v12 = vadd.f32 %v3909_v57, %v7805_v23  ;;  %v2991_v36 = vadd.f32 %v3910_v56, %v7808_v53  ;;  %v3928_v23 = vsel %vm2913_vm5, 1.0, %v8586_v10  ;;  %v2833_v53 = vadd.f32 %v3896_v46, %v7602_v51  ;;  %v2859_v29 = vpop.permute.xlu2 %2858 }
 0x36b   : > { %v3943_v51 = vsel %vm3072_vm2, 1.0, %v8586_v10  ;;  %vm2898_vm9 = vcmp.eq.s32.totalorder %v5046_v52, %v2859_v29  ;;  %vm2899_vm7 = vcmp.eq.s32.totalorder %v5052_v33, %v2859_v29 }
 0x36c   : > { %v3166_v27 = vadd.f32 %v3941_v63, %v2990_v12  ;;  %v3167_v48 = vadd.f32 %v3942_v16, %v2991_v36  ;;  %v3009_v20 = vadd.f32 %v3928_v23, %v2833_v53  ;;  %v3168_v14 = vadd.f32 %v3943_v51, %v2992_v54 }
 0x36d   : > { %v3913_v18 = vsel %vm2898_vm9, 1.0, %v8586_v10  ;;  %v3914_v15 = vsel %vm2899_vm7, 1.0, %v8586_v10 }
 0x36e   : > { %3251 = vmatmul.f32.gmra.mxu0 %v3166_v27  ;;  %3316 = vmatmul.f32.gmra.mxu1 %v3167_v48  ;;  %v2994_v30 = vadd.f32 %v3913_v18, %v7674_v37  ;;  %v2995_v47 = vadd.f32 %v3914_v15, %v7676_v62  ;;  %v3897_v37 = vsel %vm2738_vm1, 1.0, %v8586_v10  ;;  %v3898_v62 = vsel %vm2739_vm15, 1.0, %v8586_v10 }
 0x36f   : > { %v2834_v43 = vadd.f32 %v3897_v37, %v8810_v59  ;;  %v2835_v40 = vadd.f32 %v3898_v62, %v8811_v60 }
 0x370   : > { %v3056_v24 = vpop.permute.xlu1 %3055  ;;  %v3170_v42 = vadd.f32 %v3945_v26, %v2994_v30  ;;  %v3171_v55 = vadd.f32 %v3946_v9, %v2995_v47 }
 0x371   : > { %vm3088_vm14 = vcmp.eq.s32.totalorder %v5046_v52, %v3056_v24  ;;  %vm3089_vm11 = vcmp.eq.s32.totalorder %v5052_v33, %v3056_v24 }
 0x372   : > { %v3959_v35 = vsel %vm3088_vm14, 1.0, %v8586_v10  ;;  %v3960_v25 = vsel %vm3089_vm11, 1.0, %v8586_v10 }
 0x373   : > { %v3184_v1 = vadd.f32 %v3959_v35, %v3008_v5  ;;  %v3185_v6 = vadd.f32 %v3960_v25, %v3009_v20 }
 0x375   : > { %3278 = vmatmul.f32.gmra.mxu2 %v3184_v1  ;;  %3343 = vmatmul.f32.gmra.mxu3 %v3185_v6 }
 0x376   : > { %3254 = vmatmul.f32.gmra.mxu0 %v3168_v14  ;;  %3319 = vmatmul.f32.gmra.mxu1 %v3169_v4 }
 0x379   : > { %v2883_v7 = vpop.permute.xlu1 %2882 }
 0x37a   : > { %vm2914_vm8 = vcmp.eq.s32.totalorder %v5046_v52, %v2883_v7  ;;  %vm2915_vm0 = vcmp.eq.s32.totalorder %v5052_v33, %v2883_v7 }
 0x37b   : > { %v3929_v41 = vsel %vm2914_vm8, 1.0, %v8586_v10  ;;  %v3930_v13 = vsel %vm2915_vm0, 1.0, %v8586_v10 }
 0x37c   : > { %v3010_v61 = vadd.f32 %v3929_v41, %v2834_v43  ;;  %v3011_v22 = vadd.f32 %v3930_v13, %v2835_v40 }
 0x37e   : > { %3257 = vmatmul.f32.gmra.mxu0 %v3170_v42  ;;  %3322 = vmatmul.f32.gmra.mxu1 %v3171_v55 }
 0x37f   : > { %v3237_v45 = vpop.f32.mrf.mxu0  ;;  %v3302_v34 = vpop.f32.mrf.mxu1 }
 0x380   : > { %v3303_v58 = vadd.f32 %v3302_v34, %v3237_v45 }
 0x382   : > { %3350 = vst [vmem:[%s8063_s7] sm:$0xff] %v3303_v58  ;;  %v3059_v44 = vpop.permute.xlu1 %3058 }
 0x383   : > { %vm3090_vm6 = vcmp.eq.s32.totalorder %v5046_v52, %v3059_v44  ;;  %vm3091_vm12 = vcmp.eq.s32.totalorder %v5052_v33, %v3059_v44 }
 0x384   : > { %v3961_v2 = vsel %vm3090_vm6, 1.0, %v8586_v10  ;;  %v3962_v0 = vsel %vm3091_vm12, 1.0, %v8586_v10 }
 0x385   : > { %v3186_v32 = vadd.f32 %v3961_v2, %v3010_v61  ;;  %v3187_v39 = vadd.f32 %v3962_v0, %v3011_v22 }
 0x387   : > { %3281 = vmatmul.f32.gmra.mxu2 %v3186_v32  ;;  %3346 = vmatmul.f32.gmra.mxu3 %v3187_v39 }
 0x391   : > { %v3261_v11 = vpop.f32.mrf.mxu2  ;;  %v3326_v28 = vpop.f32.mrf.mxu3 }
 0x392   : > { %v3327_v38 = vadd.f32 %v3326_v28, %v3261_v11 }
 0x394   : > { %3358 = vst [vmem:[%s8063_s7 + $0x40] sm:$0xff] %v3327_v38 }
 0x3a0   : > { %v3264_v52 = vpop.f32.mrf.mxu2  ;;  %v3329_v17 = vpop.f32.mrf.mxu3 }
 0x3a1   : > { %v3330_v33 = vadd.f32 %v3329_v17, %v3264_v52 }
 0x3a3   : > { %3359 = vst [vmem:[%s8063_s7 + $0x48] sm:$0xff] %v3330_v33 }
 0x3aa   : > { %v3240_v57 = vpop.f32.mrf.mxu0  ;;  %v3305_v56 = vpop.f32.mrf.mxu1 }
 0x3ab   : > { %v3306_v63 = vadd.f32 %v3305_v56, %v3240_v57  ;;  %v3267_v10 = vpop.f32.mrf.mxu2  ;;  %v3332_v16 = vpop.f32.mrf.mxu3 }
 0x3ac   : > { %v3333_v12 = vadd.f32 %v3332_v16, %v3267_v10 }
 0x3ad   : > { %3351 = vst [vmem:[%s8063_s7 + $0x8] sm:$0xff] %v3306_v63 }
 0x3ae   : > { %3360 = vst [vmem:[%s8063_s7 + $0x50] sm:$0xff] %v3333_v12 }
 0x3bc   : > { %v3243_v36 = vpop.f32.mrf.mxu0  ;;  %v3308_v46 = vpop.f32.mrf.mxu1 }
 0x3bd   : > { %v3309_v8 = vadd.f32 %v3308_v46, %v3243_v36  ;;  %v3270_v27 = vpop.f32.mrf.mxu2  ;;  %v3335_v48 = vpop.f32.mrf.mxu3 }
 0x3be   : > { %v3336_v50 = vadd.f32 %v3335_v48, %v3270_v27 }
 0x3bf   : > { %3352 = vst [vmem:[%s8063_s7 + $0x10] sm:$0xff] %v3309_v8 }
 0x3c0   : > { %3361 = vst [vmem:[%s8063_s7 + $0x58] sm:$0xff] %v3336_v50 }
 0x3c5   : > { %v3273_v31 = vpop.f32.mrf.mxu2  ;;  %v3338_v21 = vpop.f32.mrf.mxu3 }
 0x3c6   : > { %v3339_v23 = vadd.f32 %v3338_v21, %v3273_v31 }
 0x3c8   : > { %3362 = vst [vmem:[%s8063_s7 + $0x60] sm:$0xff] %v3339_v23 }
 0x3ce   : > { %v3246_v53 = vpop.f32.mrf.mxu0  ;;  %v3311_v29 = vpop.f32.mrf.mxu1 }
 0x3cf   : > { %v3312_v24 = vadd.f32 %v3311_v29, %v3246_v53 }
 0x3d1   : > { %3353 = vst [vmem:[%s8063_s7 + $0x18] sm:$0xff] %v3312_v24 }
 0x3d9   : > { %v3249_v5 = vpop.f32.mrf.mxu0  ;;  %v3314_v20 = vpop.f32.mrf.mxu1 }
 0x3da   : > { %v3315_v54 = vadd.f32 %v3314_v20, %v3249_v5 }
 0x3dc   : > { %3354 = vst [vmem:[%s8063_s7 + $0x20] sm:$0xff] %v3315_v54 }
 0x3e6   : > { %v3276_v49 = vpop.f32.mrf.mxu2  ;;  %v3341_v51 = vpop.f32.mrf.mxu3 }
 0x3e7   : > { %v3342_v19 = vadd.f32 %v3341_v51, %v3276_v49 }
 0x3e9   : > { %3363 = vst [vmem:[%s8063_s7 + $0x68] sm:$0xff] %v3342_v19 }
 0x3eb   : > { %v3252_v35 = vpop.f32.mrf.mxu0  ;;  %v3317_v25 = vpop.f32.mrf.mxu1 }
 0x3ec   : > { %v3318_v3 = vadd.f32 %v3317_v25, %v3252_v35 }
 0x3ee   : > { %3355 = vst [vmem:[%s8063_s7 + $0x28] sm:$0xff] %v3318_v3 }
 0x3f3   : > { %v3255_v1 = vpop.f32.mrf.mxu0  ;;  %v3320_v6 = vpop.f32.mrf.mxu1 }
 0x3f4   : > { %v3321_v14 = vadd.f32 %v3320_v6, %v3255_v1 }
 0x3f6   : > { %3356 = vst [vmem:[%s8063_s7 + $0x30] sm:$0xff] %v3321_v14 }
 0x3f8   : > { %v3279_v4 = vpop.f32.mrf.mxu2  ;;  %v3344_v18 = vpop.f32.mrf.mxu3 }
 0x3f9   : > { %v3345_v15 = vadd.f32 %v3344_v18, %v3279_v4 }
 0x3fb   : > { %3364 = vst [vmem:[%s8063_s7 + $0x70] sm:$0xff] %v3345_v15  ;;  %v3258_v30 = vpop.f32.mrf.mxu0  ;;  %v3323_v47 = vpop.f32.mrf.mxu1 }
 0x3fc   : > { %v3324_v26 = vadd.f32 %v3323_v47, %v3258_v30 }
 0x3fe   : > { %3357 = vst [vmem:[%s8063_s7 + $0x38] sm:$0xff] %v3324_v26 }
 0x40a   : > { %v3282_v9 = vpop.f32.mrf.mxu2  ;;  %v3347_v7 = vpop.f32.mrf.mxu3 }
 0x40b   : > { %v3348_v42 = vadd.f32 %v3347_v7, %v3282_v9 }
 0x40d   : > { %3365 = vst [vmem:[%s8063_s7 + $0x78] sm:$0xff] %v3348_v42 }
 0x40e   : > { %4240 = shalt.err (!%p4237_p3)
}
 0x40f   : > { %s4294_s30 = smov 128   ;;  %s4295_s3 = smov 8  }
 0x410   : > { %4081 = dma.vmem_to_hbm [thread:$0]  (%p4349_p5), %s3380_s21, 2048, %s3382_s22, %s3367_s23, %s4294_s30, %s4294_s30, %s4295_s3  }
 0x411 PF: > { %p4087_p4 = scmp.ge.s32.totalorder %s4275_s12, 2  ;;  %s3396_s4 = sand.u32 1, %s4263_s9  }
 0x412   : > { %s3397_s5 = scalar_lea.sflag [#allocation3], %s3396_s4 }
 0x413   : > { %p4084_p7 = pnand %p4087_p4, %p4353_p6 }
 0x415   : > { %p4085_p8 = pneg %p4084_p7 }
 0x417   : > { %4258 = dma.done.wait (%p4085_p8), %s3397_s5, 2048  }
 0x418   : > { %4260 = vsyncadd (%p4085_p8), %s3397_s5, 4294965248  ;;  %p12_p9 = scmp.ge.s32.totalorder %s4336_s15, 6   ;;  %s8812_s9 = smov %s4267_s10 }
 0x419   : > { %s8813_s10 = smov %s4271_s11  ;;  %s8814_s11 = smov %s4347_s18 }
 0x41a   : > { %s8815_s12 = smov %s4336_s15  ;;  %14 = sbr.rel (!%p12_p9) target bundleno = 3 (0x3), region = 63 }
 0x41f   :  { %3403 = vsyncpa [#allocation3], 1 }
 0x420   :  { %3405 = vsyncpa [#allocation3 + $0x1], 1 }

</bundles_post_ra>
